<compile_context>
chip_gen: v7x
topology: tpu7x:2x2x1
jax: 0.10.0
libtpu: 0.0.40
codegen_flags: <defaults>
</compile_context>

<pallas_src>
import jax
import jax.numpy as jnp
from jax.experimental import pallas as pl
from jax.experimental.pallas import tpu as pltpu

# ----------------------------- model hyperparameters -----------------------------
NZ = 16    # latent dim (nz)
NGF = 8    # generator feature maps (ngf)
NC = 4     # output channels (nc)
BN_EPS = 1e-5


# ----------------------------- Pallas kernels -----------------------------
def fc_bn_relu_kernel(z_ref, w_ref, g_ref, b_ref, o_ref):
    """Layer 1: ConvTranspose(k=4, s=1, p=0) on a 1x1 input == per-position FC.

    z_ref: (N, Cin) bf16
    w_ref: (Cin, S*Cout) bf16, column = s*Cout + cout with s = ky*4 + kx
    g_ref, b_ref: (1, Cout) f32
    o_ref: (N, S*Cout) f32
    """
    y = jnp.dot(z_ref[...], w_ref[...], preferred_element_type=jnp.float32)
    n_rows, sc = y.shape
    c = g_ref.shape[1]
    s_pos = sc // c
    inv_cnt = 1.0 / float(n_rows * s_pos)

    # Per-channel batch stats over (N rows) x (S spatial positions).
    tot = y[:, 0:c]
    for s in range(1, s_pos):
        tot = tot + y[:, s * c:(s + 1) * c]
    mean = jnp.sum(tot, axis=0, keepdims=True) * inv_cnt          # (1, C)

    mean_full = jnp.tile(mean, (1, s_pos))                        # (1, S*C)
    d = y - mean_full
    d2 = d * d
    sqtot = d2[:, 0:c]
    for s in range(1, s_pos):
        sqtot = sqtot + d2[:, s * c:(s + 1) * c]
    var = jnp.sum(sqtot, axis=0, keepdims=True) * inv_cnt         # (1, C)

    inv = jax.lax.rsqrt(var + BN_EPS)
    scale = jnp.tile(inv * g_ref[...], (1, s_pos))                # (1, S*C)
    shift = jnp.tile(b_ref[...], (1, s_pos))                      # (1, S*C)
    o_ref[...] = jnp.maximum(d * scale + shift, 0.0)


def phase_matmul_bn_relu_kernel(p_ref, w_ref, g_ref, b_ref, o_ref):
    """Stride-2 ConvTranspose(4x4, pad 1) as 4 zero-free phase matmuls + BN + ReLU.

    p_ref: (4, Cin*4, M) bf16 phase patches, M = N*H*W (input spatial)
    w_ref: (4, Cout, Cin*4) bf16 phase weights
    g_ref, b_ref: (Cout, 1) f32
    o_ref: (4, Cout, M) f32  (lane-dense M last)
    """
    n_ph = p_ref.shape[0]
    m = p_ref.shape[2]
    ys = [jnp.dot(w_ref[g], p_ref[g], preferred_element_type=jnp.float32)
          for g in range(n_ph)]                                   # (Cout, M) each
    inv_cnt = 1.0 / float(n_ph * m)

    # BN over the full batch: phases x columns enumerate every output pixel.
    tot = ys[0]
    for y in ys[1:]:
        tot = tot + y
    mean = jnp.sum(tot, axis=1, keepdims=True) * inv_cnt          # (Cout, 1)

    sqtot = (ys[0] - mean) * (ys[0] - mean)
    for y in ys[1:]:
        d = y - mean
        sqtot = sqtot + d * d
    var = jnp.sum(sqtot, axis=1, keepdims=True) * inv_cnt         # (Cout, 1)

    inv = jax.lax.rsqrt(var + BN_EPS)
    scale = inv * g_ref[...]
    shift = b_ref[...] - mean * scale
    for g in range(n_ph):
        o_ref[g] = jnp.maximum(ys[g] * scale + shift, 0.0)


def phase_matmul_tanh_kernel(p_ref, w_ref, o_ref):
    """Final layer: 4 phase matmuls + tanh (no BN). Tiled over M via the grid."""
    for g in range(p_ref.shape[0]):
        y = jnp.dot(w_ref[g], p_ref[g], preferred_element_type=jnp.float32)
        o_ref[g] = jnp.tanh(y)


# ----------------------------- JAX glue (small layout ops) -----------------------------
def build_phase_patches(x):
    """(N, C, H, W) f32 -> (4, C*4, N*H*W) bf16 zero-free phase patches.

    Output phase (py, px) of a (k=4, s=2, p=1) ConvTranspose only touches a 2x2
    subset of the 4x4 taps. Patch row = cin*4 + dy*2 + dx, column = n*H*W + u*W + v.
    """
    n, c, h, w = x.shape
    xp = jnp.pad(x.astype(jnp.bfloat16), ((0, 0), (0, 0), (1, 1), (1, 1)))
    phases = []
    for py in (0, 1):
        for px in (0, 1):
            taps = [xp[:, :, py + dy:py + dy + h, px + dx:px + dx + w]
                    for dy in (0, 1) for dx in (0, 1)]            # (N, C, H, W) each
            t = jnp.stack(taps, axis=2)                           # (N, C, 4, H, W)
            t = t.transpose(1, 2, 0, 3, 4)                        # (C, 4, N, H, W)
            phases.append(t.reshape(c * 4, n * h * w))
    return jnp.stack(phases, axis=0)                              # (4, C*4, N*H*W)


def phases_to_image(y, n, h):
    """(4, C, N*H*H) phase outputs -> (N, C, 2H, 2H) image (pixel shuffle)."""
    c = y.shape[1]
    y = y.reshape(2, 2, c, n, h, h)                               # (py, px, C, N, u, v)
    y = y.transpose(3, 2, 4, 0, 5, 1)                             # (N, C, u, py, v, px)
    return y.reshape(n, c, 2 * h, 2 * h)


# ----------------------------- parameters -----------------------------
def _phase_weights(w_t):
    """PyTorch ConvTranspose2d weight (Cin, Cout, 4, 4) -> (4, Cout, Cin*4).

    Phase (py, px), tap (dy, dx) maps to kernel index ky = 3 - py - 2*dy,
    kx = 3 - px - 2*dx (from oy = 2*iy - 1 + ky).
    """
    cin, cout = w_t.shape[0], w_t.shape[1]
    phases = []
    for py in (0, 1):
        for px in (0, 1):
            wk = w_t[:, :, 3 - py::-2, 3 - px::-2]                # (Cin, Cout, 2, 2)
            phases.append(wk.transpose(1, 0, 2, 3).reshape(cout, cin * 4))
    return jnp.stack(phases, axis=0)                              # (4, Cout, Cin*4)


def init_params(key):
    """DCGAN-style init; all matmul-ready weight layouts precomputed once here."""
    layer_dims = [
        (NZ, NGF * 8),       # 1x1   -> 4x4   (k4, s1, p0) + BN + ReLU
        (NGF * 8, NGF * 4),  # 4x4   -> 8x8   (k4, s2, p1) + BN + ReLU
        (NGF * 4, NGF * 2),  # 8x8   -> 16x16 + BN + ReLU
        (NGF * 2, NGF),      # 16x16 -> 32x32 + BN + ReLU
        (NGF, NC),           # 32x32 -> 64x64 + Tanh (no BN)
    ]
    params = []
    for li, (cin, cout) in enumerate(layer_dims):
        key, kw, kg = jax.random.split(key, 3)
        w = 0.02 * jax.random.normal(kw, (cin, cout, 4, 4), dtype=jnp.float32)
        gamma = 1.0 + 0.02 * jax.random.normal(kg, (cout,), dtype=jnp.float32)
        beta = jnp.zeros((cout,), dtype=jnp.float32)
        if li == 0:
            # (Cin, 16*Cout): column = (ky*4 + kx)*Cout + cout  (lane-dense output)
            wm = w.transpose(0, 2, 3, 1).reshape(cin, 16 * cout)
            g = gamma.reshape(1, cout)
            b = beta.reshape(1, cout)
        else:
            wm = _phase_weights(w)                                # (4, Cout, Cin*4)
            g = gamma.reshape(cout, 1)
            b = beta.reshape(cout, 1)
        params.append(dict(w=wm.astype(jnp.bfloat16), gamma=g, beta=b))
    return params


# ----------------------------- generator forward -----------------------------
def generator_forward(z, params):
    n = z.shape[0]

    # ---- layer 1: z (N, nz, 1, 1) -> (N, ngf*8, 4, 4), fused BN + ReLU ------
    p0 = params[0]
    c0 = NGF * 8
    z2 = z.reshape(n, NZ).astype(jnp.bfloat16)
    y = pl.pallas_call(
        fc_bn_relu_kernel,
        out_shape=jax.ShapeDtypeStruct((n, 16 * c0), jnp.float32),
    )(z2, p0["w"], p0["gamma"], p0["beta"])
    x = y.reshape(n, 4, 4, c0).transpose(0, 3, 1, 2)              # (N, ngf*8, 4, 4)

    # ---- layers 2..4: phase-decomposed stride-2 deconv + fused BN + ReLU ----
    for lp in params[1:-1]:
        cout = lp["w"].shape[1]
        h = x.shape[2]
        m = n * h * h
        patches = build_phase_patches(x)                          # (4, Cin*4, M) bf16
        y = pl.pallas_call(
            phase_matmul_bn_relu_kernel,
            out_shape=jax.ShapeDtypeStruct((4, cout, m), jnp.float32),
        )(patches, lp["w"], lp["gamma"], lp["beta"])
        x = phases_to_image(y, n, h)                              # (N, Cout, 2H, 2H)

    # ---- layer 5: phase-decomposed deconv + tanh, tiled over M (parallel) ---
    lp = params[-1]
    cout = lp["w"].shape[1]                                       # NC
    kdim = lp["w"].shape[2]                                       # Cin*4
    h = x.shape[2]
    m = n * h * h
    patches = build_phase_patches(x)
    tm = min(m, 1024)
    assert m % tm == 0
    y = pl.pallas_call(
        phase_matmul_tanh_kernel,
        out_shape=jax.ShapeDtypeStruct((4, cout, m), jnp.float32),
        grid=(m // tm,),
        in_specs=[
            pl.BlockSpec((4, kdim, tm), lambda i: (0, 0, i)),
            pl.BlockSpec((4, cout, kdim), lambda i: (0, 0, 0)),
        ],
        out_specs=pl.BlockSpec((4, cout, tm), lambda i: (0, 0, i)),
        compiler_params=pltpu.CompilerParams(
            dimension_semantics=("parallel",)),
    )(patches, lp["w"])
    return phases_to_image(y, n, h)                               # (N, nc, 64, 64)


if __name__ == "__main__":
    key = jax.random.PRNGKey(0)
    kp, kz = jax.random.split(key)
    params = init_params(kp)

    batch = 2
    z = jax.random.normal(kz, (batch, NZ, 1, 1), dtype=jnp.float32)

    fwd = jax.jit(generator_forward)
    out = jax.block_until_ready(fwd(z, params))

    assert out.shape == (batch, NC, 64, 64), out.shape
    assert bool(jnp.all(jnp.isfinite(out)))
    assert bool(jnp.all(jnp.abs(out) <= 1.0 + 1e-6))  # tanh range
    print("KERNEL_OK")
</pallas_src>

<mosaic_0001>
module attributes {stable_mosaic.version = 11 : i64} {
  func.func @fc_bn_relu_kernel(%arg0: memref<2x16xbf16, #tpu.memory_space<vmem>>, %arg1: memref<16x1024xbf16, #tpu.memory_space<vmem>>, %arg2: memref<1x64xf32, #tpu.memory_space<vmem>>, %arg3: memref<1x64xf32, #tpu.memory_space<vmem>>, %arg4: memref<2x1024xf32, #tpu.memory_space<vmem>>) attributes {dimension_semantics = [], scalar_prefetch = 0 : i64, scratch_operands = 0 : i64, tpu.core_type = #tpu.core_type<tc>} {
    %c0 = arith.constant 0 : index
    %c0_0 = arith.constant 0 : index
    %0 = vector.load %arg0[%c0, %c0_0] : memref<2x16xbf16, #tpu.memory_space<vmem>>, vector<2x16xbf16>
    %c0_1 = arith.constant 0 : index
    %c0_2 = arith.constant 0 : index
    %1 = vector.load %arg1[%c0_1, %c0_2] : memref<16x1024xbf16, #tpu.memory_space<vmem>>, vector<16x1024xbf16>
    %cst = arith.constant dense<0.000000e+00> : vector<2x1024xf32>
    %2 = tpu.matmul %0, %1, %cst {dimension_numbers = #tpu.dot_dimension_numbers<[1], [0], [0], [1], [0, 0, 1, 1], [], []>} : vector<2x16xbf16>, vector<16x1024xbf16>, vector<2x1024xf32> -> vector<2x1024xf32>
    %3 = vector.extract_strided_slice %2 {offsets = [0, 0], sizes = [2, 64], strides = [1, 1]} : vector<2x1024xf32> to vector<2x64xf32>
    %4 = vector.extract_strided_slice %2 {offsets = [0, 64], sizes = [2, 64], strides = [1, 1]} : vector<2x1024xf32> to vector<2x64xf32>
    %5 = arith.addf %3, %4 : vector<2x64xf32>
    %6 = vector.extract_strided_slice %2 {offsets = [0, 128], sizes = [2, 64], strides = [1, 1]} : vector<2x1024xf32> to vector<2x64xf32>
    %7 = arith.addf %5, %6 : vector<2x64xf32>
    %8 = vector.extract_strided_slice %2 {offsets = [0, 192], sizes = [2, 64], strides = [1, 1]} : vector<2x1024xf32> to vector<2x64xf32>
    %9 = arith.addf %7, %8 : vector<2x64xf32>
    %10 = vector.extract_strided_slice %2 {offsets = [0, 256], sizes = [2, 64], strides = [1, 1]} : vector<2x1024xf32> to vector<2x64xf32>
    %11 = arith.addf %9, %10 : vector<2x64xf32>
    %12 = vector.extract_strided_slice %2 {offsets = [0, 320], sizes = [2, 64], strides = [1, 1]} : vector<2x1024xf32> to vector<2x64xf32>
    %13 = arith.addf %11, %12 : vector<2x64xf32>
    %14 = vector.extract_strided_slice %2 {offsets = [0, 384], sizes = [2, 64], strides = [1, 1]} : vector<2x1024xf32> to vector<2x64xf32>
    %15 = arith.addf %13, %14 : vector<2x64xf32>
    %16 = vector.extract_strided_slice %2 {offsets = [0, 448], sizes = [2, 64], strides = [1, 1]} : vector<2x1024xf32> to vector<2x64xf32>
    %17 = arith.addf %15, %16 : vector<2x64xf32>
    %18 = vector.extract_strided_slice %2 {offsets = [0, 512], sizes = [2, 64], strides = [1, 1]} : vector<2x1024xf32> to vector<2x64xf32>
    %19 = arith.addf %17, %18 : vector<2x64xf32>
    %20 = vector.extract_strided_slice %2 {offsets = [0, 576], sizes = [2, 64], strides = [1, 1]} : vector<2x1024xf32> to vector<2x64xf32>
    %21 = arith.addf %19, %20 : vector<2x64xf32>
    %22 = vector.extract_strided_slice %2 {offsets = [0, 640], sizes = [2, 64], strides = [1, 1]} : vector<2x1024xf32> to vector<2x64xf32>
    %23 = arith.addf %21, %22 : vector<2x64xf32>
    %24 = vector.extract_strided_slice %2 {offsets = [0, 704], sizes = [2, 64], strides = [1, 1]} : vector<2x1024xf32> to vector<2x64xf32>
    %25 = arith.addf %23, %24 : vector<2x64xf32>
    %26 = vector.extract_strided_slice %2 {offsets = [0, 768], sizes = [2, 64], strides = [1, 1]} : vector<2x1024xf32> to vector<2x64xf32>
    %27 = arith.addf %25, %26 : vector<2x64xf32>
    %28 = vector.extract_strided_slice %2 {offsets = [0, 832], sizes = [2, 64], strides = [1, 1]} : vector<2x1024xf32> to vector<2x64xf32>
    %29 = arith.addf %27, %28 : vector<2x64xf32>
    %30 = vector.extract_strided_slice %2 {offsets = [0, 896], sizes = [2, 64], strides = [1, 1]} : vector<2x1024xf32> to vector<2x64xf32>
    %31 = arith.addf %29, %30 : vector<2x64xf32>
    %32 = vector.extract_strided_slice %2 {offsets = [0, 960], sizes = [2, 64], strides = [1, 1]} : vector<2x1024xf32> to vector<2x64xf32>
    %33 = arith.addf %31, %32 : vector<2x64xf32>
    %cst_3 = arith.constant dense<0.000000e+00> : vector<64xf32>
    %34 = vector.multi_reduction <add>, %33, %cst_3 [0] : vector<2x64xf32> to vector<64xf32>
    %35 = vector.shape_cast %34 : vector<64xf32> to vector<1x64xf32>
    %cst_4 = arith.constant 3.125000e-02 : f32
    %36 = vector.broadcast %cst_4 : f32 to vector<1x64xf32>
    %37 = arith.mulf %35, %36 : vector<1x64xf32>
    %38 = tpu.concatenate %37, %37, %37, %37, %37, %37, %37, %37, %37, %37, %37, %37, %37, %37, %37, %37 in 1 : vector<1x64xf32>, vector<1x64xf32>, vector<1x64xf32>, vector<1x64xf32>, vector<1x64xf32>, vector<1x64xf32>, vector<1x64xf32>, vector<1x64xf32>, vector<1x64xf32>, vector<1x64xf32>, vector<1x64xf32>, vector<1x64xf32>, vector<1x64xf32>, vector<1x64xf32>, vector<1x64xf32>, vector<1x64xf32> -> vector<1x1024xf32>
    %39 = vector.broadcast %38 : vector<1x1024xf32> to vector<2x1024xf32>
    %40 = arith.subf %2, %39 : vector<2x1024xf32>
    %41 = arith.mulf %40, %40 : vector<2x1024xf32>
    %42 = vector.extract_strided_slice %41 {offsets = [0, 0], sizes = [2, 64], strides = [1, 1]} : vector<2x1024xf32> to vector<2x64xf32>
    %43 = vector.extract_strided_slice %41 {offsets = [0, 64], sizes = [2, 64], strides = [1, 1]} : vector<2x1024xf32> to vector<2x64xf32>
    %44 = arith.addf %42, %43 : vector<2x64xf32>
    %45 = vector.extract_strided_slice %41 {offsets = [0, 128], sizes = [2, 64], strides = [1, 1]} : vector<2x1024xf32> to vector<2x64xf32>
    %46 = arith.addf %44, %45 : vector<2x64xf32>
    %47 = vector.extract_strided_slice %41 {offsets = [0, 192], sizes = [2, 64], strides = [1, 1]} : vector<2x1024xf32> to vector<2x64xf32>
    %48 = arith.addf %46, %47 : vector<2x64xf32>
    %49 = vector.extract_strided_slice %41 {offsets = [0, 256], sizes = [2, 64], strides = [1, 1]} : vector<2x1024xf32> to vector<2x64xf32>
    %50 = arith.addf %48, %49 : vector<2x64xf32>
    %51 = vector.extract_strided_slice %41 {offsets = [0, 320], sizes = [2, 64], strides = [1, 1]} : vector<2x1024xf32> to vector<2x64xf32>
    %52 = arith.addf %50, %51 : vector<2x64xf32>
    %53 = vector.extract_strided_slice %41 {offsets = [0, 384], sizes = [2, 64], strides = [1, 1]} : vector<2x1024xf32> to vector<2x64xf32>
    %54 = arith.addf %52, %53 : vector<2x64xf32>
    %55 = vector.extract_strided_slice %41 {offsets = [0, 448], sizes = [2, 64], strides = [1, 1]} : vector<2x1024xf32> to vector<2x64xf32>
    %56 = arith.addf %54, %55 : vector<2x64xf32>
    %57 = vector.extract_strided_slice %41 {offsets = [0, 512], sizes = [2, 64], strides = [1, 1]} : vector<2x1024xf32> to vector<2x64xf32>
    %58 = arith.addf %56, %57 : vector<2x64xf32>
    %59 = vector.extract_strided_slice %41 {offsets = [0, 576], sizes = [2, 64], strides = [1, 1]} : vector<2x1024xf32> to vector<2x64xf32>
    %60 = arith.addf %58, %59 : vector<2x64xf32>
    %61 = vector.extract_strided_slice %41 {offsets = [0, 640], sizes = [2, 64], strides = [1, 1]} : vector<2x1024xf32> to vector<2x64xf32>
    %62 = arith.addf %60, %61 : vector<2x64xf32>
    %63 = vector.extract_strided_slice %41 {offsets = [0, 704], sizes = [2, 64], strides = [1, 1]} : vector<2x1024xf32> to vector<2x64xf32>
    %64 = arith.addf %62, %63 : vector<2x64xf32>
    %65 = vector.extract_strided_slice %41 {offsets = [0, 768], sizes = [2, 64], strides = [1, 1]} : vector<2x1024xf32> to vector<2x64xf32>
    %66 = arith.addf %64, %65 : vector<2x64xf32>
    %67 = vector.extract_strided_slice %41 {offsets = [0, 832], sizes = [2, 64], strides = [1, 1]} : vector<2x1024xf32> to vector<2x64xf32>
    %68 = arith.addf %66, %67 : vector<2x64xf32>
    %69 = vector.extract_strided_slice %41 {offsets = [0, 896], sizes = [2, 64], strides = [1, 1]} : vector<2x1024xf32> to vector<2x64xf32>
    %70 = arith.addf %68, %69 : vector<2x64xf32>
    %71 = vector.extract_strided_slice %41 {offsets = [0, 960], sizes = [2, 64], strides = [1, 1]} : vector<2x1024xf32> to vector<2x64xf32>
    %72 = arith.addf %70, %71 : vector<2x64xf32>
    %cst_5 = arith.constant dense<0.000000e+00> : vector<64xf32>
    %73 = vector.multi_reduction <add>, %72, %cst_5 [0] : vector<2x64xf32> to vector<64xf32>
    %74 = vector.shape_cast %73 : vector<64xf32> to vector<1x64xf32>
    %cst_6 = arith.constant 3.125000e-02 : f32
    %75 = vector.broadcast %cst_6 : f32 to vector<1x64xf32>
    %76 = arith.mulf %74, %75 : vector<1x64xf32>
    %cst_7 = arith.constant 9.99999974E-6 : f32
    %77 = vector.broadcast %cst_7 : f32 to vector<1x64xf32>
    %78 = arith.addf %76, %77 : vector<1x64xf32>
    %79 = math.rsqrt %78 : vector<1x64xf32>
    %c0_8 = arith.constant 0 : index
    %c0_9 = arith.constant 0 : index
    %80 = vector.load %arg2[%c0_8, %c0_9] : memref<1x64xf32, #tpu.memory_space<vmem>>, vector<1x64xf32>
    %81 = arith.mulf %79, %80 : vector<1x64xf32>
    %82 = tpu.concatenate %81, %81, %81, %81, %81, %81, %81, %81, %81, %81, %81, %81, %81, %81, %81, %81 in 1 : vector<1x64xf32>, vector<1x64xf32>, vector<1x64xf32>, vector<1x64xf32>, vector<1x64xf32>, vector<1x64xf32>, vector<1x64xf32>, vector<1x64xf32>, vector<1x64xf32>, vector<1x64xf32>, vector<1x64xf32>, vector<1x64xf32>, vector<1x64xf32>, vector<1x64xf32>, vector<1x64xf32>, vector<1x64xf32> -> vector<1x1024xf32>
    %c0_10 = arith.constant 0 : index
    %c0_11 = arith.constant 0 : index
    %83 = vector.load %arg3[%c0_10, %c0_11] : memref<1x64xf32, #tpu.memory_space<vmem>>, vector<1x64xf32>
    %84 = tpu.concatenate %83, %83, %83, %83, %83, %83, %83, %83, %83, %83, %83, %83, %83, %83, %83, %83 in 1 : vector<1x64xf32>, vector<1x64xf32>, vector<1x64xf32>, vector<1x64xf32>, vector<1x64xf32>, vector<1x64xf32>, vector<1x64xf32>, vector<1x64xf32>, vector<1x64xf32>, vector<1x64xf32>, vector<1x64xf32>, vector<1x64xf32>, vector<1x64xf32>, vector<1x64xf32>, vector<1x64xf32>, vector<1x64xf32> -> vector<1x1024xf32>
    %85 = vector.broadcast %82 : vector<1x1024xf32> to vector<2x1024xf32>
    %86 = arith.mulf %40, %85 : vector<2x1024xf32>
    %87 = vector.broadcast %84 : vector<1x1024xf32> to vector<2x1024xf32>
    %88 = arith.addf %86, %87 : vector<2x1024xf32>
    %cst_12 = arith.constant 0.000000e+00 : f32
    %89 = vector.broadcast %cst_12 : f32 to vector<2x1024xf32>
    %90 = arith.maximumf %88, %89 : vector<2x1024xf32>
    %c0_13 = arith.constant 0 : index
    %c0_14 = arith.constant 0 : index
    %91 = vector.load %arg4[%c0_13, %c0_14] : memref<2x1024xf32, #tpu.memory_space<vmem>>, vector<2x1024xf32>
    tpu.vector_store %arg4[%c0_13, %c0_14], %90 {strides = array<i32>} : memref<2x1024xf32, #tpu.memory_space<vmem>>, vector<2x1024xf32>,
    return
  }
}

module attributes {stable_mosaic.version = 11 : i64} {
  func.func @phase_matmul_bn_relu_kernel(%arg0: memref<4x256x32xbf16, #tpu.memory_space<vmem>>, %arg1: memref<4x32x256xbf16, #tpu.memory_space<vmem>>, %arg2: memref<32x1xf32, #tpu.memory_space<vmem>>, %arg3: memref<32x1xf32, #tpu.memory_space<vmem>>, %arg4: memref<4x32x32xf32, #tpu.memory_space<vmem>>) attributes {dimension_semantics = [], scalar_prefetch = 0 : i64, scratch_operands = 0 : i64, tpu.core_type = #tpu.core_type<tc>} {
    %c0 = arith.constant 0 : index
    %c0_0 = arith.constant 0 : index
    %c0_1 = arith.constant 0 : index
    %0 = vector.load %arg1[%c0, %c0_0, %c0_1] : memref<4x32x256xbf16, #tpu.memory_space<vmem>>, vector<1x32x256xbf16>
    %1 = vector.shape_cast %0 : vector<1x32x256xbf16> to vector<32x256xbf16>
    %c0_2 = arith.constant 0 : index
    %c0_3 = arith.constant 0 : index
    %c0_4 = arith.constant 0 : index
    %2 = vector.load %arg0[%c0_2, %c0_3, %c0_4] : memref<4x256x32xbf16, #tpu.memory_space<vmem>>, vector<1x256x32xbf16>
    %3 = vector.shape_cast %2 : vector<1x256x32xbf16> to vector<256x32xbf16>
    %cst = arith.constant dense<0.000000e+00> : vector<32x32xf32>
    %4 = tpu.matmul %1, %3, %cst {dimension_numbers = #tpu.dot_dimension_numbers<[1], [0], [0], [1], [0, 0, 1, 1], [], []>} : vector<32x256xbf16>, vector<256x32xbf16>, vector<32x32xf32> -> vector<32x32xf32>
    %c1 = arith.constant 1 : index
    %c0_5 = arith.constant 0 : index
    %c0_6 = arith.constant 0 : index
    %5 = vector.load %arg1[%c1, %c0_5, %c0_6] : memref<4x32x256xbf16, #tpu.memory_space<vmem>>, vector<1x32x256xbf16>
    %6 = vector.shape_cast %5 : vector<1x32x256xbf16> to vector<32x256xbf16>
    %c1_7 = arith.constant 1 : index
    %c0_8 = arith.constant 0 : index
    %c0_9 = arith.constant 0 : index
    %7 = vector.load %arg0[%c1_7, %c0_8, %c0_9] : memref<4x256x32xbf16, #tpu.memory_space<vmem>>, vector<1x256x32xbf16>
    %8 = vector.shape_cast %7 : vector<1x256x32xbf16> to vector<256x32xbf16>
    %cst_10 = arith.constant dense<0.000000e+00> : vector<32x32xf32>
    %9 = tpu.matmul %6, %8, %cst_10 {dimension_numbers = #tpu.dot_dimension_numbers<[1], [0], [0], [1], [0, 0, 1, 1], [], []>} : vector<32x256xbf16>, vector<256x32xbf16>, vector<32x32xf32> -> vector<32x32xf32>
    %c2 = arith.constant 2 : index
    %c0_11 = arith.constant 0 : index
    %c0_12 = arith.constant 0 : index
    %10 = vector.load %arg1[%c2, %c0_11, %c0_12] : memref<4x32x256xbf16, #tpu.memory_space<vmem>>, vector<1x32x256xbf16>
    %11 = vector.shape_cast %10 : vector<1x32x256xbf16> to vector<32x256xbf16>
    %c2_13 = arith.constant 2 : index
    %c0_14 = arith.constant 0 : index
    %c0_15 = arith.constant 0 : index
    %12 = vector.load %arg0[%c2_13, %c0_14, %c0_15] : memref<4x256x32xbf16, #tpu.memory_space<vmem>>, vector<1x256x32xbf16>
    %13 = vector.shape_cast %12 : vector<1x256x32xbf16> to vector<256x32xbf16>
    %cst_16 = arith.constant dense<0.000000e+00> : vector<32x32xf32>
    %14 = tpu.matmul %11, %13, %cst_16 {dimension_numbers = #tpu.dot_dimension_numbers<[1], [0], [0], [1], [0, 0, 1, 1], [], []>} : vector<32x256xbf16>, vector<256x32xbf16>, vector<32x32xf32> -> vector<32x32xf32>
    %c3 = arith.constant 3 : index
    %c0_17 = arith.constant 0 : index
    %c0_18 = arith.constant 0 : index
    %15 = vector.load %arg1[%c3, %c0_17, %c0_18] : memref<4x32x256xbf16, #tpu.memory_space<vmem>>, vector<1x32x256xbf16>
    %16 = vector.shape_cast %15 : vector<1x32x256xbf16> to vector<32x256xbf16>
    %c3_19 = arith.constant 3 : index
    %c0_20 = arith.constant 0 : index
    %c0_21 = arith.constant 0 : index
    %17 = vector.load %arg0[%c3_19, %c0_20, %c0_21] : memref<4x256x32xbf16, #tpu.memory_space<vmem>>, vector<1x256x32xbf16>
    %18 = vector.shape_cast %17 : vector<1x256x32xbf16> to vector<256x32xbf16>
    %cst_22 = arith.constant dense<0.000000e+00> : vector<32x32xf32>
    %19 = tpu.matmul %16, %18, %cst_22 {dimension_numbers = #tpu.dot_dimension_numbers<[1], [0], [0], [1], [0, 0, 1, 1], [], []>} : vector<32x256xbf16>, vector<256x32xbf16>, vector<32x32xf32> -> vector<32x32xf32>
    %20 = arith.addf %4, %9 : vector<32x32xf32>
    %21 = arith.addf %20, %14 : vector<32x32xf32>
    %22 = arith.addf %21, %19 : vector<32x32xf32>
    %cst_23 = arith.constant dense<0.000000e+00> : vector<32xf32>
    %23 = vector.multi_reduction <add>, %22, %cst_23 [1] : vector<32x32xf32> to vector<32xf32>
    %24 = vector.shape_cast %23 : vector<32xf32> to vector<32x1xf32>
    %cst_24 = arith.constant 7.812500e-03 : f32
    %25 = vector.broadcast %cst_24 : f32 to vector<32x1xf32>
    %26 = arith.mulf %24, %25 : vector<32x1xf32>
    %27 = vector.broadcast %26 : vector<32x1xf32> to vector<32x32xf32>
    %28 = arith.subf %4, %27 : vector<32x32xf32>
    %29 = vector.broadcast %26 : vector<32x1xf32> to vector<32x32xf32>
    %30 = arith.subf %4, %29 : vector<32x32xf32>
    %31 = arith.mulf %28, %30 : vector<32x32xf32>
    %32 = vector.broadcast %26 : vector<32x1xf32> to vector<32x32xf32>
    %33 = arith.subf %9, %32 : vector<32x32xf32>
    %34 = arith.mulf %33, %33 : vector<32x32xf32>
    %35 = arith.addf %31, %34 : vector<32x32xf32>
    %36 = vector.broadcast %26 : vector<32x1xf32> to vector<32x32xf32>
    %37 = arith.subf %14, %36 : vector<32x32xf32>
    %38 = arith.mulf %37, %37 : vector<32x32xf32>
    %39 = arith.addf %35, %38 : vector<32x32xf32>
    %40 = vector.broadcast %26 : vector<32x1xf32> to vector<32x32xf32>
    %41 = arith.subf %19, %40 : vector<32x32xf32>
    %42 = arith.mulf %41, %41 : vector<32x32xf32>
    %43 = arith.addf %39, %42 : vector<32x32xf32>
    %cst_25 = arith.constant dense<0.000000e+00> : vector<32xf32>
    %44 = vector.multi_reduction <add>, %43, %cst_25 [1] : vector<32x32xf32> to vector<32xf32>
    %45 = vector.shape_cast %44 : vector<32xf32> to vector<32x1xf32>
    %cst_26 = arith.constant 7.812500e-03 : f32
    %46 = vector.broadcast %cst_26 : f32 to vector<32x1xf32>
    %47 = arith.mulf %45, %46 : vector<32x1xf32>
    %cst_27 = arith.constant 9.99999974E-6 : f32
    %48 = vector.broadcast %cst_27 : f32 to vector<32x1xf32>
    %49 = arith.addf %47, %48 : vector<32x1xf32>
    %50 = math.rsqrt %49 : vector<32x1xf32>
    %c0_28 = arith.constant 0 : index
    %c0_29 = arith.constant 0 : index
    %51 = vector.load %arg2[%c0_28, %c0_29] : memref<32x1xf32, #tpu.memory_space<vmem>>, vector<32x1xf32>
    %52 = arith.mulf %50, %51 : vector<32x1xf32>
    %c0_30 = arith.constant 0 : index
    %c0_31 = arith.constant 0 : index
    %53 = vector.load %arg3[%c0_30, %c0_31] : memref<32x1xf32, #tpu.memory_space<vmem>>, vector<32x1xf32>
    %54 = arith.mulf %26, %52 : vector<32x1xf32>
    %55 = arith.subf %53, %54 : vector<32x1xf32>
    %56 = vector.broadcast %52 : vector<32x1xf32> to vector<32x32xf32>
    %57 = arith.mulf %4, %56 : vector<32x32xf32>
    %58 = vector.broadcast %55 : vector<32x1xf32> to vector<32x32xf32>
    %59 = arith.addf %57, %58 : vector<32x32xf32>
    %cst_32 = arith.constant 0.000000e+00 : f32
    %60 = vector.broadcast %cst_32 : f32 to vector<32x32xf32>
    %61 = arith.maximumf %59, %60 : vector<32x32xf32>
    %c0_33 = arith.constant 0 : index
    %c0_34 = arith.constant 0 : index
    %c0_35 = arith.constant 0 : index
    %62 = vector.load %arg4[%c0_33, %c0_34, %c0_35] : memref<4x32x32xf32, #tpu.memory_space<vmem>>, vector<1x32x32xf32>
    %63 = vector.shape_cast %62 : vector<1x32x32xf32> to vector<32x32xf32>
    %64 = vector.shape_cast %61 : vector<32x32xf32> to vector<1x32x32xf32>
    tpu.vector_store %arg4[%c0_33, %c0_34, %c0_35], %64 {strides = array<i32>} : memref<4x32x32xf32, #tpu.memory_space<vmem>>, vector<1x32x32xf32>,
    %65 = vector.broadcast %52 : vector<32x1xf32> to vector<32x32xf32>
    %66 = arith.mulf %9, %65 : vector<32x32xf32>
    %67 = vector.broadcast %55 : vector<32x1xf32> to vector<32x32xf32>
    %68 = arith.addf %66, %67 : vector<32x32xf32>
    %cst_36 = arith.constant 0.000000e+00 : f32
    %69 = vector.broadcast %cst_36 : f32 to vector<32x32xf32>
    %70 = arith.maximumf %68, %69 : vector<32x32xf32>
    %c1_37 = arith.constant 1 : index
    %c0_38 = arith.constant 0 : index
    %c0_39 = arith.constant 0 : index
    %71 = vector.load %arg4[%c1_37, %c0_38, %c0_39] : memref<4x32x32xf32, #tpu.memory_space<vmem>>, vector<1x32x32xf32>
    %72 = vector.shape_cast %71 : vector<1x32x32xf32> to vector<32x32xf32>
    %73 = vector.shape_cast %70 : vector<32x32xf32> to vector<1x32x32xf32>
    tpu.vector_store %arg4[%c1_37, %c0_38, %c0_39], %73 {strides = array<i32>} : memref<4x32x32xf32, #tpu.memory_space<vmem>>, vector<1x32x32xf32>,
    %74 = vector.broadcast %52 : vector<32x1xf32> to vector<32x32xf32>
    %75 = arith.mulf %14, %74 : vector<32x32xf32>
    %76 = vector.broadcast %55 : vector<32x1xf32> to vector<32x32xf32>
    %77 = arith.addf %75, %76 : vector<32x32xf32>
    %cst_40 = arith.constant 0.000000e+00 : f32
    %78 = vector.broadcast %cst_40 : f32 to vector<32x32xf32>
    %79 = arith.maximumf %77, %78 : vector<32x32xf32>
    %c2_41 = arith.constant 2 : index
    %c0_42 = arith.constant 0 : index
    %c0_43 = arith.constant 0 : index
    %80 = vector.load %arg4[%c2_41, %c0_42, %c0_43] : memref<4x32x32xf32, #tpu.memory_space<vmem>>, vector<1x32x32xf32>
    %81 = vector.shape_cast %80 : vector<1x32x32xf32> to vector<32x32xf32>
    %82 = vector.shape_cast %79 : vector<32x32xf32> to vector<1x32x32xf32>
    tpu.vector_store %arg4[%c2_41, %c0_42, %c0_43], %82 {strides = array<i32>} : memref<4x32x32xf32, #tpu.memory_space<vmem>>, vector<1x32x32xf32>,
    %83 = vector.broadcast %52 : vector<32x1xf32> to vector<32x32xf32>
    %84 = arith.mulf %19, %83 : vector<32x32xf32>
    %85 = vector.broadcast %55 : vector<32x1xf32> to vector<32x32xf32>
    %86 = arith.addf %84, %85 : vector<32x32xf32>
    %cst_44 = arith.constant 0.000000e+00 : f32
    %87 = vector.broadcast %cst_44 : f32 to vector<32x32xf32>
    %88 = arith.maximumf %86, %87 : vector<32x32xf32>
    %c3_45 = arith.constant 3 : index
    %c0_46 = arith.constant 0 : index
    %c0_47 = arith.constant 0 : index
    %89 = vector.load %arg4[%c3_45, %c0_46, %c0_47] : memref<4x32x32xf32, #tpu.memory_space<vmem>>, vector<1x32x32xf32>
    %90 = vector.shape_cast %89 : vector<1x32x32xf32> to vector<32x32xf32>
    %91 = vector.shape_cast %88 : vector<32x32xf32> to vector<1x32x32xf32>
    tpu.vector_store %arg4[%c3_45, %c0_46, %c0_47], %91 {strides = array<i32>} : memref<4x32x32xf32, #tpu.memory_space<vmem>>, vector<1x32x32xf32>,
    return
  }
}

module attributes {stable_mosaic.version = 11 : i64} {
  func.func @phase_matmul_bn_relu_kernel(%arg0: memref<4x128x128xbf16, #tpu.memory_space<vmem>>, %arg1: memref<4x16x128xbf16, #tpu.memory_space<vmem>>, %arg2: memref<16x1xf32, #tpu.memory_space<vmem>>, %arg3: memref<16x1xf32, #tpu.memory_space<vmem>>, %arg4: memref<4x16x128xf32, #tpu.memory_space<vmem>>) attributes {dimension_semantics = [], scalar_prefetch = 0 : i64, scratch_operands = 0 : i64, tpu.core_type = #tpu.core_type<tc>} {
    %c0 = arith.constant 0 : index
    %c0_0 = arith.constant 0 : index
    %c0_1 = arith.constant 0 : index
    %0 = vector.load %arg1[%c0, %c0_0, %c0_1] : memref<4x16x128xbf16, #tpu.memory_space<vmem>>, vector<1x16x128xbf16>
    %1 = vector.shape_cast %0 : vector<1x16x128xbf16> to vector<16x128xbf16>
    %c0_2 = arith.constant 0 : index
    %c0_3 = arith.constant 0 : index
    %c0_4 = arith.constant 0 : index
    %2 = vector.load %arg0[%c0_2, %c0_3, %c0_4] : memref<4x128x128xbf16, #tpu.memory_space<vmem>>, vector<1x128x128xbf16>
    %3 = vector.shape_cast %2 : vector<1x128x128xbf16> to vector<128x128xbf16>
    %cst = arith.constant dense<0.000000e+00> : vector<16x128xf32>
    %4 = tpu.matmul %1, %3, %cst {dimension_numbers = #tpu.dot_dimension_numbers<[1], [0], [0], [1], [0, 0, 1, 1], [], []>} : vector<16x128xbf16>, vector<128x128xbf16>, vector<16x128xf32> -> vector<16x128xf32>
    %c1 = arith.constant 1 : index
    %c0_5 = arith.constant 0 : index
    %c0_6 = arith.constant 0 : index
    %5 = vector.load %arg1[%c1, %c0_5, %c0_6] : memref<4x16x128xbf16, #tpu.memory_space<vmem>>, vector<1x16x128xbf16>
    %6 = vector.shape_cast %5 : vector<1x16x128xbf16> to vector<16x128xbf16>
    %c1_7 = arith.constant 1 : index
    %c0_8 = arith.constant 0 : index
    %c0_9 = arith.constant 0 : index
    %7 = vector.load %arg0[%c1_7, %c0_8, %c0_9] : memref<4x128x128xbf16, #tpu.memory_space<vmem>>, vector<1x128x128xbf16>
    %8 = vector.shape_cast %7 : vector<1x128x128xbf16> to vector<128x128xbf16>
    %cst_10 = arith.constant dense<0.000000e+00> : vector<16x128xf32>
    %9 = tpu.matmul %6, %8, %cst_10 {dimension_numbers = #tpu.dot_dimension_numbers<[1], [0], [0], [1], [0, 0, 1, 1], [], []>} : vector<16x128xbf16>, vector<128x128xbf16>, vector<16x128xf32> -> vector<16x128xf32>
    %c2 = arith.constant 2 : index
    %c0_11 = arith.constant 0 : index
    %c0_12 = arith.constant 0 : index
    %10 = vector.load %arg1[%c2, %c0_11, %c0_12] : memref<4x16x128xbf16, #tpu.memory_space<vmem>>, vector<1x16x128xbf16>
    %11 = vector.shape_cast %10 : vector<1x16x128xbf16> to vector<16x128xbf16>
    %c2_13 = arith.constant 2 : index
    %c0_14 = arith.constant 0 : index
    %c0_15 = arith.constant 0 : index
    %12 = vector.load %arg0[%c2_13, %c0_14, %c0_15] : memref<4x128x128xbf16, #tpu.memory_space<vmem>>, vector<1x128x128xbf16>
    %13 = vector.shape_cast %12 : vector<1x128x128xbf16> to vector<128x128xbf16>
    %cst_16 = arith.constant dense<0.000000e+00> : vector<16x128xf32>
    %14 = tpu.matmul %11, %13, %cst_16 {dimension_numbers = #tpu.dot_dimension_numbers<[1], [0], [0], [1], [0, 0, 1, 1], [], []>} : vector<16x128xbf16>, vector<128x128xbf16>, vector<16x128xf32> -> vector<16x128xf32>
    %c3 = arith.constant 3 : index
    %c0_17 = arith.constant 0 : index
    %c0_18 = arith.constant 0 : index
    %15 = vector.load %arg1[%c3, %c0_17, %c0_18] : memref<4x16x128xbf16, #tpu.memory_space<vmem>>, vector<1x16x128xbf16>
    %16 = vector.shape_cast %15 : vector<1x16x128xbf16> to vector<16x128xbf16>
    %c3_19 = arith.constant 3 : index
    %c0_20 = arith.constant 0 : index
    %c0_21 = arith.constant 0 : index
    %17 = vector.load %arg0[%c3_19, %c0_20, %c0_21] : memref<4x128x128xbf16, #tpu.memory_space<vmem>>, vector<1x128x128xbf16>
    %18 = vector.shape_cast %17 : vector<1x128x128xbf16> to vector<128x128xbf16>
    %cst_22 = arith.constant dense<0.000000e+00> : vector<16x128xf32>
    %19 = tpu.matmul %16, %18, %cst_22 {dimension_numbers = #tpu.dot_dimension_numbers<[1], [0], [0], [1], [0, 0, 1, 1], [], []>} : vector<16x128xbf16>, vector<128x128xbf16>, vector<16x128xf32> -> vector<16x128xf32>
    %20 = arith.addf %4, %9 : vector<16x128xf32>
    %21 = arith.addf %20, %14 : vector<16x128xf32>
    %22 = arith.addf %21, %19 : vector<16x128xf32>
    %cst_23 = arith.constant dense<0.000000e+00> : vector<16xf32>
    %23 = vector.multi_reduction <add>, %22, %cst_23 [1] : vector<16x128xf32> to vector<16xf32>
    %24 = vector.shape_cast %23 : vector<16xf32> to vector<16x1xf32>
    %cst_24 = arith.constant 0.001953125 : f32
    %25 = vector.broadcast %cst_24 : f32 to vector<16x1xf32>
    %26 = arith.mulf %24, %25 : vector<16x1xf32>
    %27 = vector.broadcast %26 : vector<16x1xf32> to vector<16x128xf32>
    %28 = arith.subf %4, %27 : vector<16x128xf32>
    %29 = vector.broadcast %26 : vector<16x1xf32> to vector<16x128xf32>
    %30 = arith.subf %4, %29 : vector<16x128xf32>
    %31 = arith.mulf %28, %30 : vector<16x128xf32>
    %32 = vector.broadcast %26 : vector<16x1xf32> to vector<16x128xf32>
    %33 = arith.subf %9, %32 : vector<16x128xf32>
    %34 = arith.mulf %33, %33 : vector<16x128xf32>
    %35 = arith.addf %31, %34 : vector<16x128xf32>
    %36 = vector.broadcast %26 : vector<16x1xf32> to vector<16x128xf32>
    %37 = arith.subf %14, %36 : vector<16x128xf32>
    %38 = arith.mulf %37, %37 : vector<16x128xf32>
    %39 = arith.addf %35, %38 : vector<16x128xf32>
    %40 = vector.broadcast %26 : vector<16x1xf32> to vector<16x128xf32>
    %41 = arith.subf %19, %40 : vector<16x128xf32>
    %42 = arith.mulf %41, %41 : vector<16x128xf32>
    %43 = arith.addf %39, %42 : vector<16x128xf32>
    %cst_25 = arith.constant dense<0.000000e+00> : vector<16xf32>
    %44 = vector.multi_reduction <add>, %43, %cst_25 [1] : vector<16x128xf32> to vector<16xf32>
    %45 = vector.shape_cast %44 : vector<16xf32> to vector<16x1xf32>
    %cst_26 = arith.constant 0.001953125 : f32
    %46 = vector.broadcast %cst_26 : f32 to vector<16x1xf32>
    %47 = arith.mulf %45, %46 : vector<16x1xf32>
    %cst_27 = arith.constant 9.99999974E-6 : f32
    %48 = vector.broadcast %cst_27 : f32 to vector<16x1xf32>
    %49 = arith.addf %47, %48 : vector<16x1xf32>
    %50 = math.rsqrt %49 : vector<16x1xf32>
    %c0_28 = arith.constant 0 : index
    %c0_29 = arith.constant 0 : index
    %51 = vector.load %arg2[%c0_28, %c0_29] : memref<16x1xf32, #tpu.memory_space<vmem>>, vector<16x1xf32>
    %52 = arith.mulf %50, %51 : vector<16x1xf32>
    %c0_30 = arith.constant 0 : index
    %c0_31 = arith.constant 0 : index
    %53 = vector.load %arg3[%c0_30, %c0_31] : memref<16x1xf32, #tpu.memory_space<vmem>>, vector<16x1xf32>
    %54 = arith.mulf %26, %52 : vector<16x1xf32>
    %55 = arith.subf %53, %54 : vector<16x1xf32>
    %56 = vector.broadcast %52 : vector<16x1xf32> to vector<16x128xf32>
    %57 = arith.mulf %4, %56 : vector<16x128xf32>
    %58 = vector.broadcast %55 : vector<16x1xf32> to vector<16x128xf32>
    %59 = arith.addf %57, %58 : vector<16x128xf32>
    %cst_32 = arith.constant 0.000000e+00 : f32
    %60 = vector.broadcast %cst_32 : f32 to vector<16x128xf32>
    %61 = arith.maximumf %59, %60 : vector<16x128xf32>
    %c0_33 = arith.constant 0 : index
    %c0_34 = arith.constant 0 : index
    %c0_35 = arith.constant 0 : index
    %62 = vector.load %arg4[%c0_33, %c0_34, %c0_35] : memref<4x16x128xf32, #tpu.memory_space<vmem>>, vector<1x16x128xf32>
    %63 = vector.shape_cast %62 : vector<1x16x128xf32> to vector<16x128xf32>
    %64 = vector.shape_cast %61 : vector<16x128xf32> to vector<1x16x128xf32>
    tpu.vector_store %arg4[%c0_33, %c0_34, %c0_35], %64 {strides = array<i32>} : memref<4x16x128xf32, #tpu.memory_space<vmem>>, vector<1x16x128xf32>,
    %65 = vector.broadcast %52 : vector<16x1xf32> to vector<16x128xf32>
    %66 = arith.mulf %9, %65 : vector<16x128xf32>
    %67 = vector.broadcast %55 : vector<16x1xf32> to vector<16x128xf32>
    %68 = arith.addf %66, %67 : vector<16x128xf32>
    %cst_36 = arith.constant 0.000000e+00 : f32
    %69 = vector.broadcast %cst_36 : f32 to vector<16x128xf32>
    %70 = arith.maximumf %68, %69 : vector<16x128xf32>
    %c1_37 = arith.constant 1 : index
    %c0_38 = arith.constant 0 : index
    %c0_39 = arith.constant 0 : index
    %71 = vector.load %arg4[%c1_37, %c0_38, %c0_39] : memref<4x16x128xf32, #tpu.memory_space<vmem>>, vector<1x16x128xf32>
    %72 = vector.shape_cast %71 : vector<1x16x128xf32> to vector<16x128xf32>
    %73 = vector.shape_cast %70 : vector<16x128xf32> to vector<1x16x128xf32>
    tpu.vector_store %arg4[%c1_37, %c0_38, %c0_39], %73 {strides = array<i32>} : memref<4x16x128xf32, #tpu.memory_space<vmem>>, vector<1x16x128xf32>,
    %74 = vector.broadcast %52 : vector<16x1xf32> to vector<16x128xf32>
    %75 = arith.mulf %14, %74 : vector<16x128xf32>
    %76 = vector.broadcast %55 : vector<16x1xf32> to vector<16x128xf32>
    %77 = arith.addf %75, %76 : vector<16x128xf32>
    %cst_40 = arith.constant 0.000000e+00 : f32
    %78 = vector.broadcast %cst_40 : f32 to vector<16x128xf32>
    %79 = arith.maximumf %77, %78 : vector<16x128xf32>
    %c2_41 = arith.constant 2 : index
    %c0_42 = arith.constant 0 : index
    %c0_43 = arith.constant 0 : index
    %80 = vector.load %arg4[%c2_41, %c0_42, %c0_43] : memref<4x16x128xf32, #tpu.memory_space<vmem>>, vector<1x16x128xf32>
    %81 = vector.shape_cast %80 : vector<1x16x128xf32> to vector<16x128xf32>
    %82 = vector.shape_cast %79 : vector<16x128xf32> to vector<1x16x128xf32>
    tpu.vector_store %arg4[%c2_41, %c0_42, %c0_43], %82 {strides = array<i32>} : memref<4x16x128xf32, #tpu.memory_space<vmem>>, vector<1x16x128xf32>,
    %83 = vector.broadcast %52 : vector<16x1xf32> to vector<16x128xf32>
    %84 = arith.mulf %19, %83 : vector<16x128xf32>
    %85 = vector.broadcast %55 : vector<16x1xf32> to vector<16x128xf32>
    %86 = arith.addf %84, %85 : vector<16x128xf32>
    %cst_44 = arith.constant 0.000000e+00 : f32
    %87 = vector.broadcast %cst_44 : f32 to vector<16x128xf32>
    %88 = arith.maximumf %86, %87 : vector<16x128xf32>
    %c3_45 = arith.constant 3 : index
    %c0_46 = arith.constant 0 : index
    %c0_47 = arith.constant 0 : index
    %89 = vector.load %arg4[%c3_45, %c0_46, %c0_47] : memref<4x16x128xf32, #tpu.memory_space<vmem>>, vector<1x16x128xf32>
    %90 = vector.shape_cast %89 : vector<1x16x128xf32> to vector<16x128xf32>
    %91 = vector.shape_cast %88 : vector<16x128xf32> to vector<1x16x128xf32>
    tpu.vector_store %arg4[%c3_45, %c0_46, %c0_47], %91 {strides = array<i32>} : memref<4x16x128xf32, #tpu.memory_space<vmem>>, vector<1x16x128xf32>,
    return
  }
}

module attributes {stable_mosaic.version = 11 : i64} {
  func.func @phase_matmul_bn_relu_kernel(%arg0: memref<4x64x512xbf16, #tpu.memory_space<vmem>>, %arg1: memref<4x8x64xbf16, #tpu.memory_space<vmem>>, %arg2: memref<8x1xf32, #tpu.memory_space<vmem>>, %arg3: memref<8x1xf32, #tpu.memory_space<vmem>>, %arg4: memref<4x8x512xf32, #tpu.memory_space<vmem>>) attributes {dimension_semantics = [], scalar_prefetch = 0 : i64, scratch_operands = 0 : i64, tpu.core_type = #tpu.core_type<tc>} {
    %c0 = arith.constant 0 : index
    %c0_0 = arith.constant 0 : index
    %c0_1 = arith.constant 0 : index
    %0 = vector.load %arg1[%c0, %c0_0, %c0_1] : memref<4x8x64xbf16, #tpu.memory_space<vmem>>, vector<1x8x64xbf16>
    %1 = vector.shape_cast %0 : vector<1x8x64xbf16> to vector<8x64xbf16>
    %c0_2 = arith.constant 0 : index
    %c0_3 = arith.constant 0 : index
    %c0_4 = arith.constant 0 : index
    %2 = vector.load %arg0[%c0_2, %c0_3, %c0_4] : memref<4x64x512xbf16, #tpu.memory_space<vmem>>, vector<1x64x512xbf16>
    %3 = vector.shape_cast %2 : vector<1x64x512xbf16> to vector<64x512xbf16>
    %cst = arith.constant dense<0.000000e+00> : vector<8x512xf32>
    %4 = tpu.matmul %1, %3, %cst {dimension_numbers = #tpu.dot_dimension_numbers<[1], [0], [0], [1], [0, 0, 1, 1], [], []>} : vector<8x64xbf16>, vector<64x512xbf16>, vector<8x512xf32> -> vector<8x512xf32>
    %c1 = arith.constant 1 : index
    %c0_5 = arith.constant 0 : index
    %c0_6 = arith.constant 0 : index
    %5 = vector.load %arg1[%c1, %c0_5, %c0_6] : memref<4x8x64xbf16, #tpu.memory_space<vmem>>, vector<1x8x64xbf16>
    %6 = vector.shape_cast %5 : vector<1x8x64xbf16> to vector<8x64xbf16>
    %c1_7 = arith.constant 1 : index
    %c0_8 = arith.constant 0 : index
    %c0_9 = arith.constant 0 : index
    %7 = vector.load %arg0[%c1_7, %c0_8, %c0_9] : memref<4x64x512xbf16, #tpu.memory_space<vmem>>, vector<1x64x512xbf16>
    %8 = vector.shape_cast %7 : vector<1x64x512xbf16> to vector<64x512xbf16>
    %cst_10 = arith.constant dense<0.000000e+00> : vector<8x512xf32>
    %9 = tpu.matmul %6, %8, %cst_10 {dimension_numbers = #tpu.dot_dimension_numbers<[1], [0], [0], [1], [0, 0, 1, 1], [], []>} : vector<8x64xbf16>, vector<64x512xbf16>, vector<8x512xf32> -> vector<8x512xf32>
    %c2 = arith.constant 2 : index
    %c0_11 = arith.constant 0 : index
    %c0_12 = arith.constant 0 : index
    %10 = vector.load %arg1[%c2, %c0_11, %c0_12] : memref<4x8x64xbf16, #tpu.memory_space<vmem>>, vector<1x8x64xbf16>
    %11 = vector.shape_cast %10 : vector<1x8x64xbf16> to vector<8x64xbf16>
    %c2_13 = arith.constant 2 : index
    %c0_14 = arith.constant 0 : index
    %c0_15 = arith.constant 0 : index
    %12 = vector.load %arg0[%c2_13, %c0_14, %c0_15] : memref<4x64x512xbf16, #tpu.memory_space<vmem>>, vector<1x64x512xbf16>
    %13 = vector.shape_cast %12 : vector<1x64x512xbf16> to vector<64x512xbf16>
    %cst_16 = arith.constant dense<0.000000e+00> : vector<8x512xf32>
    %14 = tpu.matmul %11, %13, %cst_16 {dimension_numbers = #tpu.dot_dimension_numbers<[1], [0], [0], [1], [0, 0, 1, 1], [], []>} : vector<8x64xbf16>, vector<64x512xbf16>, vector<8x512xf32> -> vector<8x512xf32>
    %c3 = arith.constant 3 : index
    %c0_17 = arith.constant 0 : index
    %c0_18 = arith.constant 0 : index
    %15 = vector.load %arg1[%c3, %c0_17, %c0_18] : memref<4x8x64xbf16, #tpu.memory_space<vmem>>, vector<1x8x64xbf16>
    %16 = vector.shape_cast %15 : vector<1x8x64xbf16> to vector<8x64xbf16>
    %c3_19 = arith.constant 3 : index
    %c0_20 = arith.constant 0 : index
    %c0_21 = arith.constant 0 : index
    %17 = vector.load %arg0[%c3_19, %c0_20, %c0_21] : memref<4x64x512xbf16, #tpu.memory_space<vmem>>, vector<1x64x512xbf16>
    %18 = vector.shape_cast %17 : vector<1x64x512xbf16> to vector<64x512xbf16>
    %cst_22 = arith.constant dense<0.000000e+00> : vector<8x512xf32>
    %19 = tpu.matmul %16, %18, %cst_22 {dimension_numbers = #tpu.dot_dimension_numbers<[1], [0], [0], [1], [0, 0, 1, 1], [], []>} : vector<8x64xbf16>, vector<64x512xbf16>, vector<8x512xf32> -> vector<8x512xf32>
    %20 = arith.addf %4, %9 : vector<8x512xf32>
    %21 = arith.addf %20, %14 : vector<8x512xf32>
    %22 = arith.addf %21, %19 : vector<8x512xf32>
    %cst_23 = arith.constant dense<0.000000e+00> : vector<8xf32>
    %23 = vector.multi_reduction <add>, %22, %cst_23 [1] : vector<8x512xf32> to vector<8xf32>
    %24 = vector.shape_cast %23 : vector<8xf32> to vector<8x1xf32>
    %cst_24 = arith.constant 4.8828125E-4 : f32
    %25 = vector.broadcast %cst_24 : f32 to vector<8x1xf32>
    %26 = arith.mulf %24, %25 : vector<8x1xf32>
    %27 = vector.broadcast %26 : vector<8x1xf32> to vector<8x512xf32>
    %28 = arith.subf %4, %27 : vector<8x512xf32>
    %29 = vector.broadcast %26 : vector<8x1xf32> to vector<8x512xf32>
    %30 = arith.subf %4, %29 : vector<8x512xf32>
    %31 = arith.mulf %28, %30 : vector<8x512xf32>
    %32 = vector.broadcast %26 : vector<8x1xf32> to vector<8x512xf32>
    %33 = arith.subf %9, %32 : vector<8x512xf32>
    %34 = arith.mulf %33, %33 : vector<8x512xf32>
    %35 = arith.addf %31, %34 : vector<8x512xf32>
    %36 = vector.broadcast %26 : vector<8x1xf32> to vector<8x512xf32>
    %37 = arith.subf %14, %36 : vector<8x512xf32>
    %38 = arith.mulf %37, %37 : vector<8x512xf32>
    %39 = arith.addf %35, %38 : vector<8x512xf32>
    %40 = vector.broadcast %26 : vector<8x1xf32> to vector<8x512xf32>
    %41 = arith.subf %19, %40 : vector<8x512xf32>
    %42 = arith.mulf %41, %41 : vector<8x512xf32>
    %43 = arith.addf %39, %42 : vector<8x512xf32>
    %cst_25 = arith.constant dense<0.000000e+00> : vector<8xf32>
    %44 = vector.multi_reduction <add>, %43, %cst_25 [1] : vector<8x512xf32> to vector<8xf32>
    %45 = vector.shape_cast %44 : vector<8xf32> to vector<8x1xf32>
    %cst_26 = arith.constant 4.8828125E-4 : f32
    %46 = vector.broadcast %cst_26 : f32 to vector<8x1xf32>
    %47 = arith.mulf %45, %46 : vector<8x1xf32>
    %cst_27 = arith.constant 9.99999974E-6 : f32
    %48 = vector.broadcast %cst_27 : f32 to vector<8x1xf32>
    %49 = arith.addf %47, %48 : vector<8x1xf32>
    %50 = math.rsqrt %49 : vector<8x1xf32>
    %c0_28 = arith.constant 0 : index
    %c0_29 = arith.constant 0 : index
    %51 = vector.load %arg2[%c0_28, %c0_29] : memref<8x1xf32, #tpu.memory_space<vmem>>, vector<8x1xf32>
    %52 = arith.mulf %50, %51 : vector<8x1xf32>
    %c0_30 = arith.constant 0 : index
    %c0_31 = arith.constant 0 : index
    %53 = vector.load %arg3[%c0_30, %c0_31] : memref<8x1xf32, #tpu.memory_space<vmem>>, vector<8x1xf32>
    %54 = arith.mulf %26, %52 : vector<8x1xf32>
    %55 = arith.subf %53, %54 : vector<8x1xf32>
    %56 = vector.broadcast %52 : vector<8x1xf32> to vector<8x512xf32>
    %57 = arith.mulf %4, %56 : vector<8x512xf32>
    %58 = vector.broadcast %55 : vector<8x1xf32> to vector<8x512xf32>
    %59 = arith.addf %57, %58 : vector<8x512xf32>
    %cst_32 = arith.constant 0.000000e+00 : f32
    %60 = vector.broadcast %cst_32 : f32 to vector<8x512xf32>
    %61 = arith.maximumf %59, %60 : vector<8x512xf32>
    %c0_33 = arith.constant 0 : index
    %c0_34 = arith.constant 0 : index
    %c0_35 = arith.constant 0 : index
    %62 = vector.load %arg4[%c0_33, %c0_34, %c0_35] : memref<4x8x512xf32, #tpu.memory_space<vmem>>, vector<1x8x512xf32>
    %63 = vector.shape_cast %62 : vector<1x8x512xf32> to vector<8x512xf32>
    %64 = vector.shape_cast %61 : vector<8x512xf32> to vector<1x8x512xf32>
    tpu.vector_store %arg4[%c0_33, %c0_34, %c0_35], %64 {strides = array<i32>} : memref<4x8x512xf32, #tpu.memory_space<vmem>>, vector<1x8x512xf32>,
    %65 = vector.broadcast %52 : vector<8x1xf32> to vector<8x512xf32>
    %66 = arith.mulf %9, %65 : vector<8x512xf32>
    %67 = vector.broadcast %55 : vector<8x1xf32> to vector<8x512xf32>
    %68 = arith.addf %66, %67 : vector<8x512xf32>
    %cst_36 = arith.constant 0.000000e+00 : f32
    %69 = vector.broadcast %cst_36 : f32 to vector<8x512xf32>
    %70 = arith.maximumf %68, %69 : vector<8x512xf32>
    %c1_37 = arith.constant 1 : index
    %c0_38 = arith.constant 0 : index
    %c0_39 = arith.constant 0 : index
    %71 = vector.load %arg4[%c1_37, %c0_38, %c0_39] : memref<4x8x512xf32, #tpu.memory_space<vmem>>, vector<1x8x512xf32>
    %72 = vector.shape_cast %71 : vector<1x8x512xf32> to vector<8x512xf32>
    %73 = vector.shape_cast %70 : vector<8x512xf32> to vector<1x8x512xf32>
    tpu.vector_store %arg4[%c1_37, %c0_38, %c0_39], %73 {strides = array<i32>} : memref<4x8x512xf32, #tpu.memory_space<vmem>>, vector<1x8x512xf32>,
    %74 = vector.broadcast %52 : vector<8x1xf32> to vector<8x512xf32>
    %75 = arith.mulf %14, %74 : vector<8x512xf32>
    %76 = vector.broadcast %55 : vector<8x1xf32> to vector<8x512xf32>
    %77 = arith.addf %75, %76 : vector<8x512xf32>
    %cst_40 = arith.constant 0.000000e+00 : f32
    %78 = vector.broadcast %cst_40 : f32 to vector<8x512xf32>
    %79 = arith.maximumf %77, %78 : vector<8x512xf32>
    %c2_41 = arith.constant 2 : index
    %c0_42 = arith.constant 0 : index
    %c0_43 = arith.constant 0 : index
    %80 = vector.load %arg4[%c2_41, %c0_42, %c0_43] : memref<4x8x512xf32, #tpu.memory_space<vmem>>, vector<1x8x512xf32>
    %81 = vector.shape_cast %80 : vector<1x8x512xf32> to vector<8x512xf32>
    %82 = vector.shape_cast %79 : vector<8x512xf32> to vector<1x8x512xf32>
    tpu.vector_store %arg4[%c2_41, %c0_42, %c0_43], %82 {strides = array<i32>} : memref<4x8x512xf32, #tpu.memory_space<vmem>>, vector<1x8x512xf32>,
    %83 = vector.broadcast %52 : vector<8x1xf32> to vector<8x512xf32>
    %84 = arith.mulf %19, %83 : vector<8x512xf32>
    %85 = vector.broadcast %55 : vector<8x1xf32> to vector<8x512xf32>
    %86 = arith.addf %84, %85 : vector<8x512xf32>
    %cst_44 = arith.constant 0.000000e+00 : f32
    %87 = vector.broadcast %cst_44 : f32 to vector<8x512xf32>
    %88 = arith.maximumf %86, %87 : vector<8x512xf32>
    %c3_45 = arith.constant 3 : index
    %c0_46 = arith.constant 0 : index
    %c0_47 = arith.constant 0 : index
    %89 = vector.load %arg4[%c3_45, %c0_46, %c0_47] : memref<4x8x512xf32, #tpu.memory_space<vmem>>, vector<1x8x512xf32>
    %90 = vector.shape_cast %89 : vector<1x8x512xf32> to vector<8x512xf32>
    %91 = vector.shape_cast %88 : vector<8x512xf32> to vector<1x8x512xf32>
    tpu.vector_store %arg4[%c3_45, %c0_46, %c0_47], %91 {strides = array<i32>} : memref<4x8x512xf32, #tpu.memory_space<vmem>>, vector<1x8x512xf32>,
    return
  }
}

module attributes {stable_mosaic.version = 11 : i64} {
  func.func @phase_matmul_tanh_kernel(%arg0: i32, %arg1: memref<4x32x1024xbf16, #tpu.memory_space<vmem>>, %arg2: memref<4x4x32xbf16, #tpu.memory_space<vmem>>, %arg3: memref<4x4x1024xf32, #tpu.memory_space<vmem>>) attributes {dimension_semantics = [#tpu.dimension_semantics<parallel>], iteration_bounds = array<i64: 2>, scalar_prefetch = 0 : i64, scratch_operands = 0 : i64, tpu.core_type = #tpu.core_type<tc>, window_params = [{transform_indices = @transform_0, window_bounds = array<i64: 4, 32, 1024>}, {pipeline_mode = #tpu.pipeline_mode<synchronous>, transform_indices = @transform_1, window_bounds = array<i64: 4, 4, 32>}, {transform_indices = @transform_2, window_bounds = array<i64: 4, 4, 1024>}]} {
    %c0 = arith.constant 0 : index
    %c0_0 = arith.constant 0 : index
    %c0_1 = arith.constant 0 : index
    %0 = vector.load %arg2[%c0, %c0_0, %c0_1] : memref<4x4x32xbf16, #tpu.memory_space<vmem>>, vector<1x4x32xbf16>
    %1 = vector.shape_cast %0 : vector<1x4x32xbf16> to vector<4x32xbf16>
    %c0_2 = arith.constant 0 : index
    %c0_3 = arith.constant 0 : index
    %c0_4 = arith.constant 0 : index
    %2 = vector.load %arg1[%c0_2, %c0_3, %c0_4] : memref<4x32x1024xbf16, #tpu.memory_space<vmem>>, vector<1x32x1024xbf16>
    %3 = vector.shape_cast %2 : vector<1x32x1024xbf16> to vector<32x1024xbf16>
    %cst = arith.constant dense<0.000000e+00> : vector<4x1024xf32>
    %4 = tpu.matmul %1, %3, %cst {dimension_numbers = #tpu.dot_dimension_numbers<[1], [0], [0], [1], [0, 0, 1, 1], [], []>} : vector<4x32xbf16>, vector<32x1024xbf16>, vector<4x1024xf32> -> vector<4x1024xf32>
    %5 = math.tanh %4 : vector<4x1024xf32>
    %c0_5 = arith.constant 0 : index
    %c0_6 = arith.constant 0 : index
    %c0_7 = arith.constant 0 : index
    %6 = vector.load %arg3[%c0_5, %c0_6, %c0_7] : memref<4x4x1024xf32, #tpu.memory_space<vmem>>, vector<1x4x1024xf32>
    %7 = vector.shape_cast %6 : vector<1x4x1024xf32> to vector<4x1024xf32>
    %8 = vector.shape_cast %5 : vector<4x1024xf32> to vector<1x4x1024xf32>
    tpu.vector_store %arg3[%c0_5, %c0_6, %c0_7], %8 {strides = array<i32>} : memref<4x4x1024xf32, #tpu.memory_space<vmem>>, vector<1x4x1024xf32>,
    %c1 = arith.constant 1 : index
    %c0_8 = arith.constant 0 : index
    %c0_9 = arith.constant 0 : index
    %9 = vector.load %arg2[%c1, %c0_8, %c0_9] : memref<4x4x32xbf16, #tpu.memory_space<vmem>>, vector<1x4x32xbf16>
    %10 = vector.shape_cast %9 : vector<1x4x32xbf16> to vector<4x32xbf16>
    %c1_10 = arith.constant 1 : index
    %c0_11 = arith.constant 0 : index
    %c0_12 = arith.constant 0 : index
    %11 = vector.load %arg1[%c1_10, %c0_11, %c0_12] : memref<4x32x1024xbf16, #tpu.memory_space<vmem>>, vector<1x32x1024xbf16>
    %12 = vector.shape_cast %11 : vector<1x32x1024xbf16> to vector<32x1024xbf16>
    %cst_13 = arith.constant dense<0.000000e+00> : vector<4x1024xf32>
    %13 = tpu.matmul %10, %12, %cst_13 {dimension_numbers = #tpu.dot_dimension_numbers<[1], [0], [0], [1], [0, 0, 1, 1], [], []>} : vector<4x32xbf16>, vector<32x1024xbf16>, vector<4x1024xf32> -> vector<4x1024xf32>
    %14 = math.tanh %13 : vector<4x1024xf32>
    %c1_14 = arith.constant 1 : index
    %c0_15 = arith.constant 0 : index
    %c0_16 = arith.constant 0 : index
    %15 = vector.load %arg3[%c1_14, %c0_15, %c0_16] : memref<4x4x1024xf32, #tpu.memory_space<vmem>>, vector<1x4x1024xf32>
    %16 = vector.shape_cast %15 : vector<1x4x1024xf32> to vector<4x1024xf32>
    %17 = vector.shape_cast %14 : vector<4x1024xf32> to vector<1x4x1024xf32>
    tpu.vector_store %arg3[%c1_14, %c0_15, %c0_16], %17 {strides = array<i32>} : memref<4x4x1024xf32, #tpu.memory_space<vmem>>, vector<1x4x1024xf32>,
    %c2 = arith.constant 2 : index
    %c0_17 = arith.constant 0 : index
    %c0_18 = arith.constant 0 : index
    %18 = vector.load %arg2[%c2, %c0_17, %c0_18] : memref<4x4x32xbf16, #tpu.memory_space<vmem>>, vector<1x4x32xbf16>
    %19 = vector.shape_cast %18 : vector<1x4x32xbf16> to vector<4x32xbf16>
    %c2_19 = arith.constant 2 : index
    %c0_20 = arith.constant 0 : index
    %c0_21 = arith.constant 0 : index
    %20 = vector.load %arg1[%c2_19, %c0_20, %c0_21] : memref<4x32x1024xbf16, #tpu.memory_space<vmem>>, vector<1x32x1024xbf16>
    %21 = vector.shape_cast %20 : vector<1x32x1024xbf16> to vector<32x1024xbf16>
    %cst_22 = arith.constant dense<0.000000e+00> : vector<4x1024xf32>
    %22 = tpu.matmul %19, %21, %cst_22 {dimension_numbers = #tpu.dot_dimension_numbers<[1], [0], [0], [1], [0, 0, 1, 1], [], []>} : vector<4x32xbf16>, vector<32x1024xbf16>, vector<4x1024xf32> -> vector<4x1024xf32>
    %23 = math.tanh %22 : vector<4x1024xf32>
    %c2_23 = arith.constant 2 : index
    %c0_24 = arith.constant 0 : index
    %c0_25 = arith.constant 0 : index
    %24 = vector.load %arg3[%c2_23, %c0_24, %c0_25] : memref<4x4x1024xf32, #tpu.memory_space<vmem>>, vector<1x4x1024xf32>
    %25 = vector.shape_cast %24 : vector<1x4x1024xf32> to vector<4x1024xf32>
    %26 = vector.shape_cast %23 : vector<4x1024xf32> to vector<1x4x1024xf32>
    tpu.vector_store %arg3[%c2_23, %c0_24, %c0_25], %26 {strides = array<i32>} : memref<4x4x1024xf32, #tpu.memory_space<vmem>>, vector<1x4x1024xf32>,
    %c3 = arith.constant 3 : index
    %c0_26 = arith.constant 0 : index
    %c0_27 = arith.constant 0 : index
    %27 = vector.load %arg2[%c3, %c0_26, %c0_27] : memref<4x4x32xbf16, #tpu.memory_space<vmem>>, vector<1x4x32xbf16>
    %28 = vector.shape_cast %27 : vector<1x4x32xbf16> to vector<4x32xbf16>
    %c3_28 = arith.constant 3 : index
    %c0_29 = arith.constant 0 : index
    %c0_30 = arith.constant 0 : index
    %29 = vector.load %arg1[%c3_28, %c0_29, %c0_30] : memref<4x32x1024xbf16, #tpu.memory_space<vmem>>, vector<1x32x1024xbf16>
    %30 = vector.shape_cast %29 : vector<1x32x1024xbf16> to vector<32x1024xbf16>
    %cst_31 = arith.constant dense<0.000000e+00> : vector<4x1024xf32>
    %31 = tpu.matmul %28, %30, %cst_31 {dimension_numbers = #tpu.dot_dimension_numbers<[1], [0], [0], [1], [0, 0, 1, 1], [], []>} : vector<4x32xbf16>, vector<32x1024xbf16>, vector<4x1024xf32> -> vector<4x1024xf32>
    %32 = math.tanh %31 : vector<4x1024xf32>
    %c3_32 = arith.constant 3 : index
    %c0_33 = arith.constant 0 : index
    %c0_34 = arith.constant 0 : index
    %33 = vector.load %arg3[%c3_32, %c0_33, %c0_34] : memref<4x4x1024xf32, #tpu.memory_space<vmem>>, vector<1x4x1024xf32>
    %34 = vector.shape_cast %33 : vector<1x4x1024xf32> to vector<4x1024xf32>
    %35 = vector.shape_cast %32 : vector<4x1024xf32> to vector<1x4x1024xf32>
    tpu.vector_store %arg3[%c3_32, %c0_33, %c0_34], %35 {strides = array<i32>} : memref<4x4x1024xf32, #tpu.memory_space<vmem>>, vector<1x4x1024xf32>,
    return
  }
  func.func @transform_0(%arg0: i32) -> (i32, i32, i32) {
    %c0_i32 = arith.constant 0 : i32
    %c0_i32_0 = arith.constant 0 : i32
    %c0_i32_1 = arith.constant 0 : i32
    return %c0_i32, %c0_i32_0, %arg0 : i32, i32, i32
  }
  func.func @transform_1(%arg0: i32) -> (i32, i32, i32) {
    %c0_i32 = arith.constant 0 : i32
    %c0_i32_0 = arith.constant 0 : i32
    %c0_i32_1 = arith.constant 0 : i32
    %c0_i32_2 = arith.constant 0 : i32
    return %c0_i32, %c0_i32_0, %c0_i32_1 : i32, i32, i32
  }
  func.func @transform_2(%arg0: i32) -> (i32, i32, i32) {
    %c0_i32 = arith.constant 0 : i32
    %c0_i32_0 = arith.constant 0 : i32
    %c0_i32_1 = arith.constant 0 : i32
    return %c0_i32, %c0_i32_0, %arg0 : i32, i32, i32
  }
}

</mosaic_0001>

<bundles_post_ra>
// kernel: generator_forward.5
= control target key start
LH: loop header
LB: loop body
LE: loop exit
PB: predicated region body
PF: predicated region fallthrough
CT: control target
= control target key end

     0   :  { %9 = vsyncpa [#allocation3], 0  ;;  %s783_s0 = inlined_call_operand.vmem [shape: bf16[2,16], index: 0, kind: input, shape index: {}]   ;;  %s784_s1 = inlined_call_operand.hbm [shape: bf16[16,1024], index: 1, kind: input, shape index: {}]   ;;  %s785_s2 = inlined_call_operand.hbm [shape: f32[1,64], index: 2, kind: input, shape index: {}]   ;;  %s786_s3 = inlined_call_operand.hbm [shape: f32[1,64], index: 3, kind: input, shape index: {}]   ;;  %s787_s4 = inlined_call_operand.vmem [shape: f32[2,1024], index: 4, kind: output, shape index: {}]  }
   0x1   :  { %10 = vsyncpa [#allocation5], 0  ;;  %s604_s15 = smov [#allocation4]   ;;  %s605_s17 = smov [#allocation2]  }
   0x2   :  { %s31_s16 = sshll.u32 %s604_s15, 4  ;;  %s18_s18 = sshll.u32 %s605_s17, 4  ;;  %s32_s16 = int_to_ptr.vmem [resolvable:$true] %s31_s16  ;;  %s637_s18 = int_to_ptr.vmem [resolvable:$true] %s18_s18 }
   0x3   :  { %s534_s21 = scalar_lea.hbm %s785_s2, 16 }
   0x4   :  { %p535_p0 = scmp.ne.s32.totalorder %s785_s2, %s534_s21  ;;  %p538_p1 = scmp.lt.u32.totalorder %s534_s21, %s785_s2 }
   0x6   :  { %p540_p2 = pnand %p538_p1, %p535_p0 }
   0x8   :  { %543 = shalt.err (!%p540_p2)
}
   0x9   :  { %s544_s26 = scalar_lea.vmem %s32_s16, 16  ;;  %s548_s27 = scalar_lea.vmem %s32_s16, 32 }
   0xa   :  { %p545_p3 = scmp.ne.s32.totalorder %s32_s16, %s544_s26  ;;  %p549_p4 = scmp.lt.s32.totalorder %s32_s16, %s32_s16 }
   0xb   :  { %p550_p5 = scmp.lt.s32.totalorder %s548_s27, %s544_s26 }
   0xd   :  { %p551_p6 = por %p550_p5, %p549_p4 }
   0xf   :  { %p552_p7 = pnand %p551_p6, %p545_p3 }
  0x11   :  { %555 = shalt.err (!%p552_p7)
}
  0x12   :  { %34 = dma.hbm_to_vmem [thread:$0]  %s785_s2, 16, %s32_s16, [#allocation5]  }
  0x13   :  { %s556_s6 = scalar_lea.hbm %s784_s1, 1024 }
  0x14   :  { %p557_p8 = scmp.ne.s32.totalorder %s784_s1, %s556_s6  ;;  %p560_p9 = scmp.lt.u32.totalorder %s556_s6, %s784_s1 }
  0x16   :  { %p562_p10 = pnand %p560_p9, %p557_p8 }
  0x18   :  { %565 = shalt.err (!%p562_p10)
}
  0x19   :  { %s566_s11 = scalar_lea.vmem %s637_s18, 1024  ;;  %p571_p12 = scmp.lt.s32.totalorder %s637_s18, %s637_s18 }
  0x1a   :  { %p567_p11 = scmp.ne.s32.totalorder %s637_s18, %s566_s11  ;;  %p572_p13 = scmp.lt.s32.totalorder %s566_s11, %s566_s11 }
  0x1c   :  { %p573_p0 = por %p572_p13, %p571_p12 }
  0x1e   :  { %p574_p1 = pnand %p573_p0, %p567_p11 }
  0x20   :  { %577 = shalt.err (!%p574_p1)
}
  0x21   :  { %s606_s2 = smov 512   ;;  %s607_s12 = smov 32  }
  0x22   :  { %24 = dma.hbm_to_vmem [thread:$0]  %s784_s1, 1024, %s637_s18, [#allocation3], %s606_s2, %s606_s2, %s607_s12  }
  0x23   :  { %s608_s15 = smov [#allocation6]   ;;  %s578_s20 = scalar_lea.hbm %s786_s3, 16 }
  0x24   :  { %s41_s16 = sshll.u32 %s608_s15, 4  ;;  %p579_p2 = scmp.ne.s32.totalorder %s786_s3, %s578_s20  ;;  %s42_s16 = int_to_ptr.vmem [resolvable:$true] %s41_s16 }
  0x25   :  { %p582_p3 = scmp.lt.u32.totalorder %s578_s20, %s786_s3 }
  0x27   :  { %p584_p4 = pnand %p582_p3, %p579_p2 }
  0x29   :  { %587 = shalt.err (!%p584_p4)
}
  0x2a   :  { %s588_s25 = scalar_lea.vmem %s42_s16, 16  ;;  %s592_s1 = scalar_lea.vmem %s42_s16, 32 }
  0x2b   :  { %p589_p5 = scmp.ne.s32.totalorder %s42_s16, %s588_s25  ;;  %p593_p6 = scmp.lt.s32.totalorder %s42_s16, %s42_s16 }
  0x2c   :  { %p594_p7 = scmp.lt.s32.totalorder %s592_s1, %s588_s25 }
  0x2e   :  { %p595_p8 = por %p594_p7, %p593_p6 }
  0x30   :  { %p596_p9 = pnand %p595_p8, %p589_p5 }
  0x32   :  { %599 = shalt.err (!%p596_p9)
}
  0x33   :  { %44 = dma.hbm_to_vmem [thread:$0]  %s786_s3, 16, %s42_s16, [#allocation5]  }
  0x34   :  { %600 = dma.done.wait [#allocation3], 1024  }
  0x35   :  { %601 = vsyncadd [#allocation3], 4294966272 }
  0x36   :  { %602 = dma.done.wait [#allocation5], 32  }
  0x37   :  { %603 = vsyncadd [#allocation5], 4294967264  ;;  %v609_v0 = vmov 0   ;;  %v56_v1 = vld [vmem:[#allocation2] sm:$0xff]  ;;  %v57_v5 = vld [vmem:[#allocation2 + $0x8] sm:$0xff]  ;;  %vm104_vm0 = vcmask 130048  }
  0x38   :  { %140 = vmatprep.mubr.bf16.mxu0 %v609_v0  ;;  %181 = vmatprep.mubr.bf16.mxu1 %v609_v0  ;;  %v60_v2 = vld [vmem:[#allocation2 + $0x20] sm:$0xff]  ;;  %v61_v6 = vld [vmem:[#allocation2 + $0x28] sm:$0xff]  ;;  %v58_v7 = vld [vmem:[#allocation2 + $0x10] sm:$0xff]  ;;  %s610_s28 = smov 64   ;;  %vm319_vm1 = vcmask 517120   ;;  %vm332_vm2 = vcmask 523264  }
  0x39   :  { %v513_v3 = vcombine.high %v56_v1, %v60_v2  ;;  %v512_v4 = vcombine.low %v56_v1, %v60_v2  ;;  %v515_v8 = vcombine.high %v57_v5, %v61_v6  ;;  %v514_v9 = vcombine.low %v57_v5, %v61_v6  ;;  %v62_v10 = vld [vmem:[#allocation2 + $0x30] sm:$0xff]  ;;  %v59_v11 = vld [vmem:[#allocation2 + $0x18] sm:$0xff] }
  0x3a   :  { %v63_v12 = vld [vmem:[#allocation2 + $0x38] sm:$0xff]  ;;  %v517_v13 = vcombine.high %v58_v7, %v62_v10  ;;  %v55_v15 = vld [vmem:[%s783_s0] sm:$0x1]  ;;  %v516_v16 = vcombine.low %v58_v7, %v62_v10  ;;  %v334_v1 = vlaneseq }
  0x3b   :  { %108 = vmatprep.subr.bf16.mxu0 %v513_v3  ;;  %v519_v14 = vcombine.high %v59_v11, %v63_v12  ;;  %149 = vmatprep.subr.bf16.mxu1 %v515_v8  ;;  %v518_v17 = vcombine.low %v59_v11, %v63_v12 }
  0x3c   :  { %109 = vmatpush1.bf16.msra.mxu0 %v512_v4  ;;  %150 = vmatpush1.bf16.msra.mxu1 %v514_v9  ;;  %v709_v2 = vshrl.u32 %v334_v1, 7 }
  0x3d   :  { %190 = vmatprep.subr.bf16.mxu0 %v517_v13  ;;  %231 = vmatprep.subr.bf16.mxu1 %v519_v14 }
  0x3e   :  { %v712_v3 = vsub.s32 0, %v709_v2 }
  0x3f   :  { %520 = vmatmul.mubr.msk.bf16.vlgmr.msra.gmra.mrb[0].mxu0 %vm104_vm0, %v55_v15  ;;  %521 = vmatmul.mubr.msk.bf16.vlgmr.msra.gmra.mrb[0].mxu1 %vm104_vm0, %v55_v15 }
  0x40   :  { %191 = vmatpush1.bf16.msra.mxu0 %v516_v16  ;;  %222 = vmatprep.mubr.bf16.mxu0 %v609_v0 }
  0x41   :  { %232 = vmatpush1.bf16.msra.mxu1 %v518_v17  ;;  %263 = vmatprep.mubr.bf16.mxu1 %v609_v0 }
  0x47   :  { %522 = vmatmul.mubr.msk.bf16.vlgmr.msra.gmra.mrb[4].mxu0 %vm104_vm0, %v55_v15  ;;  %523 = vmatmul.mubr.msk.bf16.vlgmr.msra.gmra.mrb[4].mxu1 %vm104_vm0, %v55_v15 }
 0x112   :  { %v683_v18 = vpop.f32.mrb[0].mxu0  ;;  %v687_v20 = vpop.f32.mrb[0].mxu1 }
 0x113   :  { %273 = vrot.lane.b32.xlu0 %v683_v18, %s610_s28  ;;  %v144_v19 = vpop.f32.mrb[1].mxu0  ;;  %285 = vrot.lane.b32.xlu1 %v687_v20, %s610_s28  ;;  %v185_v22 = vpop.f32.mrb[1].mxu1 }
 0x114   :  { %v146_v21 = vpop.f32.mrb[2].mxu0  ;;  %v187_v24 = vpop.f32.mrb[2].mxu1 }
 0x115   :  { %v147_v23 = vpop.f32.mrb[3].mxu0  ;;  %v188_v25 = vpop.f32.mrb[3].mxu1 }
 0x116   :  { %v418_v23 = vld [vmem:[#allocation6] sm:$0x1] }
 0x117   :  { %279 = vrot.lane.b32.xlu0 %v144_v19, %s610_s28  ;;  %291 = vrot.lane.b32.xlu1 %v185_v22, %s610_s28  ;;  %v423_v24 = vrot.slane %v418_v23, %v712_v3 }
 0x11a   :  { %v693_v26 = vpop.f32.mrb[4].mxu0  ;;  %v697_v28 = vpop.f32.mrb[4].mxu1 }
 0x11b   :  { %v226_v27 = vpop.f32.mrb[5].mxu0  ;;  %297 = vrot.lane.b32.xlu0 %v693_v26, %s610_s28  ;;  %v267_v30 = vpop.f32.mrb[5].mxu1 }
 0x11c   :  { %v228_v29 = vpop.f32.mrb[6].mxu0  ;;  %303 = vrot.lane.b32.xlu1 %v226_v27, %s610_s28  ;;  %v269_v32 = vpop.f32.mrb[6].mxu1 }
 0x11d   :  { %v229_v31 = vpop.f32.mrb[7].mxu0  ;;  %v270_v33 = vpop.f32.mrb[7].mxu1 }
 0x11f   :  { %309 = vrot.lane.b32.xlu0 %v697_v28, %s610_s28 }
 0x120   :  { %315 = vrot.lane.b32.xlu1 %v267_v30, %s610_s28 }
 0x185   :  { %v274_v34 = vpop.permute.xlu0 %273  ;;  %v286_v39 = vpop.permute.xlu1 %285 }
 0x186   :  { %v276_v35 = vadd.f32 %v274_v34, %v683_v18 }
 0x188   :  { %v277_v36 = vadd.f32 %v276_v35, %v144_v19 }
 0x189   :  { %v280_v37 = vpop.permute.xlu0 %279  ;;  %v292_v43 = vpop.permute.xlu1 %291 }
 0x18a   :  { %v282_v38 = vadd.f32 %v280_v37, %v277_v36 }
 0x18c   :  { %v283_v40 = vadd.f32 %v282_v38, %v687_v20 }
 0x18d   :  { %v298_v45 = vpop.permute.xlu0 %297 }
 0x18e   :  { %v288_v41 = vadd.f32 %v286_v39, %v283_v40  ;;  %v304_v49 = vpop.permute.xlu1 %303 }
 0x190   :  { %v289_v42 = vadd.f32 %v288_v41, %v185_v22 }
 0x191   :  { %v310_v51 = vpop.permute.xlu0 %309 }
 0x192   :  { %v294_v44 = vadd.f32 %v292_v43, %v289_v42  ;;  %v316_v55 = vpop.permute.xlu1 %315 }
 0x194   :  { %v295_v46 = vadd.f32 %v294_v44, %v693_v26 }
 0x196   :  { %v300_v47 = vadd.f32 %v298_v45, %v295_v46 }
 0x198   :  { %v301_v48 = vadd.f32 %v300_v47, %v226_v27 }
 0x19a   :  { %v306_v50 = vadd.f32 %v304_v49, %v301_v48 }
 0x19c   :  { %v307_v52 = vadd.f32 %v306_v50, %v697_v28 }
 0x19e   :  { %v312_v53 = vadd.f32 %v310_v51, %v307_v52 }
 0x1a0   :  { %v313_v54 = vadd.f32 %v312_v53, %v267_v30 }
 0x1a2   :  { %v318_v56 = vadd.f32 %v316_v55, %v313_v54 }
 0x1a4   :  { %v320_v57 = vsel %vm319_vm1, %v318_v56, 0.0 }
 0x1a5   :  { %v321_v58 = vrot.slane %v320_v57, 4 }
 0x1a7   :  { %v322_v59 = vadd.f32 %v321_v58, %v320_v57  ;;  %v411_v57 = vld [vmem:[#allocation4] sm:$0x1] }
 0x1a9   :  { %v323_v60 = vrot.slane %v322_v59, 2 }
 0x1ab   :  { %v324_v61 = vadd.f32 %v323_v60, %v322_v59  ;;  %v611_v60 = vmov 1983009808  }
 0x1ad   :  { %v325_v62 = vrot.slane %v324_v61, 1 }
 0x1af   :  { %v326_v63 = vadd.f32 %v325_v62, %v324_v61  ;;  %v471_v61 = vunpack.c.l.s4 %v611_v60 }
 0x1b1   :  { %v327_v0 = vmul.f32 0.03125, %v326_v63  ;;  %v472_v63 = vunpack.c.0.s8 %v471_v61 }
 0x1b3   :  { %329 = vrot.lane.b32.xlu0 %v327_v0, %s610_s28 }
 0x225   :  { %v330_v4 = vpop.permute.xlu0 %329 }
 0x226   :  { %v333_v5 = vsel %vm332_vm2, %v327_v0, %v330_v4 }
 0x227   :  { %v337_v6 = vrot.slane %v333_v5, %v712_v3 }
 0x229   :  { %v716_v7 = vsub.f32 %v144_v19, %v337_v6  ;;  %v719_v8 = vsub.f32 %v683_v18, %v337_v6  ;;  %v725_v11 = vsub.f32 %v185_v22, %v337_v6  ;;  %v728_v12 = vsub.f32 %v687_v20, %v337_v6 }
 0x22a   :  { %v736_v15 = vsub.f32 %v226_v27, %v337_v6  ;;  %v739_v16 = vsub.f32 %v693_v26, %v337_v6  ;;  %v747_v19 = vsub.f32 %v267_v30, %v337_v6  ;;  %v750_v20 = vsub.f32 %v697_v28, %v337_v6 }
 0x22b   :  { %v347_v9 = vmul.f32 %v716_v7, %v716_v7  ;;  %v346_v10 = vmul.f32 %v719_v8, %v719_v8  ;;  %v349_v13 = vmul.f32 %v725_v11, %v725_v11  ;;  %v348_v14 = vmul.f32 %v728_v12, %v728_v12 }
 0x22c   :  { %v351_v17 = vmul.f32 %v736_v15, %v736_v15  ;;  %v350_v18 = vmul.f32 %v739_v16, %v739_v16  ;;  %v353_v21 = vmul.f32 %v747_v19, %v747_v19  ;;  %v352_v22 = vmul.f32 %v750_v20, %v750_v20 }
 0x22d   :  { %361 = vrot.lane.b32.xlu0 %v347_v9, %s610_s28  ;;  %355 = vrot.lane.b32.xlu1 %v346_v10, %s610_s28 }
 0x231   :  { %373 = vrot.lane.b32.xlu0 %v349_v13, %s610_s28  ;;  %367 = vrot.lane.b32.xlu1 %v348_v14, %s610_s28 }
 0x235   :  { %385 = vrot.lane.b32.xlu0 %v351_v17, %s610_s28  ;;  %379 = vrot.lane.b32.xlu1 %v350_v18, %s610_s28 }
 0x239   :  { %397 = vrot.lane.b32.xlu0 %v353_v21, %s610_s28  ;;  %391 = vrot.lane.b32.xlu1 %v352_v22, %s610_s28 }
 0x23d   :  { %424 = vrot.lane.b32.xlu0 %v423_v24, %s610_s28 }
 0x29f   :  { %v356_v25 = vpop.permute.xlu1 %355  ;;  %v362_v28 = vpop.permute.xlu0 %361 }
 0x2a0   :  { %v358_v26 = vadd.f32 %v356_v25, %v346_v10 }
 0x2a2   :  { %v359_v27 = vadd.f32 %v358_v26, %v347_v9  ;;  %v475_v9 = vsub.s32 %v472_v63, %v709_v2 }
 0x2a3   :  { %v368_v31 = vpop.permute.xlu1 %367  ;;  %v374_v34 = vpop.permute.xlu0 %373 }
 0x2a4   :  { %v364_v29 = vadd.f32 %v362_v28, %v359_v27 }
 0x2a6   :  { %v365_v30 = vadd.f32 %v364_v29, %v348_v14 }
 0x2a7   :  { %v380_v37 = vpop.permute.xlu1 %379  ;;  %v386_v40 = vpop.permute.xlu0 %385 }
 0x2a8   :  { %v370_v32 = vadd.f32 %v368_v31, %v365_v30 }
 0x2aa   :  { %v371_v33 = vadd.f32 %v370_v32, %v349_v13 }
 0x2ab   :  { %v392_v43 = vpop.permute.xlu1 %391  ;;  %v398_v46 = vpop.permute.xlu0 %397 }
 0x2ac   :  { %v376_v35 = vadd.f32 %v374_v34, %v371_v33 }
 0x2ae   :  { %v377_v36 = vadd.f32 %v376_v35, %v350_v18 }
 0x2af   :  { %v425_v62 = vpop.permute.xlu0 %424 }
 0x2b0   :  { %v382_v38 = vadd.f32 %v380_v37, %v377_v36  ;;  %v427_v0 = vsel %vm332_vm2, %v418_v23, %v425_v62 }
 0x2b1   :  { %v443_v6 = vrot.slane %v427_v0, %v712_v3 }
 0x2b2   :  { %v383_v39 = vadd.f32 %v382_v38, %v351_v17 }
 0x2b4   :  { %v388_v41 = vadd.f32 %v386_v40, %v383_v39 }
 0x2b6   :  { %v389_v42 = vadd.f32 %v388_v41, %v352_v22 }
 0x2b8   :  { %v394_v44 = vadd.f32 %v392_v43, %v389_v42 }
 0x2ba   :  { %v395_v45 = vadd.f32 %v394_v44, %v353_v21 }
 0x2bc   :  { %v400_v47 = vadd.f32 %v398_v46, %v395_v45 }
 0x2be   :  { %v401_v48 = vsel %vm319_vm1, %v400_v47, 0.0 }
 0x2bf   :  { %v402_v49 = vrot.slane %v401_v48, 4 }
 0x2c1   :  { %v403_v50 = vadd.f32 %v402_v49, %v401_v48 }
 0x2c3   :  { %v404_v51 = vrot.slane %v403_v50, 2 }
 0x2c5   :  { %v405_v52 = vadd.f32 %v404_v51, %v403_v50 }
 0x2c7   :  { %v406_v53 = vrot.slane %v405_v52, 1 }
 0x2c9   :  { %v407_v54 = vadd.f32 %v406_v53, %v405_v52 }
 0x2cb   :  { %v408_v55 = vmul.f32 0.03125, %v407_v54 }
 0x2cd   :  { %v409_v56 = vadd.f32 1e-05, %v408_v55 }
 0x2cf   :  { %532 = vrsqrt.f32 %v409_v56 }
 0x2d9   :  { %v533_v58 = vpop.eup %532 }
 0x2da   :  { %v412_v59 = vmul.f32 %v533_v58, %v411_v57 }
 0x2dc   :  { %414 = vrot.lane.b32.xlu1 %v412_v59, %s610_s28 }
 0x34e   :  { %v415_v1 = vpop.permute.xlu1 %414 }
 0x34f   :  { %v417_v4 = vsel %vm332_vm2, %v412_v59, %v415_v1 }
 0x350   :  { %v431_v5 = vrot.slane %v417_v4, %v712_v3 }
 0x352   :  { %v432_v10 = vmul.f32 %v431_v5, %v719_v8  ;;  %v433_v13 = vmul.f32 %v431_v5, %v716_v7  ;;  %v434_v14 = vmul.f32 %v431_v5, %v728_v12  ;;  %v435_v17 = vmul.f32 %v431_v5, %v725_v11 }
 0x353   :  { %v436_v18 = vmul.f32 %v431_v5, %v739_v16  ;;  %v437_v21 = vmul.f32 %v431_v5, %v736_v15  ;;  %v438_v22 = vmul.f32 %v431_v5, %v750_v20  ;;  %v439_v23 = vmul.f32 %v431_v5, %v747_v19 }
 0x354   :  { %v444_v24 = vadd.f32 %v443_v6, %v432_v10  ;;  %v445_v3 = vadd.f32 %v443_v6, %v433_v13  ;;  %v446_v25 = vadd.f32 %v443_v6, %v434_v14  ;;  %v447_v2 = vadd.f32 %v443_v6, %v435_v17 }
 0x355   :  { %v448_v26 = vadd.f32 %v443_v6, %v436_v18  ;;  %v449_v8 = vadd.f32 %v443_v6, %v437_v21  ;;  %v450_v27 = vadd.f32 %v443_v6, %v438_v22  ;;  %v451_v7 = vadd.f32 %v443_v6, %v439_v23 }
 0x356   :  { %v452_v28 = vmax.f32 %v444_v24, 0.0  ;;  %v453_v12 = vmax.f32 %v445_v3, 0.0  ;;  %v454_v29 = vmax.f32 %v446_v25, 0.0  ;;  %v455_v11 = vmax.f32 %v447_v2, 0.0 }
 0x357   :  { %v456_v30 = vmax.f32 %v448_v26, 0.0  ;;  %v457_v16 = vmax.f32 %v449_v8, 0.0  ;;  %v458_v31 = vmax.f32 %v450_v27, 0.0  ;;  %v459_v15 = vmax.f32 %v451_v7, 0.0 }
 0x358   :  { %v468_v32 = vcombine.low %v452_v28, %v453_v12  ;;  %v469_v20 = vcombine.low %v454_v29, %v455_v11 }
 0x359   :  { %v485_v33 = vcombine.low %v456_v30, %v457_v16  ;;  %v486_v19 = vcombine.low %v458_v31, %v459_v15 }
 0x35a   :  { %v476_v34 = vrot.slane %v468_v32, %v475_v9  ;;  %v483_v35 = vrot.slane %v469_v20, %v475_v9 }
 0x35b   :  { %v493_v36 = vrot.slane %v485_v33, %v475_v9  ;;  %v500_v37 = vrot.slane %v486_v19, %v475_v9 }
 0x35c   :  { %v484_v38 = vcombine.low %v476_v34, %v483_v35 }
 0x35d   :  { %v501_v39 = vcombine.low %v493_v36, %v500_v37 }
 0x35e   :  { %504 = vst [vmem:[%s787_s4] sm:$0xff] %v484_v38 }
 0x35f   :  { %505 = vst [vmem:[%s787_s4 + $0x8] sm:$0xff] %v501_v39 }
 0x360   :  { %510 = vsyncpa [#allocation3], 1 }
 0x361   :  { %511 = vsyncpa [#allocation5], 1 }

// kernel: generator_forward.6
= control target key start
LH: loop header
LB: loop body
LE: loop exit
PB: predicated region body
PF: predicated region fallthrough
CT: control target
= control target key end

     0   :  { %vm840_vm0 = vcmask 261120   ;;  %s1937_s0 = inlined_call_operand.vmem [shape: bf16[4,256,32], index: 0, kind: input, shape index: {}]   ;;  %s1938_s1 = inlined_call_operand.vmem [shape: bf16[4,32,256], index: 1, kind: input, shape index: {}]   ;;  %s1939_s2 = inlined_call_operand.vmem [shape: f32[32,1], index: 2, kind: input, shape index: {}]   ;;  %s1940_s3 = inlined_call_operand.vmem [shape: f32[32,1], index: 3, kind: input, shape index: {}]   ;;  %s1941_s4 = inlined_call_operand.vmem [shape: f32[4,32,32], index: 4, kind: output, shape index: {}]  }
   0x1   :  { %v1371_v0 = vld [vmem:[%s1937_s0 + $0x40] sm:$0xff]   ;;  %v1375_v4 = vld [vmem:[%s1937_s0 + $0x48] sm:$0xff]   ;;  %v1379_v8 = vld [vmem:[%s1937_s0 + $0x50] sm:$0xff]  }
   0x2   :  { %v1372_v1 = vld [vmem:[%s1937_s0 + $0xc0] sm:$0xff]   ;;  %1256 = vmatprep.subr.bf16.mxu0 %v1371_v0  ;;  %v1376_v5 = vld [vmem:[%s1937_s0 + $0xc8] sm:$0xff]   ;;  %v1380_v9 = vld [vmem:[%s1937_s0 + $0xd0] sm:$0xff]  }
   0x3   :  { %v1373_v2 = vld [vmem:[%s1937_s0] sm:$0xff]   ;;  %1284 = vmatprep.subr.bf16.mxu1 %v1372_v1  ;;  %v1377_v6 = vld [vmem:[%s1937_s0 + $0x8] sm:$0xff]   ;;  %v1381_v10 = vld [vmem:[%s1937_s0 + $0x10] sm:$0xff]  }
   0x4   :  { %v1374_v3 = vld [vmem:[%s1937_s0 + $0x80] sm:$0xff]   ;;  %1257 = vmatpush3.bf16.msra.mxu0 %v1373_v2  ;;  %v1378_v7 = vld [vmem:[%s1937_s0 + $0x88] sm:$0xff]   ;;  %v1382_v11 = vld [vmem:[%s1937_s0 + $0x90] sm:$0xff]  }
   0x5   :  { %1285 = vmatpush3.bf16.msra.mxu1 %v1374_v3  ;;  %1258 = vmatprep.subr.bf16.mxu0 %v1375_v4  ;;  %v1383_v12 = vld [vmem:[%s1937_s0 + $0x58] sm:$0xff]   ;;  %v1387_v16 = vld [vmem:[%s1937_s0 + $0x60] sm:$0xff]   ;;  %v1391_v20 = vld [vmem:[%s1937_s0 + $0x68] sm:$0xff]  }
   0x6   :  { %1286 = vmatprep.subr.bf16.mxu1 %v1376_v5  ;;  %v1384_v13 = vld [vmem:[%s1937_s0 + $0xd8] sm:$0xff]   ;;  %v1388_v17 = vld [vmem:[%s1937_s0 + $0xe0] sm:$0xff]   ;;  %v1392_v21 = vld [vmem:[%s1937_s0 + $0xe8] sm:$0xff]  }
   0x7   :  { %v1385_v14 = vld [vmem:[%s1937_s0 + $0x18] sm:$0xff]   ;;  %v1389_v18 = vld [vmem:[%s1937_s0 + $0x20] sm:$0xff]   ;;  %v1393_v22 = vld [vmem:[%s1937_s0 + $0x28] sm:$0xff]  }
   0x8   :  { %1259 = vmatpush3.bf16.msra.mxu0 %v1377_v6  ;;  %v1386_v15 = vld [vmem:[%s1937_s0 + $0x98] sm:$0xff]   ;;  %v1390_v19 = vld [vmem:[%s1937_s0 + $0xa0] sm:$0xff]   ;;  %v1394_v23 = vld [vmem:[%s1937_s0 + $0xa8] sm:$0xff]  }
   0x9   :  { %1287 = vmatpush3.bf16.msra.mxu1 %v1378_v7  ;;  %1260 = vmatprep.subr.bf16.mxu0 %v1379_v8  ;;  %v1395_v24 = vld [vmem:[%s1937_s0 + $0x70] sm:$0xff]   ;;  %v1399_v28 = vld [vmem:[%s1937_s0 + $0x78] sm:$0xff]   ;;  %v1403_v32 = vld [vmem:[%s1938_s1] ss:$8 sps:$4 sm:$0xff]  }
   0xa   :  { %1288 = vmatprep.subr.bf16.mxu1 %v1380_v9  ;;  %v1396_v25 = vld [vmem:[%s1937_s0 + $0xf0] sm:$0xff]   ;;  %v1400_v29 = vld [vmem:[%s1937_s0 + $0xf8] sm:$0xff]   ;;  %v1405_v33 = vld [vmem:[%s1938_s1 + $0x4] ss:$8 sps:$4 sm:$0xff]  }
   0xb   :  { %v1397_v26 = vld [vmem:[%s1937_s0 + $0x30] sm:$0xff]   ;;  %v1401_v30 = vld [vmem:[%s1937_s0 + $0x38] sm:$0xff]   ;;  %v1406_v34 = vld [vmem:[%s1938_s1 + $0x20] ss:$8 sps:$4 sm:$0xff]   ;;  %202 = vmatprep.mubr.bf16.mxu0 %v1405_v33 }
   0xc   :  { %1261 = vmatpush3.bf16.msra.mxu0 %v1381_v10  ;;  %v1398_v27 = vld [vmem:[%s1937_s0 + $0xb0] sm:$0xff]   ;;  %v1402_v31 = vld [vmem:[%s1937_s0 + $0xb8] sm:$0xff]   ;;  %v1408_v35 = vld [vmem:[%s1938_s1 + $0x24] ss:$8 sps:$4 sm:$0xff]  }
   0xd   :  { %1289 = vmatpush3.bf16.msra.mxu1 %v1382_v11  ;;  %1262 = vmatprep.subr.bf16.mxu0 %v1383_v12  ;;  %v1409_v36 = vld [vmem:[%s1937_s0 + $0x140] sm:$0xff]   ;;  %v1413_v40 = vld [vmem:[%s1937_s0 + $0x148] sm:$0xff]   ;;  %v1417_v44 = vld [vmem:[%s1937_s0 + $0x150] sm:$0xff]  }
   0xe   :  { %1290 = vmatprep.subr.bf16.mxu1 %v1384_v13  ;;  %405 = vmatprep.mubr.bf16.mxu1 %v1408_v35  ;;  %v1410_v37 = vld [vmem:[%s1937_s0 + $0x1c0] sm:$0xff]   ;;  %v1414_v41 = vld [vmem:[%s1937_s0 + $0x1c8] sm:$0xff]   ;;  %v1418_v45 = vld [vmem:[%s1937_s0 + $0x1d0] sm:$0xff]  }
   0xf   :  { %v1411_v38 = vld [vmem:[%s1937_s0 + $0x100] sm:$0xff]   ;;  %v1415_v42 = vld [vmem:[%s1937_s0 + $0x108] sm:$0xff]   ;;  %v1419_v46 = vld [vmem:[%s1937_s0 + $0x110] sm:$0xff]  }
  0x10   :  { %1263 = vmatpush3.bf16.msra.mxu0 %v1385_v14  ;;  %v1412_v39 = vld [vmem:[%s1937_s0 + $0x180] sm:$0xff]   ;;  %v1416_v43 = vld [vmem:[%s1937_s0 + $0x188] sm:$0xff]   ;;  %v1420_v47 = vld [vmem:[%s1937_s0 + $0x190] sm:$0xff]  }
  0x11   :  { %1291 = vmatpush3.bf16.msra.mxu1 %v1386_v15  ;;  %1264 = vmatprep.subr.bf16.mxu0 %v1387_v16  ;;  %v1421_v48 = vld [vmem:[%s1937_s0 + $0x158] sm:$0xff]   ;;  %v1425_v52 = vld [vmem:[%s1937_s0 + $0x160] sm:$0xff]   ;;  %v1433_v58 = vld [vmem:[%s1937_s0 + $0x168] sm:$0xff]  }
  0x12   :  { %1292 = vmatprep.subr.bf16.mxu1 %v1388_v17  ;;  %v1422_v49 = vld [vmem:[%s1937_s0 + $0x1d8] sm:$0xff]   ;;  %v1426_v53 = vld [vmem:[%s1937_s0 + $0x1e0] sm:$0xff]   ;;  %v1434_v59 = vld [vmem:[%s1937_s0 + $0x1e8] sm:$0xff]  }
  0x13   :  { %v1423_v50 = vld [vmem:[%s1937_s0 + $0x118] sm:$0xff]   ;;  %v1427_v54 = vld [vmem:[%s1937_s0 + $0x120] sm:$0xff]   ;;  %v1437_v62 = vld [vmem:[%s1937_s0 + $0x128] sm:$0xff]  }
  0x14   :  { %1265 = vmatpush3.bf16.msra.mxu0 %v1389_v18  ;;  %v1424_v51 = vld [vmem:[%s1937_s0 + $0x198] sm:$0xff]   ;;  %v1428_v55 = vld [vmem:[%s1937_s0 + $0x1a0] sm:$0xff]   ;;  %v1438_v63 = vld [vmem:[%s1937_s0 + $0x1a8] sm:$0xff]  }
  0x15   :  { %1293 = vmatpush3.bf16.msra.mxu1 %v1390_v19  ;;  %1266 = vmatprep.subr.bf16.mxu0 %v1391_v20  ;;  %v1429_v56 = vld [vmem:[%s1938_s1 + $0x14] ss:$8 sps:$4 sm:$0xff]   ;;  %v1435_v60 = vld [vmem:[%s1938_s1 + $0x10] ss:$8 sps:$4 sm:$0xff]   ;;  %v1447_v8 = vld [vmem:[%s1938_s1 + $0x40] ss:$8 sps:$4 sm:$0xff]  }
  0x16   :  { %1294 = vmatprep.subr.bf16.mxu1 %v1392_v21  ;;  %v1431_v57 = vld [vmem:[%s1938_s1 + $0x34] ss:$8 sps:$4 sm:$0xff]   ;;  %v1436_v61 = vld [vmem:[%s1938_s1 + $0x30] ss:$8 sps:$4 sm:$0xff]   ;;  %v1449_v9 = vld [vmem:[%s1938_s1 + $0x44] ss:$8 sps:$4 sm:$0xff]  }
  0x17   :  { %v1439_v0 = vld [vmem:[%s1937_s0 + $0x170] sm:$0xff]   ;;  %v1443_v4 = vld [vmem:[%s1937_s0 + $0x178] sm:$0xff]   ;;  %v1450_v10 = vld [vmem:[%s1938_s1 + $0x60] ss:$8 sps:$4 sm:$0xff]  }
  0x18   :  { %1267 = vmatpush3.bf16.msra.mxu0 %v1393_v22  ;;  %v1440_v1 = vld [vmem:[%s1937_s0 + $0x1f0] sm:$0xff]   ;;  %v1444_v5 = vld [vmem:[%s1937_s0 + $0x1f8] sm:$0xff]   ;;  %v1452_v11 = vld [vmem:[%s1938_s1 + $0x64] ss:$8 sps:$4 sm:$0xff]  }
  0x19   :  { %1295 = vmatpush3.bf16.msra.mxu1 %v1394_v23  ;;  %1268 = vmatprep.subr.bf16.mxu0 %v1395_v24  ;;  %v1441_v2 = vld [vmem:[%s1937_s0 + $0x130] sm:$0xff]   ;;  %v1445_v6 = vld [vmem:[%s1937_s0 + $0x138] sm:$0xff]  }
  0x1a   :  { %1296 = vmatprep.subr.bf16.mxu1 %v1396_v25  ;;  %v1442_v3 = vld [vmem:[%s1937_s0 + $0x1b0] sm:$0xff]   ;;  %v1446_v7 = vld [vmem:[%s1937_s0 + $0x1b8] sm:$0xff]  }
  0x1b   :  { %v1453_v12 = vld [vmem:[%s1938_s1 + $0x54] ss:$8 sps:$4 sm:$0xff]   ;;  %v1455_v14 = vld [vmem:[%s1938_s1 + $0x50] ss:$8 sps:$4 sm:$0xff]  }
  0x1c   :  { %1269 = vmatpush3.bf16.msra.mxu0 %v1397_v26  ;;  %v1456_v13 = vld [vmem:[%s1938_s1 + $0x74] ss:$8 sps:$4 sm:$0xff]   ;;  %v1458_v15 = vld [vmem:[%s1938_s1 + $0x70] ss:$8 sps:$4 sm:$0xff]  }
  0x1d   :  { %1297 = vmatpush3.bf16.msra.mxu1 %v1398_v27  ;;  %1270 = vmatprep.subr.bf16.mxu0 %v1399_v28 }
  0x1e   :  { %1298 = vmatprep.subr.bf16.mxu1 %v1400_v29 }
  0x20   :  { %1271 = vmatpush3.bf16.msra.mxu0 %v1401_v30 }
  0x21   :  { %1299 = vmatpush3.bf16.msra.mxu1 %v1402_v31  ;;  %1312 = vmatprep.subr.bf16.mxu0 %v1409_v36 }
  0x22   :  { %1340 = vmatprep.subr.bf16.mxu1 %v1410_v37 }
  0x23   :  { %203 = vmatmul.mubr.bf16.vlgmr.msra.gmra.mrb[0].mxu0 %v1403_v32 }
  0x24   :  { %406 = vmatmul.mubr.bf16.vlgmr.msra.gmra.mrb[0].mxu1 %v1406_v34  ;;  %1313 = vmatpush3.bf16.msra.mxu0 %v1411_v38 }
  0x25   :  { %1341 = vmatpush3.bf16.msra.mxu1 %v1412_v39  ;;  %1314 = vmatprep.subr.bf16.mxu0 %v1413_v40 }
  0x26   :  { %1342 = vmatprep.subr.bf16.mxu1 %v1414_v41  ;;  %210 = vmatprep.mubr.bf16.mxu0 %v1429_v56 }
  0x27   :  { %413 = vmatprep.mubr.bf16.mxu1 %v1431_v57 }
  0x28   :  { %1315 = vmatpush3.bf16.msra.mxu0 %v1415_v42 }
  0x29   :  { %1343 = vmatpush3.bf16.msra.mxu1 %v1416_v43  ;;  %1316 = vmatprep.subr.bf16.mxu0 %v1417_v44 }
  0x2a   :  { %1344 = vmatprep.subr.bf16.mxu1 %v1418_v45 }
  0x2b   :  { %211 = vmatmul.mubr.bf16.gmra.mrb[4].mxu0 %v1435_v60 }
  0x2c   :  { %1317 = vmatpush3.bf16.msra.mxu0 %v1419_v46  ;;  %414 = vmatmul.mubr.bf16.gmra.mrb[4].mxu1 %v1436_v61 }
  0x2d   :  { %1345 = vmatpush3.bf16.msra.mxu1 %v1420_v47  ;;  %1318 = vmatprep.subr.bf16.mxu0 %v1421_v48 }
  0x2e   :  { %1346 = vmatprep.subr.bf16.mxu1 %v1422_v49  ;;  %608 = vmatprep.mubr.bf16.mxu0 %v1449_v9 }
  0x2f   :  { %811 = vmatprep.mubr.bf16.mxu1 %v1452_v11 }
  0x30   :  { %1319 = vmatpush3.bf16.msra.mxu0 %v1423_v50 }
  0x31   :  { %1347 = vmatpush3.bf16.msra.mxu1 %v1424_v51  ;;  %1320 = vmatprep.subr.bf16.mxu0 %v1425_v52 }
  0x32   :  { %1348 = vmatprep.subr.bf16.mxu1 %v1426_v53 }
  0x34   :  { %1321 = vmatpush3.bf16.msra.mxu0 %v1427_v54 }
  0x35   :  { %1349 = vmatpush3.bf16.msra.mxu1 %v1428_v55  ;;  %1322 = vmatprep.subr.bf16.mxu0 %v1433_v58 }
  0x36   :  { %1350 = vmatprep.subr.bf16.mxu1 %v1434_v59 }
  0x38   :  { %1323 = vmatpush3.bf16.msra.mxu0 %v1437_v62 }
  0x39   :  { %1351 = vmatpush3.bf16.msra.mxu1 %v1438_v63  ;;  %1324 = vmatprep.subr.bf16.mxu0 %v1439_v0 }
  0x3a   :  { %1352 = vmatprep.subr.bf16.mxu1 %v1440_v1 }
  0x3c   :  { %1325 = vmatpush3.bf16.msra.mxu0 %v1441_v2 }
  0x3d   :  { %1353 = vmatpush3.bf16.msra.mxu1 %v1442_v3  ;;  %1326 = vmatprep.subr.bf16.mxu0 %v1443_v4 }
  0x3e   :  { %1354 = vmatprep.subr.bf16.mxu1 %v1444_v5 }
  0x40   :  { %1327 = vmatpush3.bf16.msra.mxu0 %v1445_v6 }
  0x41   :  { %1355 = vmatpush3.bf16.msra.mxu1 %v1446_v7 }
  0x43   :  { %609 = vmatmul.mubr.bf16.vlgmr.msra.gmra.mrb[8].mxu0 %v1447_v8 }
  0x44   :  { %812 = vmatmul.mubr.bf16.vlgmr.msra.gmra.mrb[8].mxu1 %v1450_v10  ;;  %616 = vmatprep.mubr.bf16.mxu0 %v1453_v12 }
  0x45   :  { %819 = vmatprep.mubr.bf16.mxu1 %v1456_v13 }
  0x4b   :  { %617 = vmatmul.mubr.bf16.gmra.mrb[12].mxu0 %v1455_v14 }
  0x4c   :  { %820 = vmatmul.mubr.bf16.gmra.mrb[12].mxu1 %v1458_v15 }
  0xf6   :  { %v1272_v16 = vpop.f32.mrb[0].mxu0 }
  0xf7   :  { %v1300_v17 = vpop.f32.mrb[0].mxu1  ;;  %v1273_v18 = vpop.f32.mrb[1].mxu0 }
  0xf8   :  { %v1733_v19 = vadd.f32 %v1273_v18, %v1272_v16  ;;  %v1301_v20 = vpop.f32.mrb[1].mxu1  ;;  %v1275_v21 = vpop.f32.mrb[2].mxu0 }
  0xf9   :  { %v1735_v22 = vadd.f32 %v1301_v20, %v1300_v17  ;;  %v1303_v23 = vpop.f32.mrb[2].mxu1  ;;  %v1276_v24 = vpop.f32.mrb[3].mxu0 }
  0xfa   :  { %v1737_v25 = vadd.f32 %v1276_v24, %v1275_v21  ;;  %v1304_v26 = vpop.f32.mrb[3].mxu1 }
  0xfb   :  { %v1739_v27 = vadd.f32 %v1304_v26, %v1303_v23  ;;  %v828_v43 = vadd.f32 %v1735_v22, %v1733_v19 }
  0xfd   :  { %v829_v50 = vadd.f32 %v1739_v27, %v1737_v25 }
  0xfe   :  { %v1278_v28 = vpop.f32.mrb[4].mxu0 }
  0xff   :  { %v1306_v29 = vpop.f32.mrb[4].mxu1  ;;  %v1279_v30 = vpop.f32.mrb[5].mxu0 }
 0x100   :  { %v1741_v31 = vadd.f32 %v1279_v30, %v1278_v28  ;;  %v1307_v32 = vpop.f32.mrb[5].mxu1  ;;  %v1281_v33 = vpop.f32.mrb[6].mxu0 }
 0x101   :  { %v1743_v34 = vadd.f32 %v1307_v32, %v1306_v29  ;;  %v1309_v35 = vpop.f32.mrb[6].mxu1  ;;  %v1282_v36 = vpop.f32.mrb[7].mxu0 }
 0x102   :  { %v1745_v37 = vadd.f32 %v1282_v36, %v1281_v33  ;;  %v1310_v38 = vpop.f32.mrb[7].mxu1 }
 0x103   :  { %v1747_v39 = vadd.f32 %v1310_v38, %v1309_v35  ;;  %v830_v62 = vadd.f32 %v1743_v34, %v1741_v31 }
 0x105   :  { %v831_v5 = vadd.f32 %v1747_v39, %v1745_v37 }
 0x116   :  { %v1328_v40 = vpop.f32.mrb[8].mxu0 }
 0x117   :  { %v1356_v41 = vpop.f32.mrb[8].mxu1  ;;  %v1329_v42 = vpop.f32.mrb[9].mxu0 }
 0x118   :  { %v1751_v44 = vadd.f32 %v1329_v42, %v1328_v40  ;;  %v1357_v45 = vpop.f32.mrb[9].mxu1  ;;  %v1331_v46 = vpop.f32.mrb[10].mxu0 }
 0x119   :  { %v1753_v47 = vadd.f32 %v1357_v45, %v1356_v41  ;;  %v1359_v48 = vpop.f32.mrb[10].mxu1  ;;  %v1332_v49 = vpop.f32.mrb[11].mxu0 }
 0x11a   :  { %v1757_v51 = vadd.f32 %v1332_v49, %v1331_v46  ;;  %v1360_v52 = vpop.f32.mrb[11].mxu1  ;;  %v832_v53 = vadd.f32 %v1751_v44, %v828_v43 }
 0x11b   :  { %v1760_v54 = vadd.f32 %v1360_v52, %v1359_v48 }
 0x11c   :  { %v836_v55 = vadd.f32 %v1753_v47, %v832_v53  ;;  %v833_v56 = vadd.f32 %v1757_v51, %v829_v50 }
 0x11e   :  { %v1334_v57 = vpop.f32.mrb[12].mxu0  ;;  %v841_v58 = vsel %vm840_vm0, %v836_v55, 0.0  ;;  %v837_v59 = vadd.f32 %v1760_v54, %v833_v56 }
 0x11f   :  { %v1335_v60 = vpop.f32.mrb[13].mxu0  ;;  %842 = vadd.xlane.f32.xlu0 %v841_v58  ;;  %v1362_v61 = vpop.f32.mrb[12].mxu1 }
 0x120   :  { %v1768_v63 = vadd.f32 %v1335_v60, %v1334_v57  ;;  %v1337_v0 = vpop.f32.mrb[14].mxu0  ;;  %v1363_v1 = vpop.f32.mrb[13].mxu1  ;;  %v844_v8 = vsel %vm840_vm0, %v837_v59, 0.0 }
 0x121   :  { %v1338_v2 = vpop.f32.mrb[15].mxu0  ;;  %v1770_v3 = vadd.f32 %v1363_v1, %v1362_v61  ;;  %v1365_v4 = vpop.f32.mrb[14].mxu1 }
 0x122   :  { %v1774_v6 = vadd.f32 %v1338_v2, %v1337_v0  ;;  %v1366_v7 = vpop.f32.mrb[15].mxu1  ;;  %v834_v9 = vadd.f32 %v1768_v63, %v830_v62 }
 0x123   :  { %v1778_v10 = vadd.f32 %v1366_v7, %v1365_v4  ;;  %845 = vadd.xlane.f32.xlu0 %v844_v8 }
 0x124   :  { %v838_v11 = vadd.f32 %v1770_v3, %v834_v9  ;;  %v835_v12 = vadd.f32 %v1774_v6, %v831_v5 }
 0x126   :  { %v847_v13 = vsel %vm840_vm0, %v838_v11, 0.0  ;;  %v839_v14 = vadd.f32 %v1778_v10, %v835_v12 }
 0x127   :  { %848 = vadd.xlane.f32.xlu1 %v847_v13 }
 0x128   :  { %v850_v15 = vsel %vm840_vm0, %v839_v14, 0.0 }
 0x12b   :  { %851 = vadd.xlane.f32.xlu1 %v850_v15 }
 0x1ac   :  { %v843_v16 = vpop.xlane.xlu0 %842 }
 0x1ad   :  { %v1785_v17 = vmul.f32 0.0078125, %v843_v16 }
 0x1af   :  { %v857_v18 = vsub.f32 %v1733_v19, %v1785_v17  ;;  %v865_v20 = vsub.f32 %v1735_v22, %v1785_v17  ;;  %v877_v21 = vsub.f32 %v1751_v44, %v1785_v17  ;;  %v889_v24 = vsub.f32 %v1753_v47, %v1785_v17 }
 0x1b0   :  { %v846_v23 = vpop.xlane.xlu0 %845 }
 0x1b1   :  { %v1795_v26 = vmul.f32 0.0078125, %v846_v23  ;;  %v861_v28 = vmul.f32 %v857_v18, %v857_v18  ;;  %v869_v29 = vmul.f32 %v865_v20, %v865_v20  ;;  %v881_v30 = vmul.f32 %v877_v21, %v877_v21 }
 0x1b2   :  { %v893_v40 = vmul.f32 %v889_v24, %v889_v24 }
 0x1b3   :  { %v873_v32 = vadd.f32 %v869_v29, %v861_v28  ;;  %v858_v33 = vsub.f32 %v1737_v25, %v1795_v26  ;;  %v866_v35 = vsub.f32 %v1739_v27, %v1795_v26  ;;  %v878_v36 = vsub.f32 %v1757_v51, %v1795_v26 }
 0x1b4   :  { %v849_v38 = vpop.xlane.xlu1 %848  ;;  %v890_v41 = vsub.f32 %v1760_v54, %v1795_v26 }
 0x1b5   :  { %v1805_v42 = vmul.f32 0.0078125, %v849_v38  ;;  %v885_v43 = vadd.f32 %v881_v30, %v873_v32  ;;  %v862_v45 = vmul.f32 %v858_v33, %v858_v33  ;;  %v870_v46 = vmul.f32 %v866_v35, %v866_v35 }
 0x1b6   :  { %v882_v48 = vmul.f32 %v878_v36, %v878_v36  ;;  %v894_v56 = vmul.f32 %v890_v41, %v890_v41  ;;  %v1467_v30 = vmov 0  }
 0x1b7   :  { %v897_v49 = vadd.f32 %v893_v40, %v885_v43  ;;  %v874_v50 = vadd.f32 %v870_v46, %v862_v45  ;;  %v859_v52 = vsub.f32 %v1741_v31, %v1805_v42  ;;  %v867_v53 = vsub.f32 %v1743_v34, %v1805_v42  ;;  %1369 = vset.pattern.permute.xlu0 %v1467_v30  ;;  %v925_v46 = vld [vmem:[%s1939_s2] sm:$0xff] }
 0x1b8   :  { %v852_v55 = vpop.xlane.xlu1 %851  ;;  %v879_v57 = vsub.f32 %v1768_v63, %v1805_v42  ;;  %v891_v0 = vsub.f32 %v1770_v3, %v1805_v42  ;;  %1370 = vset.pattern.permute.xlu1 %v1467_v30 }
 0x1b9   :  { %v1813_v58 = vmul.f32 0.0078125, %v852_v55  ;;  %v901_v59 = vsel %vm840_vm0, %v897_v49, 0.0  ;;  %v886_v60 = vadd.f32 %v882_v48, %v874_v50  ;;  %v863_v61 = vmul.f32 %v859_v52, %v859_v52 }
 0x1ba   :  { %902 = vadd.xlane.f32.xlu0 %v901_v59  ;;  %v871_v62 = vmul.f32 %v867_v53, %v867_v53  ;;  %v883_v8 = vmul.f32 %v879_v57, %v879_v57  ;;  %v895_v15 = vmul.f32 %v891_v0, %v891_v0  ;;  %v926_v53 = vld [vmem:[%s1939_s2 + $0x8] sm:$0xff] }
 0x1bb   :  { %v898_v1 = vadd.f32 %v894_v56, %v886_v60  ;;  %v860_v2 = vsub.f32 %v1745_v37, %v1813_v58  ;;  %v868_v4 = vsub.f32 %v1747_v39, %v1813_v58  ;;  %v880_v5 = vsub.f32 %v1774_v6, %v1813_v58  ;;  %v933_v60 = vld [vmem:[%s1940_s3] sm:$0xff]  ;;  %v934_v0 = vld [vmem:[%s1940_s3 + $0x8] sm:$0xff] }
 0x1bc   :  { %v875_v7 = vadd.f32 %v871_v62, %v863_v61  ;;  %v892_v13 = vsub.f32 %v1778_v10, %v1813_v58 }
 0x1bd   :  { %v904_v9 = vsel %vm840_vm0, %v898_v1, 0.0  ;;  %v864_v11 = vmul.f32 %v860_v2, %v860_v2  ;;  %v872_v12 = vmul.f32 %v868_v4, %v868_v4  ;;  %v884_v18 = vmul.f32 %v880_v5, %v880_v5 }
 0x1be   :  { %905 = vadd.xlane.f32.xlu1 %v904_v9  ;;  %v887_v14 = vadd.f32 %v883_v8, %v875_v7  ;;  %v896_v23 = vmul.f32 %v892_v13, %v892_v13  ;;  %v928_v7 = vld [vmem:[%s1939_s2 + $0x18] sm:$0xff]  ;;  %v935_v9 = vld [vmem:[%s1940_s3 + $0x10] sm:$0xff] }
 0x1bf   :  { %v876_v16 = vadd.f32 %v872_v12, %v864_v11  ;;  %v936_v13 = vld [vmem:[%s1940_s3 + $0x18] sm:$0xff] }
 0x1c0   :  { %v899_v20 = vadd.f32 %v895_v15, %v887_v14 }
 0x1c1   :  { %v888_v21 = vadd.f32 %v884_v18, %v876_v16 }
 0x1c2   :  { %v907_v24 = vsel %vm840_vm0, %v899_v20, 0.0 }
 0x1c3   :  { %908 = vadd.xlane.f32.xlu0 %v907_v24  ;;  %v900_v28 = vadd.f32 %v896_v23, %v888_v21 }
 0x1c5   :  { %v910_v29 = vsel %vm840_vm0, %v900_v28, 0.0 }
 0x1c6   :  { %911 = vadd.xlane.f32.xlu1 %v910_v29 }
 0x247   :  { %v903_v32 = vpop.xlane.xlu0 %902 }
 0x248   :  { %v913_v33 = vmul.f32 0.0078125, %v903_v32 }
 0x24a   :  { %v917_v35 = vadd.f32 1e-05, %v913_v33 }
 0x24b   :  { %v906_v36 = vpop.xlane.xlu1 %905 }
 0x24c   :  { %1459 = vrsqrt.f32 %v917_v35  ;;  %v914_v38 = vmul.f32 0.0078125, %v906_v36 }
 0x24e   :  { %v918_v40 = vadd.f32 1e-05, %v914_v38 }
 0x250   :  { %1461 = vrsqrt.f32 %v918_v40  ;;  %v909_v41 = vpop.xlane.xlu0 %908 }
 0x251   :  { %v915_v43 = vmul.f32 0.0078125, %v909_v41 }
 0x253   :  { %v912_v45 = vpop.xlane.xlu1 %911  ;;  %v919_v49 = vadd.f32 1e-05, %v915_v43 }
 0x254   :  { %v916_v50 = vmul.f32 0.0078125, %v912_v45 }
 0x255   :  { %1463 = vrsqrt.f32 %v919_v49 }
 0x256   :  { %v1460_v48 = vpop.eup %1459  ;;  %v920_v56 = vadd.f32 1e-05, %v916_v50 }
 0x257   :  { %v929_v52 = vmul.f32 %v1460_v48, %v925_v46 }
 0x258   :  { %1465 = vrsqrt.f32 %v920_v56 }
 0x259   :  { %947 = vperm.xlu0 %1369, %v929_v52   ;;  %v937_v59 = vmul.f32 %v929_v52, %v1785_v17  ;;  %v927_v17 = vld [vmem:[%s1939_s2 + $0x10] sm:$0xff] }
 0x25a   :  { %v1462_v55 = vpop.eup %1461 }
 0x25b   :  { %v930_v57 = vmul.f32 %v1462_v55, %v926_v53  ;;  %v941_v61 = vsub.f32 %v933_v60, %v937_v59 }
 0x25d   :  { %952 = vperm.xlu1 %1370, %v930_v57   ;;  %v938_v62 = vmul.f32 %v930_v57, %v1795_v26 }
 0x25f   :  { %v942_v1 = vsub.f32 %v934_v0, %v938_v62  ;;  %v1464_v2 = vpop.eup %1463 }
 0x260   :  { %v931_v4 = vmul.f32 %v1464_v2, %v927_v17 }
 0x261   :  { %971 = vperm.xlu1 %1370, %v941_v61  }
 0x262   :  { %v1466_v5 = vpop.eup %1465  ;;  %v939_v8 = vmul.f32 %v931_v4, %v1805_v42 }
 0x263   :  { %v932_v26 = vmul.f32 %v1466_v5, %v928_v7 }
 0x264   :  { %v943_v11 = vsub.f32 %v935_v9, %v939_v8 }
 0x265   :  { %976 = vperm.xlu1 %1370, %v942_v1   ;;  %v940_v12 = vmul.f32 %v932_v26, %v1813_v58 }
 0x267   :  { %v944_v14 = vsub.f32 %v936_v13, %v940_v12 }
 0x269   :  { %957 = vperm.xlu1 %1370, %v931_v4  }
 0x26d   :  { %962 = vperm.xlu1 %1370, %v932_v26  }
 0x271   :  { %981 = vperm.xlu1 %1370, %v943_v11  }
 0x275   :  { %986 = vperm.xlu1 %1370, %v944_v14  }
 0x2d8   :  { %v948_v15 = vpop.permute.xlu0 %947 }
 0x2d9   :  { %v965_v18 = vmul.f32 %v1733_v19, %v948_v15  ;;  %v1001_v42 = vmul.f32 %v1735_v22, %v948_v15  ;;  %v1018_v20 = vmul.f32 %v1751_v44, %v948_v15  ;;  %v1035_v21 = vmul.f32 %v1753_v47, %v948_v15 }
 0x2dc   :  { %v953_v16 = vpop.permute.xlu1 %952 }
 0x2dd   :  { %v966_v30 = vmul.f32 %v1737_v25, %v953_v16  ;;  %v1002_v32 = vmul.f32 %v1739_v27, %v953_v16  ;;  %v1019_v33 = vmul.f32 %v1757_v51, %v953_v16  ;;  %v1036_v35 = vmul.f32 %v1760_v54, %v953_v16 }
 0x2e0   :  { %v972_v23 = vpop.permute.xlu1 %971 }
 0x2e1   :  { %v989_v24 = vadd.f32 %v972_v23, %v965_v18  ;;  %v1005_v58 = vadd.f32 %v1001_v42, %v972_v23  ;;  %v1022_v28 = vadd.f32 %v1018_v20, %v972_v23  ;;  %v1039_v29 = vadd.f32 %v1035_v21, %v972_v23 }
 0x2e3   :  { %v993_v19 = vmax.f32 %v989_v24, 0.0  ;;  %v1009_v36 = vmax.f32 %v1005_v58, 0.0  ;;  %v1026_v22 = vmax.f32 %v1022_v28, 0.0  ;;  %v1043_v38 = vmax.f32 %v1039_v29, 0.0 }
 0x2e4   :  { %v977_v44 = vpop.permute.xlu1 %976 }
 0x2e5   :  { %997 = vst.msk [vmem:[%s1941_s4] sm:$0xff] %vm840_vm0, %v993_v19  ;;  %1244 = vst.msk [vmem:[%s1941_s4 + $0x20] sm:$0xff] %vm840_vm0, %v1009_v36  ;;  %v990_v25 = vadd.f32 %v977_v44, %v966_v30  ;;  %v1006_v27 = vadd.f32 %v1002_v32, %v977_v44  ;;  %v1023_v47 = vadd.f32 %v1019_v33, %v977_v44 }
 0x2e6   :  { %1248 = vst.msk [vmem:[%s1941_s4 + $0x40] sm:$0xff] %vm840_vm0, %v1026_v22  ;;  %1252 = vst.msk [vmem:[%s1941_s4 + $0x60] sm:$0xff] %vm840_vm0, %v1043_v38  ;;  %v1040_v51 = vadd.f32 %v1036_v35, %v977_v44 }
 0x2e7   :  { %v994_v54 = vmax.f32 %v990_v25, 0.0  ;;  %v1010_v40 = vmax.f32 %v1006_v27, 0.0  ;;  %v1027_v41 = vmax.f32 %v1023_v47, 0.0 }
 0x2e8   :  { %v1044_v43 = vmax.f32 %v1040_v51, 0.0  ;;  %v958_v45 = vpop.permute.xlu1 %957 }
 0x2e9   :  { %998 = vst.msk [vmem:[%s1941_s4 + $0x8] sm:$0xff] %vm840_vm0, %v994_v54  ;;  %1245 = vst.msk [vmem:[%s1941_s4 + $0x28] sm:$0xff] %vm840_vm0, %v1010_v40  ;;  %v967_v48 = vmul.f32 %v1741_v31, %v958_v45  ;;  %v1003_v49 = vmul.f32 %v1743_v34, %v958_v45  ;;  %v1020_v50 = vmul.f32 %v1768_v63, %v958_v45 }
 0x2ea   :  { %1249 = vst.msk [vmem:[%s1941_s4 + $0x48] sm:$0xff] %vm840_vm0, %v1027_v41  ;;  %1253 = vst.msk [vmem:[%s1941_s4 + $0x68] sm:$0xff] %vm840_vm0, %v1044_v43  ;;  %v1037_v52 = vmul.f32 %v1770_v3, %v958_v45 }
 0x2ec   :  { %v963_v46 = vpop.permute.xlu1 %962 }
 0x2ed   :  { %v968_v60 = vmul.f32 %v1745_v37, %v963_v46  ;;  %v1004_v61 = vmul.f32 %v1747_v39, %v963_v46  ;;  %v1021_v62 = vmul.f32 %v1774_v6, %v963_v46  ;;  %v1038_v0 = vmul.f32 %v1778_v10, %v963_v46 }
 0x2f0   :  { %v982_v53 = vpop.permute.xlu1 %981 }
 0x2f1   :  { %v991_v55 = vadd.f32 %v982_v53, %v967_v48  ;;  %v1007_v56 = vadd.f32 %v1003_v49, %v982_v53  ;;  %v1024_v57 = vadd.f32 %v1020_v50, %v982_v53  ;;  %v1041_v59 = vadd.f32 %v1037_v52, %v982_v53 }
 0x2f3   :  { %v995_v31 = vmax.f32 %v991_v55, 0.0  ;;  %v1011_v1 = vmax.f32 %v1007_v56, 0.0  ;;  %v1028_v34 = vmax.f32 %v1024_v57, 0.0  ;;  %v1045_v2 = vmax.f32 %v1041_v59, 0.0 }
 0x2f4   :  { %v987_v63 = vpop.permute.xlu1 %986 }
 0x2f5   :  { %999 = vst.msk [vmem:[%s1941_s4 + $0x10] sm:$0xff] %vm840_vm0, %v995_v31  ;;  %1246 = vst.msk [vmem:[%s1941_s4 + $0x30] sm:$0xff] %vm840_vm0, %v1011_v1  ;;  %v992_v37 = vadd.f32 %v987_v63, %v968_v60  ;;  %v1008_v39 = vadd.f32 %v1004_v61, %v987_v63  ;;  %v1025_v3 = vadd.f32 %v1021_v62, %v987_v63 }
 0x2f6   :  { %1250 = vst.msk [vmem:[%s1941_s4 + $0x50] sm:$0xff] %vm840_vm0, %v1028_v34  ;;  %1254 = vst.msk [vmem:[%s1941_s4 + $0x70] sm:$0xff] %vm840_vm0, %v1045_v2  ;;  %v1042_v6 = vadd.f32 %v1038_v0, %v987_v63 }
 0x2f7   :  { %v996_v10 = vmax.f32 %v992_v37, 0.0  ;;  %v1012_v17 = vmax.f32 %v1008_v39, 0.0  ;;  %v1029_v4 = vmax.f32 %v1025_v3, 0.0 }
 0x2f8   :  { %v1046_v5 = vmax.f32 %v1042_v6, 0.0 }
 0x2f9   :  { %1000 = vst.msk [vmem:[%s1941_s4 + $0x18] sm:$0xff] %vm840_vm0, %v996_v10  ;;  %1247 = vst.msk [vmem:[%s1941_s4 + $0x38] sm:$0xff] %vm840_vm0, %v1012_v17 }
 0x2fa   :  { %1251 = vst.msk [vmem:[%s1941_s4 + $0x58] sm:$0xff] %vm840_vm0, %v1029_v4  ;;  %1255 = vst.msk [vmem:[%s1941_s4 + $0x78] sm:$0xff] %vm840_vm0, %v1046_v5 }

// kernel: generator_forward.7
= control target key start
LH: loop header
LB: loop body
LE: loop exit
PB: predicated region body
PF: predicated region fallthrough
CT: control target
= control target key end

     0   :  { %v846_v0 = vmov 0.0   ;;  %vm847_vm0 = vmmov 0   ;;  %s1098_s0 = inlined_call_operand.vmem [shape: bf16[4,128,128], index: 0, kind: input, shape index: {}]   ;;  %s1099_s1 = inlined_call_operand.vmem [shape: bf16[4,16,128], index: 1, kind: input, shape index: {}]   ;;  %s1100_s2 = inlined_call_operand.vmem [shape: f32[16,1], index: 2, kind: input, shape index: {}]   ;;  %s1101_s3 = inlined_call_operand.vmem [shape: f32[16,1], index: 3, kind: input, shape index: {}]   ;;  %s1102_s4 = inlined_call_operand.vmem [shape: f32[4,16,128], index: 4, kind: output, shape index: {}]  }
   0x1   :  { %721 = vmatprep.subr.bf16.mxu0 %v846_v0  ;;  %741 = vmatprep.subr.bf16.mxu1 %v846_v0  ;;  %v806_v1 = vld [vmem:[%s1098_s0] sm:$0xff]   ;;  %v808_v3 = vld [vmem:[%s1098_s0 + $0x8] sm:$0xff]   ;;  %v810_v5 = vld [vmem:[%s1098_s0 + $0x10] sm:$0xff]  }
   0x2   :  { %v807_v2 = vld [vmem:[%s1098_s0 + $0x40] sm:$0xff]   ;;  %737 = vmatprep.mubr.msk.bf16.mxu0 %vm847_vm0, %v846_v0  ;;  %757 = vmatprep.mubr.msk.bf16.mxu1 %vm847_vm0, %v846_v0  ;;  %v809_v4 = vld [vmem:[%s1098_s0 + $0x48] sm:$0xff]   ;;  %v811_v6 = vld [vmem:[%s1098_s0 + $0x50] sm:$0xff]  }
   0x3   :  { %722 = vmatpush3.bf16.msra.mxu0 %v806_v1  ;;  %742 = vmatpush3.bf16.msra.mxu1 %v807_v2  ;;  %v812_v7 = vld [vmem:[%s1098_s0 + $0x18] sm:$0xff]   ;;  %v814_v9 = vld [vmem:[%s1098_s0 + $0x20] sm:$0xff]   ;;  %v816_v11 = vld [vmem:[%s1098_s0 + $0x28] sm:$0xff]  }
   0x4   :  { %723 = vmatprep.subr.bf16.mxu0 %v846_v0  ;;  %743 = vmatprep.subr.bf16.mxu1 %v846_v0  ;;  %v813_v8 = vld [vmem:[%s1098_s0 + $0x58] sm:$0xff]   ;;  %v815_v10 = vld [vmem:[%s1098_s0 + $0x60] sm:$0xff]   ;;  %v817_v12 = vld [vmem:[%s1098_s0 + $0x68] sm:$0xff]  }
   0x5   :  { %v818_v13 = vld [vmem:[%s1098_s0 + $0x30] sm:$0xff]   ;;  %v820_v15 = vld [vmem:[%s1098_s0 + $0x38] sm:$0xff]   ;;  %v822_v17 = vld [vmem:[%s1099_s1] sm:$0xff]  }
   0x6   :  { %v819_v14 = vld [vmem:[%s1098_s0 + $0x70] sm:$0xff]   ;;  %v821_v16 = vld [vmem:[%s1098_s0 + $0x78] sm:$0xff]   ;;  %v823_v18 = vld [vmem:[%s1099_s1 + $0x8] sm:$0xff]  }
   0x7   :  { %724 = vmatpush3.bf16.msra.mxu0 %v808_v3  ;;  %744 = vmatpush3.bf16.msra.mxu1 %v809_v4  ;;  %v824_v19 = vld [vmem:[%s1098_s0 + $0x80] sm:$0xff]   ;;  %v826_v21 = vld [vmem:[%s1098_s0 + $0x88] sm:$0xff]   ;;  %v828_v23 = vld [vmem:[%s1098_s0 + $0x90] sm:$0xff]  }
   0x8   :  { %725 = vmatprep.subr.bf16.mxu0 %v846_v0  ;;  %745 = vmatprep.subr.bf16.mxu1 %v846_v0  ;;  %v825_v20 = vld [vmem:[%s1098_s0 + $0xc0] sm:$0xff]   ;;  %v827_v22 = vld [vmem:[%s1098_s0 + $0xc8] sm:$0xff]   ;;  %v829_v24 = vld [vmem:[%s1098_s0 + $0xd0] sm:$0xff]  }
   0x9   :  { %v830_v25 = vld [vmem:[%s1098_s0 + $0x98] sm:$0xff]   ;;  %v832_v27 = vld [vmem:[%s1098_s0 + $0xa0] sm:$0xff]   ;;  %v834_v29 = vld [vmem:[%s1098_s0 + $0xa8] sm:$0xff]  }
   0xa   :  { %v831_v26 = vld [vmem:[%s1098_s0 + $0xd8] sm:$0xff]   ;;  %v833_v28 = vld [vmem:[%s1098_s0 + $0xe0] sm:$0xff]   ;;  %v835_v30 = vld [vmem:[%s1098_s0 + $0xe8] sm:$0xff]  }
   0xb   :  { %726 = vmatpush3.bf16.msra.mxu0 %v810_v5  ;;  %746 = vmatpush3.bf16.msra.mxu1 %v811_v6  ;;  %v836_v31 = vld [vmem:[%s1098_s0 + $0xb0] sm:$0xff]   ;;  %v838_v33 = vld [vmem:[%s1098_s0 + $0xb8] sm:$0xff]  }
   0xc   :  { %727 = vmatprep.subr.bf16.mxu0 %v846_v0  ;;  %747 = vmatprep.subr.bf16.mxu1 %v846_v0  ;;  %v837_v32 = vld [vmem:[%s1098_s0 + $0xf0] sm:$0xff]   ;;  %v839_v34 = vld [vmem:[%s1098_s0 + $0xf8] sm:$0xff]  }
   0xd   :  { %v840_v35 = vld [vmem:[%s1099_s1 + $0x10] sm:$0xff]   ;;  %v841_v36 = vld [vmem:[%s1099_s1 + $0x18] sm:$0xff]  }
   0xf   :  { %728 = vmatpush3.bf16.msra.mxu0 %v812_v7  ;;  %748 = vmatpush3.bf16.msra.mxu1 %v813_v8 }
  0x10   :  { %729 = vmatprep.subr.bf16.mxu0 %v846_v0  ;;  %749 = vmatprep.subr.bf16.mxu1 %v846_v0 }
  0x13   :  { %730 = vmatpush3.bf16.msra.mxu0 %v814_v9  ;;  %750 = vmatpush3.bf16.msra.mxu1 %v815_v10 }
  0x14   :  { %731 = vmatprep.subr.bf16.mxu0 %v846_v0  ;;  %751 = vmatprep.subr.bf16.mxu1 %v846_v0 }
  0x17   :  { %732 = vmatpush3.bf16.msra.mxu0 %v816_v11  ;;  %752 = vmatpush3.bf16.msra.mxu1 %v817_v12 }
  0x18   :  { %733 = vmatprep.subr.bf16.mxu0 %v846_v0  ;;  %753 = vmatprep.subr.bf16.mxu1 %v846_v0 }
  0x1b   :  { %734 = vmatpush3.bf16.msra.mxu0 %v818_v13  ;;  %754 = vmatpush3.bf16.msra.mxu1 %v819_v14 }
  0x1c   :  { %735 = vmatprep.subr.bf16.mxu0 %v846_v0  ;;  %755 = vmatprep.subr.bf16.mxu1 %v846_v0 }
  0x1f   :  { %736 = vmatpush3.bf16.msra.mxu0 %v820_v15  ;;  %756 = vmatpush3.bf16.msra.mxu1 %v821_v16 }
  0x20   :  { %761 = vmatprep.subr.bf16.mxu0 %v846_v0  ;;  %781 = vmatprep.subr.bf16.mxu1 %v846_v0 }
  0x22   :  { %738 = vmatmul.mubr.bf16.vlgmr.msra.gmra.mrb[0].mxu0 %v822_v17  ;;  %758 = vmatmul.mubr.bf16.vlgmr.msra.gmra.mrb[0].mxu1 %v823_v18 }
  0x23   :  { %762 = vmatpush3.bf16.msra.mxu0 %v824_v19  ;;  %782 = vmatpush3.bf16.msra.mxu1 %v825_v20 }
  0x24   :  { %763 = vmatprep.subr.bf16.mxu0 %v846_v0  ;;  %783 = vmatprep.subr.bf16.mxu1 %v846_v0 }
  0x25   :  { %777 = vmatprep.mubr.msk.bf16.mxu0 %vm847_vm0, %v846_v0  ;;  %797 = vmatprep.mubr.msk.bf16.mxu1 %vm847_vm0, %v846_v0 }
  0x27   :  { %764 = vmatpush3.bf16.msra.mxu0 %v826_v21  ;;  %784 = vmatpush3.bf16.msra.mxu1 %v827_v22  ;;  %v848_v21 = vmov 0  }
  0x28   :  { %765 = vmatprep.subr.bf16.mxu0 %v846_v0  ;;  %785 = vmatprep.subr.bf16.mxu1 %v846_v0 }
  0x29   :  { %804 = vset.pattern.permute.xlu0 %v848_v21  ;;  %805 = vset.pattern.permute.xlu1 %v848_v21 }
  0x2b   :  { %766 = vmatpush3.bf16.msra.mxu0 %v828_v23  ;;  %786 = vmatpush3.bf16.msra.mxu1 %v829_v24 }
  0x2c   :  { %767 = vmatprep.subr.bf16.mxu0 %v846_v0  ;;  %787 = vmatprep.subr.bf16.mxu1 %v846_v0 }
  0x2f   :  { %768 = vmatpush3.bf16.msra.mxu0 %v830_v25  ;;  %788 = vmatpush3.bf16.msra.mxu1 %v831_v26 }
  0x30   :  { %769 = vmatprep.subr.bf16.mxu0 %v846_v0  ;;  %789 = vmatprep.subr.bf16.mxu1 %v846_v0 }
  0x33   :  { %770 = vmatpush3.bf16.msra.mxu0 %v832_v27  ;;  %790 = vmatpush3.bf16.msra.mxu1 %v833_v28  ;;  %v520_v28 = vld [vmem:[%s1100_s2] sm:$0xff] }
  0x34   :  { %771 = vmatprep.subr.bf16.mxu0 %v846_v0  ;;  %791 = vmatprep.subr.bf16.mxu1 %v846_v0 }
  0x37   :  { %772 = vmatpush3.bf16.msra.mxu0 %v834_v29  ;;  %792 = vmatpush3.bf16.msra.mxu1 %v835_v30 }
  0x38   :  { %773 = vmatprep.subr.bf16.mxu0 %v846_v0  ;;  %793 = vmatprep.subr.bf16.mxu1 %v846_v0 }
  0x3b   :  { %774 = vmatpush3.bf16.msra.mxu0 %v836_v31  ;;  %794 = vmatpush3.bf16.msra.mxu1 %v837_v32  ;;  %v521_v31 = vld [vmem:[%s1100_s2 + $0x8] sm:$0xff] }
  0x3c   :  { %775 = vmatprep.subr.bf16.mxu0 %v846_v0  ;;  %795 = vmatprep.subr.bf16.mxu1 %v846_v0 }
  0x3f   :  { %776 = vmatpush3.bf16.msra.mxu0 %v838_v33  ;;  %796 = vmatpush3.bf16.msra.mxu1 %v839_v34 }
  0x42   :  { %778 = vmatmul.mubr.bf16.vlgmr.msra.gmra.mrb[4].mxu0 %v840_v35  ;;  %798 = vmatmul.mubr.bf16.vlgmr.msra.gmra.mrb[4].mxu1 %v841_v36  ;;  %v524_v35 = vld [vmem:[%s1101_s3] sm:$0xff] }
  0xf5   :  { %v1022_v37 = vpop.f32.mrb[0].mxu0  ;;  %v1024_v38 = vpop.f32.mrb[0].mxu1 }
  0xf6   :  { %v739_v39 = vpop.f32.mrb[1].mxu0  ;;  %v476_v40 = vadd.f32 %v1024_v38, %v1022_v37  ;;  %v759_v41 = vpop.f32.mrb[1].mxu1 }
  0xf7   :  { %v1028_v42 = vpop.f32.mrb[2].mxu0  ;;  %v1030_v43 = vpop.f32.mrb[2].mxu1 }
  0xf8   :  { %v740_v44 = vpop.f32.mrb[3].mxu0  ;;  %v477_v45 = vadd.f32 %v1030_v43, %v1028_v42  ;;  %v760_v46 = vpop.f32.mrb[3].mxu1 }
 0x115   :  { %v1034_v47 = vpop.f32.mrb[4].mxu0  ;;  %v1036_v48 = vpop.f32.mrb[4].mxu1 }
 0x116   :  { %v779_v49 = vpop.f32.mrb[5].mxu0  ;;  %v478_v50 = vadd.f32 %v476_v40, %v1034_v47  ;;  %v799_v51 = vpop.f32.mrb[5].mxu1  ;;  %v525_v40 = vld [vmem:[%s1101_s3 + $0x8] sm:$0xff] }
 0x117   :  { %v1039_v52 = vpop.f32.mrb[6].mxu0  ;;  %v1041_v53 = vpop.f32.mrb[6].mxu1 }
 0x118   :  { %v780_v54 = vpop.f32.mrb[7].mxu0  ;;  %v480_v55 = vadd.f32 %v478_v50, %v1036_v48  ;;  %v479_v56 = vadd.f32 %v477_v45, %v1039_v52  ;;  %v800_v57 = vpop.f32.mrb[7].mxu1 }
 0x11a   :  { %482 = vadd.xlane.f32.xlu0 %v480_v55  ;;  %v481_v58 = vadd.f32 %v479_v56, %v1041_v53 }
 0x11e   :  { %484 = vadd.xlane.f32.xlu0 %v481_v58 }
 0x1a7   :  { %v483_v59 = vpop.xlane.xlu0 %482 }
 0x1a8   :  { %v486_v60 = vmul.f32 0.001953125, %v483_v59 }
 0x1aa   :  { %v488_v61 = vsub.f32 %v1022_v37, %v486_v60  ;;  %v492_v62 = vsub.f32 %v1024_v38, %v486_v60  ;;  %v498_v63 = vsub.f32 %v1034_v47, %v486_v60  ;;  %v504_v1 = vsub.f32 %v1036_v48, %v486_v60 }
 0x1ab   :  { %v485_v0 = vpop.xlane.xlu0 %484 }
 0x1ac   :  { %v487_v2 = vmul.f32 0.001953125, %v485_v0  ;;  %v490_v3 = vmul.f32 %v488_v61, %v488_v61  ;;  %v494_v4 = vmul.f32 %v492_v62, %v492_v62  ;;  %v500_v5 = vmul.f32 %v498_v63, %v498_v63 }
 0x1ad   :  { %v506_v10 = vmul.f32 %v504_v1, %v504_v1 }
 0x1ae   :  { %v496_v6 = vadd.f32 %v494_v4, %v490_v3  ;;  %v489_v7 = vsub.f32 %v1028_v42, %v487_v2  ;;  %v493_v8 = vsub.f32 %v1030_v43, %v487_v2  ;;  %v499_v9 = vsub.f32 %v1039_v52, %v487_v2 }
 0x1af   :  { %v505_v14 = vsub.f32 %v1041_v53, %v487_v2 }
 0x1b0   :  { %v502_v11 = vadd.f32 %v500_v5, %v496_v6  ;;  %v491_v12 = vmul.f32 %v489_v7, %v489_v7  ;;  %v495_v13 = vmul.f32 %v493_v8, %v493_v8  ;;  %v501_v17 = vmul.f32 %v499_v9, %v499_v9 }
 0x1b1   :  { %v507_v19 = vmul.f32 %v505_v14, %v505_v14 }
 0x1b2   :  { %v508_v15 = vadd.f32 %v506_v10, %v502_v11  ;;  %v497_v16 = vadd.f32 %v495_v13, %v491_v12 }
 0x1b4   :  { %510 = vadd.xlane.f32.xlu1 %v508_v15  ;;  %v503_v18 = vadd.f32 %v501_v17, %v497_v16 }
 0x1b6   :  { %v509_v20 = vadd.f32 %v507_v19, %v503_v18 }
 0x1b8   :  { %512 = vadd.xlane.f32.xlu1 %v509_v20 }
 0x241   :  { %v511_v22 = vpop.xlane.xlu1 %510 }
 0x242   :  { %v514_v23 = vmul.f32 0.001953125, %v511_v22 }
 0x244   :  { %v516_v24 = vadd.f32 1e-05, %v514_v23 }
 0x245   :  { %v513_v25 = vpop.xlane.xlu1 %512 }
 0x246   :  { %842 = vrsqrt.f32 %v516_v24  ;;  %v515_v26 = vmul.f32 0.001953125, %v513_v25 }
 0x248   :  { %v517_v27 = vadd.f32 1e-05, %v515_v26 }
 0x24a   :  { %844 = vrsqrt.f32 %v517_v27 }
 0x250   :  { %v843_v29 = vpop.eup %842 }
 0x251   :  { %v522_v30 = vmul.f32 %v843_v29, %v520_v28 }
 0x253   :  { %532 = vperm.xlu0 %804, %v522_v30   ;;  %v526_v34 = vmul.f32 %v522_v30, %v486_v60 }
 0x254   :  { %v845_v32 = vpop.eup %844 }
 0x255   :  { %v523_v33 = vmul.f32 %v845_v32, %v521_v31  ;;  %v528_v36 = vsub.f32 %v524_v35, %v526_v34 }
 0x257   :  { %537 = vperm.xlu1 %805, %v523_v33   ;;  %v527_v39 = vmul.f32 %v523_v33, %v487_v2 }
 0x259   :  { %v529_v41 = vsub.f32 %v525_v40, %v527_v39 }
 0x25b   :  { %544 = vperm.xlu1 %805, %v528_v36  }
 0x25f   :  { %549 = vperm.xlu1 %805, %v529_v41  }
 0x2d2   :  { %v533_v44 = vpop.permute.xlu0 %532 }
 0x2d3   :  { %v540_v46 = vmul.f32 %v533_v44, %v1022_v37  ;;  %v558_v49 = vmul.f32 %v533_v44, %v1024_v38  ;;  %v567_v50 = vmul.f32 %v533_v44, %v1034_v47  ;;  %v576_v51 = vmul.f32 %v533_v44, %v1036_v48 }
 0x2d6   :  { %v538_v45 = vpop.permute.xlu1 %537 }
 0x2d7   :  { %v541_v59 = vmul.f32 %v538_v45, %v1028_v42  ;;  %v559_v60 = vmul.f32 %v538_v45, %v1030_v43  ;;  %v568_v61 = vmul.f32 %v538_v45, %v1039_v52  ;;  %v577_v62 = vmul.f32 %v538_v45, %v1041_v53 }
 0x2da   :  { %v545_v54 = vpop.permute.xlu1 %544 }
 0x2db   :  { %v552_v55 = vadd.f32 %v545_v54, %v540_v46  ;;  %v560_v56 = vadd.f32 %v558_v49, %v545_v54  ;;  %v569_v57 = vadd.f32 %v567_v50, %v545_v54  ;;  %v578_v58 = vadd.f32 %v576_v51, %v545_v54 }
 0x2dd   :  { %v554_v37 = vmax.f32 %v552_v55, 0.0  ;;  %v562_v63 = vmax.f32 %v560_v56, 0.0  ;;  %v571_v38 = vmax.f32 %v569_v57, 0.0  ;;  %v580_v0 = vmax.f32 %v578_v58, 0.0 }
 0x2de   :  { %v550_v47 = vpop.permute.xlu1 %549 }
 0x2df   :  { %556 = vst [vmem:[%s1102_s4] sm:$0xff] %v554_v37  ;;  %679 = vst [vmem:[%s1102_s4 + $0x10] sm:$0xff] %v562_v63  ;;  %v553_v42 = vadd.f32 %v550_v47, %v541_v59  ;;  %v561_v43 = vadd.f32 %v559_v60, %v550_v47  ;;  %v570_v48 = vadd.f32 %v568_v61, %v550_v47 }
 0x2e0   :  { %681 = vst [vmem:[%s1102_s4 + $0x20] sm:$0xff] %v571_v38  ;;  %683 = vst [vmem:[%s1102_s4 + $0x30] sm:$0xff] %v580_v0  ;;  %v579_v52 = vadd.f32 %v577_v62, %v550_v47 }
 0x2e1   :  { %v555_v53 = vmax.f32 %v553_v42, 0.0  ;;  %v563_v1 = vmax.f32 %v561_v43, 0.0  ;;  %v572_v2 = vmax.f32 %v570_v48, 0.0 }
 0x2e2   :  { %v581_v3 = vmax.f32 %v579_v52, 0.0 }
 0x2e3   :  { %557 = vst [vmem:[%s1102_s4 + $0x8] sm:$0xff] %v555_v53  ;;  %680 = vst [vmem:[%s1102_s4 + $0x18] sm:$0xff] %v563_v1 }
 0x2e4   :  { %682 = vst [vmem:[%s1102_s4 + $0x28] sm:$0xff] %v572_v2  ;;  %684 = vst [vmem:[%s1102_s4 + $0x38] sm:$0xff] %v581_v3 }

// kernel: generator_forward.8
= control target key start
LH: loop header
LB: loop body
LE: loop exit
PB: predicated region body
PF: predicated region fallthrough
CT: control target
= control target key end

     0   :  { %v1145_v1 = vmov 0   ;;  %vm115_vm0 = vcmask 523264   ;;  %s1527_s0 = inlined_call_operand.vmem [shape: bf16[4,64,512], index: 0, kind: input, shape index: {}]   ;;  %s1528_s1 = inlined_call_operand.vmem [shape: bf16[4,8,64], index: 1, kind: input, shape index: {}]   ;;  %s1529_s2 = inlined_call_operand.vmem [shape: f32[8,1], index: 2, kind: input, shape index: {}]   ;;  %s1530_s3 = inlined_call_operand.vmem [shape: f32[8,1], index: 3, kind: input, shape index: {}]   ;;  %s1531_s4 = inlined_call_operand.vmem [shape: f32[4,8,512], index: 4, kind: output, shape index: {}]  }
   0x1   :  { %v1047_v0 = vld [vmem:[%s1527_s0 + $0x4] ss:$16 sps:$4 sm:$0xff]   ;;  %151 = vmatprep.mubr.bf16.mxu0 %v1145_v1  ;;  %192 = vmatprep.mubr.bf16.mxu1 %v1145_v1  ;;  %v1049_v2 = vld [vmem:[%s1527_s0 + $0xc] ss:$16 sps:$4 sm:$0xff]   ;;  %v1051_v3 = vld [vmem:[%s1527_s0] ss:$16 sps:$4 sm:$0xff]  }
   0x2   :  { %1045 = vset.pattern.permute.xlu1 %v1145_v1  ;;  %1046 = vset.pattern.permute.xlu0 %v1145_v1  ;;  %v1052_v4 = vld [vmem:[%s1527_s0 + $0x8] ss:$16 sps:$4 sm:$0xff]   ;;  %v1053_v5 = vld [vmem:[%s1527_s0 + $0x24] ss:$16 sps:$4 sm:$0xff]   ;;  %v1055_v6 = vld [vmem:[%s1527_s0 + $0x2c] ss:$16 sps:$4 sm:$0xff]  }
   0x3   :  { %119 = vmatprep.subr.bf16.mxu0 %v1047_v0  ;;  %160 = vmatprep.subr.bf16.mxu1 %v1049_v2  ;;  %v1057_v7 = vld [vmem:[%s1527_s0 + $0x20] ss:$16 sps:$4 sm:$0xff]   ;;  %v1058_v8 = vld [vmem:[%s1527_s0 + $0x28] ss:$16 sps:$4 sm:$0xff]   ;;  %v1059_v9 = vld [vmem:[%s1527_s0 + $0x44] ss:$16 sps:$4 sm:$0xff]  }
   0x4   :  { %120 = vmatpush1.bf16.msra.mxu0 %v1051_v3  ;;  %161 = vmatpush1.bf16.msra.mxu1 %v1052_v4  ;;  %v1061_v10 = vld [vmem:[%s1527_s0 + $0x4c] ss:$16 sps:$4 sm:$0xff]   ;;  %v1063_v11 = vld [vmem:[%s1527_s0 + $0x40] ss:$16 sps:$4 sm:$0xff]   ;;  %v1064_v12 = vld [vmem:[%s1527_s0 + $0x48] ss:$16 sps:$4 sm:$0xff]  }
   0x5   :  { %121 = vmatprep.subr.bf16.mxu0 %v1053_v5  ;;  %162 = vmatprep.subr.bf16.mxu1 %v1055_v6  ;;  %v1065_v13 = vld [vmem:[%s1527_s0 + $0x64] ss:$16 sps:$4 sm:$0xff]   ;;  %v1067_v14 = vld [vmem:[%s1527_s0 + $0x6c] ss:$16 sps:$4 sm:$0xff]   ;;  %v1069_v15 = vld [vmem:[%s1527_s0 + $0x60] ss:$16 sps:$4 sm:$0xff]  }
   0x6   :  { %v1070_v16 = vld [vmem:[%s1527_s0 + $0x68] ss:$16 sps:$4 sm:$0xff]   ;;  %v1073_v17 = vld [vmem:[%s1527_s0 + $0x84] ss:$16 sps:$4 sm:$0xff]   ;;  %v1076_v18 = vld [vmem:[%s1527_s0 + $0x8c] ss:$16 sps:$4 sm:$0xff]  }
   0x7   :  { %v18_v19 = vld [vmem:[%s1528_s1] sm:$0xf]  ;;  %v1074_v21 = vld [vmem:[%s1527_s0 + $0x88] ss:$16 sps:$4 sm:$0xff]   ;;  %v1079_v22 = vld [vmem:[%s1527_s0 + $0xa4] ss:$16 sps:$4 sm:$0xff]  }
   0x8   :  { %122 = vmatpush1.bf16.msra.mxu0 %v1057_v7  ;;  %163 = vmatpush1.bf16.msra.mxu1 %v1058_v8  ;;  %v1071_v20 = vld [vmem:[%s1527_s0 + $0x80] ss:$16 sps:$4 sm:$0xff]   ;;  %v1082_v23 = vld [vmem:[%s1527_s0 + $0xac] ss:$16 sps:$4 sm:$0xff]   ;;  %v1080_v25 = vld [vmem:[%s1527_s0 + $0xa8] ss:$16 sps:$4 sm:$0xff]  }
   0x9   :  { %123 = vmatprep.subr.bf16.mxu0 %v1059_v9  ;;  %164 = vmatprep.subr.bf16.mxu1 %v1061_v10  ;;  %v1077_v24 = vld [vmem:[%s1527_s0 + $0xa0] ss:$16 sps:$4 sm:$0xff]   ;;  %v1085_v26 = vld [vmem:[%s1527_s0 + $0xc4] ss:$16 sps:$4 sm:$0xff]   ;;  %v1088_v27 = vld [vmem:[%s1527_s0 + $0xcc] ss:$16 sps:$4 sm:$0xff]  }
   0xa   :  { %v1083_v28 = vld [vmem:[%s1527_s0 + $0xc0] ss:$16 sps:$4 sm:$0xff]   ;;  %v1086_v29 = vld [vmem:[%s1527_s0 + $0xc8] ss:$16 sps:$4 sm:$0xff]   ;;  %v1091_v30 = vld [vmem:[%s1527_s0 + $0xe4] ss:$16 sps:$4 sm:$0xff]  }
   0xb   :  { %v1094_v31 = vld [vmem:[%s1527_s0 + $0xec] ss:$16 sps:$4 sm:$0xff]   ;;  %v1089_v32 = vld [vmem:[%s1527_s0 + $0xe0] ss:$16 sps:$4 sm:$0xff]   ;;  %v1092_v33 = vld [vmem:[%s1527_s0 + $0xe8] ss:$16 sps:$4 sm:$0xff]  }
   0xc   :  { %124 = vmatpush1.bf16.msra.mxu0 %v1063_v11  ;;  %165 = vmatpush1.bf16.msra.mxu1 %v1064_v12  ;;  %v1097_v34 = vld [vmem:[%s1527_s0 + $0x104] ss:$16 sps:$4 sm:$0xff]   ;;  %v1100_v35 = vld [vmem:[%s1527_s0 + $0x10c] ss:$16 sps:$4 sm:$0xff]   ;;  %v1095_v37 = vld [vmem:[%s1527_s0 + $0x100] ss:$16 sps:$4 sm:$0xff]  }
   0xd   :  { %125 = vmatprep.subr.bf16.mxu0 %v1065_v13  ;;  %166 = vmatprep.subr.bf16.mxu1 %v1067_v14  ;;  %v927_v36 = vld [vmem:[%s1528_s1 + $0x4] sm:$0xf]  ;;  %v1098_v38 = vld [vmem:[%s1527_s0 + $0x108] ss:$16 sps:$4 sm:$0xff]   ;;  %v1106_v40 = vld [vmem:[%s1527_s0 + $0x12c] ss:$16 sps:$4 sm:$0xff]  }
   0xe   :  { %v1103_v39 = vld [vmem:[%s1527_s0 + $0x124] ss:$16 sps:$4 sm:$0xff]   ;;  %v1101_v41 = vld [vmem:[%s1527_s0 + $0x120] ss:$16 sps:$4 sm:$0xff]   ;;  %v1104_v42 = vld [vmem:[%s1527_s0 + $0x128] ss:$16 sps:$4 sm:$0xff]  }
   0xf   :  { %v1109_v43 = vld [vmem:[%s1527_s0 + $0x144] ss:$16 sps:$4 sm:$0xff]   ;;  %v1112_v44 = vld [vmem:[%s1527_s0 + $0x14c] ss:$16 sps:$4 sm:$0xff]   ;;  %v1107_v45 = vld [vmem:[%s1527_s0 + $0x140] ss:$16 sps:$4 sm:$0xff]  }
  0x10   :  { %126 = vmatpush1.bf16.msra.mxu0 %v1069_v15  ;;  %167 = vmatpush1.bf16.msra.mxu1 %v1070_v16  ;;  %v1110_v46 = vld [vmem:[%s1527_s0 + $0x148] ss:$16 sps:$4 sm:$0xff]   ;;  %v1115_v47 = vld [vmem:[%s1527_s0 + $0x164] ss:$16 sps:$4 sm:$0xff]   ;;  %v1118_v48 = vld [vmem:[%s1527_s0 + $0x16c] ss:$16 sps:$4 sm:$0xff]  }
  0x11   :  { %303 = vmatprep.subr.bf16.mxu0 %v1073_v17  ;;  %344 = vmatprep.subr.bf16.mxu1 %v1076_v18  ;;  %v1113_v49 = vld [vmem:[%s1527_s0 + $0x160] ss:$16 sps:$4 sm:$0xff]   ;;  %v1116_v50 = vld [vmem:[%s1527_s0 + $0x168] ss:$16 sps:$4 sm:$0xff]   ;;  %v1121_v51 = vld [vmem:[%s1527_s0 + $0x184] ss:$16 sps:$4 sm:$0xff]  }
  0x12   :  { %v1124_v52 = vld [vmem:[%s1527_s0 + $0x18c] ss:$16 sps:$4 sm:$0xff]   ;;  %v962_v53 = vld [vmem:[%s1528_s1 + $0x8] sm:$0xf]  ;;  %v1119_v54 = vld [vmem:[%s1527_s0 + $0x180] ss:$16 sps:$4 sm:$0xff]  }
  0x13   :  { %925 = vmatmul.mubr.msk.bf16.vlgmr.msra.gmra.mrb[0].mxu0 %vm115_vm0, %v18_v19  ;;  %926 = vmatmul.mubr.msk.bf16.vlgmr.msra.gmra.mrb[0].mxu1 %vm115_vm0, %v18_v19  ;;  %v1122_v55 = vld [vmem:[%s1527_s0 + $0x188] ss:$16 sps:$4 sm:$0xff]   ;;  %v1127_v56 = vld [vmem:[%s1527_s0 + $0x1a4] ss:$16 sps:$4 sm:$0xff]   ;;  %v1130_v57 = vld [vmem:[%s1527_s0 + $0x1ac] ss:$16 sps:$4 sm:$0xff]  }
  0x14   :  { %304 = vmatpush1.bf16.msra.mxu0 %v1071_v20  ;;  %345 = vmatpush1.bf16.msra.mxu1 %v1074_v21  ;;  %v1125_v58 = vld [vmem:[%s1527_s0 + $0x1a0] ss:$16 sps:$4 sm:$0xff]   ;;  %v1128_v59 = vld [vmem:[%s1527_s0 + $0x1a8] ss:$16 sps:$4 sm:$0xff]   ;;  %v1133_v60 = vld [vmem:[%s1527_s0 + $0x1c4] ss:$16 sps:$4 sm:$0xff]  }
  0x15   :  { %305 = vmatprep.subr.bf16.mxu0 %v1079_v22  ;;  %346 = vmatprep.subr.bf16.mxu1 %v1082_v23  ;;  %v1136_v61 = vld [vmem:[%s1527_s0 + $0x1cc] ss:$16 sps:$4 sm:$0xff]   ;;  %v1131_v62 = vld [vmem:[%s1527_s0 + $0x1c0] ss:$16 sps:$4 sm:$0xff]   ;;  %v1134_v63 = vld [vmem:[%s1527_s0 + $0x1c8] ss:$16 sps:$4 sm:$0xff]  }
  0x16   :  { %335 = vmatprep.mubr.bf16.mxu0 %v1145_v1  ;;  %376 = vmatprep.mubr.bf16.mxu1 %v1145_v1  ;;  %v1139_v0 = vld [vmem:[%s1527_s0 + $0x1e4] ss:$16 sps:$4 sm:$0xff]   ;;  %v1137_v2 = vld [vmem:[%s1527_s0 + $0x1e0] ss:$16 sps:$4 sm:$0xff]   ;;  %v1140_v3 = vld [vmem:[%s1527_s0 + $0x1e8] ss:$16 sps:$4 sm:$0xff]  }
  0x17   :  { %v997_v4 = vld [vmem:[%s1528_s1 + $0xc] sm:$0xf] }
  0x18   :  { %306 = vmatpush1.bf16.msra.mxu0 %v1077_v24  ;;  %347 = vmatpush1.bf16.msra.mxu1 %v1080_v25 }
  0x19   :  { %307 = vmatprep.subr.bf16.mxu0 %v1085_v26  ;;  %348 = vmatprep.subr.bf16.mxu1 %v1088_v27 }
  0x1c   :  { %308 = vmatpush1.bf16.msra.mxu0 %v1083_v28  ;;  %349 = vmatpush1.bf16.msra.mxu1 %v1086_v29 }
  0x1d   :  { %309 = vmatprep.subr.bf16.mxu0 %v1091_v30  ;;  %350 = vmatprep.subr.bf16.mxu1 %v1094_v31 }
  0x20   :  { %310 = vmatpush1.bf16.msra.mxu0 %v1089_v32  ;;  %351 = vmatpush1.bf16.msra.mxu1 %v1092_v33 }
  0x21   :  { %487 = vmatprep.subr.bf16.mxu0 %v1097_v34  ;;  %528 = vmatprep.subr.bf16.mxu1 %v1100_v35 }
  0x23   :  { %960 = vmatmul.mubr.msk.bf16.vlgmr.msra.gmra.mrb[4].mxu0 %vm115_vm0, %v927_v36  ;;  %961 = vmatmul.mubr.msk.bf16.vlgmr.msra.gmra.mrb[4].mxu1 %vm115_vm0, %v927_v36 }
  0x24   :  { %488 = vmatpush1.bf16.msra.mxu0 %v1095_v37  ;;  %529 = vmatpush1.bf16.msra.mxu1 %v1098_v38 }
  0x25   :  { %489 = vmatprep.subr.bf16.mxu0 %v1103_v39  ;;  %530 = vmatprep.subr.bf16.mxu1 %v1106_v40 }
  0x26   :  { %519 = vmatprep.mubr.bf16.mxu0 %v1145_v1  ;;  %560 = vmatprep.mubr.bf16.mxu1 %v1145_v1 }
  0x28   :  { %490 = vmatpush1.bf16.msra.mxu0 %v1101_v41  ;;  %531 = vmatpush1.bf16.msra.mxu1 %v1104_v42 }
  0x29   :  { %491 = vmatprep.subr.bf16.mxu0 %v1109_v43  ;;  %532 = vmatprep.subr.bf16.mxu1 %v1112_v44 }
  0x2c   :  { %492 = vmatpush1.bf16.msra.mxu0 %v1107_v45  ;;  %533 = vmatpush1.bf16.msra.mxu1 %v1110_v46 }
  0x2d   :  { %493 = vmatprep.subr.bf16.mxu0 %v1115_v47  ;;  %534 = vmatprep.subr.bf16.mxu1 %v1118_v48 }
  0x30   :  { %494 = vmatpush1.bf16.msra.mxu0 %v1113_v49  ;;  %535 = vmatpush1.bf16.msra.mxu1 %v1116_v50 }
  0x31   :  { %671 = vmatprep.subr.bf16.mxu0 %v1121_v51  ;;  %712 = vmatprep.subr.bf16.mxu1 %v1124_v52 }
  0x33   :  { %995 = vmatmul.mubr.msk.bf16.vlgmr.msra.gmra.mrb[8].mxu0 %vm115_vm0, %v962_v53  ;;  %996 = vmatmul.mubr.msk.bf16.vlgmr.msra.gmra.mrb[8].mxu1 %vm115_vm0, %v962_v53 }
  0x34   :  { %672 = vmatpush1.bf16.msra.mxu0 %v1119_v54  ;;  %713 = vmatpush1.bf16.msra.mxu1 %v1122_v55 }
  0x35   :  { %673 = vmatprep.subr.bf16.mxu0 %v1127_v56  ;;  %714 = vmatprep.subr.bf16.mxu1 %v1130_v57 }
  0x36   :  { %703 = vmatprep.mubr.bf16.mxu0 %v1145_v1  ;;  %744 = vmatprep.mubr.bf16.mxu1 %v1145_v1  ;;  %v1142_v1 = vld [vmem:[%s1527_s0 + $0x1ec] ss:$16 sps:$4 sm:$0xff]  }
  0x38   :  { %674 = vmatpush1.bf16.msra.mxu0 %v1125_v58  ;;  %715 = vmatpush1.bf16.msra.mxu1 %v1128_v59 }
  0x39   :  { %675 = vmatprep.subr.bf16.mxu0 %v1133_v60  ;;  %716 = vmatprep.subr.bf16.mxu1 %v1136_v61 }
  0x3c   :  { %676 = vmatpush1.bf16.msra.mxu0 %v1131_v62  ;;  %717 = vmatpush1.bf16.msra.mxu1 %v1134_v63 }
  0x3d   :  { %677 = vmatprep.subr.bf16.mxu0 %v1139_v0  ;;  %718 = vmatprep.subr.bf16.mxu1 %v1142_v1 }
  0x40   :  { %678 = vmatpush1.bf16.msra.mxu0 %v1137_v2  ;;  %719 = vmatpush1.bf16.msra.mxu1 %v1140_v3 }
  0x43   :  { %1030 = vmatmul.mubr.msk.bf16.vlgmr.msra.gmra.mrb[12].mxu0 %vm115_vm0, %v997_v4  ;;  %1031 = vmatmul.mubr.msk.bf16.vlgmr.msra.gmra.mrb[12].mxu1 %vm115_vm0, %v997_v4 }
  0xe6   :  { %v1393_v5 = vpop.f32.mrb[0].mxu0  ;;  %v1395_v6 = vpop.f32.mrb[0].mxu1 }
  0xe7   :  { %v1397_v7 = vpop.f32.mrb[1].mxu0  ;;  %v1399_v8 = vpop.f32.mrb[1].mxu1 }
  0xe8   :  { %v157_v9 = vpop.f32.mrb[2].mxu0  ;;  %v198_v10 = vpop.f32.mrb[2].mxu1 }
  0xe9   :  { %v158_v11 = vpop.f32.mrb[3].mxu0  ;;  %v199_v12 = vpop.f32.mrb[3].mxu1 }
  0xf6   :  { %v1401_v13 = vpop.f32.mrb[4].mxu0  ;;  %v1403_v14 = vpop.f32.mrb[4].mxu1 }
  0xf7   :  { %v753_v15 = vadd.f32 %v1401_v13, %v1393_v5  ;;  %v755_v16 = vadd.f32 %v1403_v14, %v1395_v6  ;;  %v1409_v17 = vpop.f32.mrb[5].mxu0  ;;  %v1411_v18 = vpop.f32.mrb[5].mxu1 }
  0xf8   :  { %v754_v19 = vadd.f32 %v1409_v17, %v1397_v7  ;;  %v756_v20 = vadd.f32 %v1411_v18, %v1399_v8  ;;  %v341_v21 = vpop.f32.mrb[6].mxu0  ;;  %v382_v22 = vpop.f32.mrb[6].mxu1 }
  0xf9   :  { %v342_v23 = vpop.f32.mrb[7].mxu0  ;;  %v383_v24 = vpop.f32.mrb[7].mxu1 }
 0x106   :  { %v1417_v25 = vpop.f32.mrb[8].mxu0  ;;  %v1419_v26 = vpop.f32.mrb[8].mxu1 }
 0x107   :  { %v757_v27 = vadd.f32 %v753_v15, %v1417_v25  ;;  %v759_v28 = vadd.f32 %v755_v16, %v1419_v26  ;;  %v1423_v29 = vpop.f32.mrb[9].mxu0  ;;  %v1425_v30 = vpop.f32.mrb[9].mxu1 }
 0x108   :  { %v758_v31 = vadd.f32 %v754_v19, %v1423_v29  ;;  %v760_v32 = vadd.f32 %v756_v20, %v1425_v30  ;;  %v525_v33 = vpop.f32.mrb[10].mxu0  ;;  %v566_v34 = vpop.f32.mrb[10].mxu1 }
 0x109   :  { %v526_v35 = vpop.f32.mrb[11].mxu0  ;;  %v567_v36 = vpop.f32.mrb[11].mxu1 }
 0x116   :  { %v1429_v37 = vpop.f32.mrb[12].mxu0  ;;  %v1431_v38 = vpop.f32.mrb[12].mxu1 }
 0x117   :  { %v761_v39 = vadd.f32 %v757_v27, %v1429_v37  ;;  %v763_v40 = vadd.f32 %v759_v28, %v1431_v38  ;;  %v1435_v41 = vpop.f32.mrb[13].mxu0  ;;  %v1437_v42 = vpop.f32.mrb[13].mxu1 }
 0x118   :  { %v762_v43 = vadd.f32 %v758_v31, %v1435_v41  ;;  %v709_v44 = vpop.f32.mrb[14].mxu0  ;;  %v750_v45 = vpop.f32.mrb[14].mxu1  ;;  %v764_v46 = vadd.f32 %v760_v32, %v1437_v42 }
 0x119   :  { %v710_v47 = vpop.f32.mrb[15].mxu0  ;;  %v751_v48 = vpop.f32.mrb[15].mxu1 }
 0x11a   :  { %v765_v49 = vadd.f32 %v762_v43, %v761_v39 }
 0x11c   :  { %v766_v50 = vadd.f32 %v765_v49, %v763_v40 }
 0x11e   :  { %v767_v51 = vadd.f32 %v766_v50, %v764_v46 }
 0x120   :  { %768 = vadd.xlane.f32.xlu0 %v767_v51 }
 0x1ad   :  { %v769_v52 = vpop.xlane.xlu0 %768 }
 0x1ae   :  { %v770_v53 = vmul.f32 0.00048828125, %v769_v52 }
 0x1b0   :  { %v771_v54 = vsub.f32 %v1393_v5, %v770_v53  ;;  %v772_v55 = vsub.f32 %v1397_v7, %v770_v53  ;;  %v773_v56 = vsub.f32 %v1395_v6, %v770_v53  ;;  %v774_v57 = vsub.f32 %v1399_v8, %v770_v53 }
 0x1b1   :  { %v779_v58 = vsub.f32 %v1401_v13, %v770_v53  ;;  %v780_v59 = vsub.f32 %v1409_v17, %v770_v53  ;;  %v781_v60 = vsub.f32 %v1403_v14, %v770_v53  ;;  %v782_v61 = vsub.f32 %v1411_v18, %v770_v53 }
 0x1b2   :  { %v775_v62 = vmul.f32 %v771_v54, %v771_v54  ;;  %v776_v63 = vmul.f32 %v772_v55, %v772_v55  ;;  %v777_v0 = vmul.f32 %v773_v56, %v773_v56  ;;  %v778_v1 = vmul.f32 %v774_v57, %v774_v57  ;;  %v823_v57 = vld [vmem:[%s1529_s2] sm:$0xff] }
 0x1b3   :  { %v783_v2 = vmul.f32 %v779_v58, %v779_v58  ;;  %v784_v3 = vmul.f32 %v780_v59, %v780_v59  ;;  %v785_v4 = vmul.f32 %v781_v60, %v781_v60  ;;  %v786_v9 = vmul.f32 %v782_v61, %v782_v61  ;;  %v825_v60 = vld [vmem:[%s1530_s3] sm:$0xff] }
 0x1b4   :  { %v791_v10 = vsub.f32 %v1417_v25, %v770_v53  ;;  %v792_v11 = vsub.f32 %v1423_v29, %v770_v53  ;;  %v793_v12 = vsub.f32 %v1419_v26, %v770_v53  ;;  %v794_v15 = vsub.f32 %v1425_v30, %v770_v53 }
 0x1b5   :  { %v787_v16 = vadd.f32 %v783_v2, %v775_v62  ;;  %v788_v19 = vadd.f32 %v784_v3, %v776_v63  ;;  %v789_v20 = vadd.f32 %v785_v4, %v777_v0  ;;  %v790_v21 = vadd.f32 %v786_v9, %v778_v1 }
 0x1b6   :  { %v795_v22 = vmul.f32 %v791_v10, %v791_v10  ;;  %v796_v23 = vmul.f32 %v792_v11, %v792_v11  ;;  %v797_v24 = vmul.f32 %v793_v12, %v793_v12  ;;  %v798_v27 = vmul.f32 %v794_v15, %v794_v15 }
 0x1b7   :  { %v803_v28 = vsub.f32 %v1429_v37, %v770_v53  ;;  %v804_v31 = vsub.f32 %v1435_v41, %v770_v53  ;;  %v805_v32 = vsub.f32 %v1431_v38, %v770_v53  ;;  %v806_v33 = vsub.f32 %v1437_v42, %v770_v53 }
 0x1b8   :  { %v799_v34 = vadd.f32 %v795_v22, %v787_v16  ;;  %v800_v35 = vadd.f32 %v796_v23, %v788_v19  ;;  %v801_v36 = vadd.f32 %v797_v24, %v789_v20  ;;  %v802_v39 = vadd.f32 %v798_v27, %v790_v21 }
 0x1b9   :  { %v807_v40 = vmul.f32 %v803_v28, %v803_v28  ;;  %v808_v43 = vmul.f32 %v804_v31, %v804_v31  ;;  %v809_v44 = vmul.f32 %v805_v32, %v805_v32  ;;  %v810_v45 = vmul.f32 %v806_v33, %v806_v33 }
 0x1bb   :  { %v811_v46 = vadd.f32 %v807_v40, %v799_v34  ;;  %v812_v47 = vadd.f32 %v808_v43, %v800_v35  ;;  %v813_v48 = vadd.f32 %v809_v44, %v801_v36  ;;  %v814_v49 = vadd.f32 %v810_v45, %v802_v39 }
 0x1bd   :  { %v815_v50 = vadd.f32 %v812_v47, %v811_v46 }
 0x1bf   :  { %v816_v51 = vadd.f32 %v815_v50, %v813_v48 }
 0x1c1   :  { %v817_v52 = vadd.f32 %v816_v51, %v814_v49 }
 0x1c3   :  { %818 = vadd.xlane.f32.xlu0 %v817_v52 }
 0x250   :  { %v819_v54 = vpop.xlane.xlu0 %818 }
 0x251   :  { %v820_v55 = vmul.f32 0.00048828125, %v819_v54 }
 0x253   :  { %v821_v56 = vadd.f32 1e-05, %v820_v55 }
 0x255   :  { %1143 = vrsqrt.f32 %v821_v56 }
 0x25f   :  { %v1144_v58 = vpop.eup %1143 }
 0x260   :  { %v824_v59 = vmul.f32 %v1144_v58, %v823_v57 }
 0x262   :  { %830 = vperm.xlu1 %1045, %v824_v59   ;;  %v826_v61 = vmul.f32 %v824_v59, %v770_v53 }
 0x264   :  { %v827_v62 = vsub.f32 %v825_v60, %v826_v61 }
 0x266   :  { %839 = vperm.xlu1 %1045, %v827_v62  }
 0x2e1   :  { %v831_v63 = vpop.permute.xlu1 %830 }
 0x2e2   :  { %v833_v0 = vmul.f32 %v831_v63, %v1393_v5  ;;  %v834_v1 = vmul.f32 %v831_v63, %v1397_v7  ;;  %v835_v2 = vmul.f32 %v831_v63, %v1395_v6  ;;  %v836_v3 = vmul.f32 %v831_v63, %v1399_v8 }
 0x2e3   :  { %v854_v4 = vmul.f32 %v831_v63, %v1401_v13  ;;  %v855_v9 = vmul.f32 %v831_v63, %v1409_v17  ;;  %v856_v10 = vmul.f32 %v831_v63, %v1403_v14  ;;  %v857_v11 = vmul.f32 %v831_v63, %v1411_v18 }
 0x2e4   :  { %v871_v53 = vmul.f32 %v831_v63, %v1417_v25  ;;  %v872_v12 = vmul.f32 %v831_v63, %v1423_v29  ;;  %v873_v5 = vmul.f32 %v831_v63, %v1419_v26  ;;  %v874_v7 = vmul.f32 %v831_v63, %v1425_v30 }
 0x2e5   :  { %v888_v6 = vmul.f32 %v831_v63, %v1429_v37  ;;  %v889_v8 = vmul.f32 %v831_v63, %v1435_v41  ;;  %v890_v13 = vmul.f32 %v831_v63, %v1431_v38  ;;  %v891_v17 = vmul.f32 %v831_v63, %v1437_v42  ;;  %v840_v15 = vpop.permute.xlu1 %839 }
 0x2e6   :  { %v842_v14 = vadd.f32 %v840_v15, %v833_v0  ;;  %v843_v16 = vadd.f32 %v840_v15, %v834_v1  ;;  %v844_v18 = vadd.f32 %v840_v15, %v835_v2  ;;  %v845_v19 = vadd.f32 %v840_v15, %v836_v3 }
 0x2e7   :  { %v858_v25 = vadd.f32 %v854_v4, %v840_v15  ;;  %v859_v20 = vadd.f32 %v855_v9, %v840_v15  ;;  %v860_v29 = vadd.f32 %v856_v10, %v840_v15  ;;  %v861_v21 = vadd.f32 %v857_v11, %v840_v15 }
 0x2e8   :  { %v846_v26 = vmax.f32 %v842_v14, 0.0  ;;  %v847_v22 = vmax.f32 %v843_v16, 0.0  ;;  %v848_v30 = vmax.f32 %v844_v18, 0.0  ;;  %v849_v23 = vmax.f32 %v845_v19, 0.0 }
 0x2e9   :  { %v862_v37 = vmax.f32 %v858_v25, 0.0  ;;  %v863_v24 = vmax.f32 %v859_v20, 0.0  ;;  %v864_v41 = vmax.f32 %v860_v29, 0.0  ;;  %v865_v27 = vmax.f32 %v861_v21, 0.0 }
 0x2ea   :  { %850 = vst [vmem:[%s1531_s4] sm:$0xff] %v846_v26  ;;  %851 = vst [vmem:[%s1531_s4 + $0x8] sm:$0xff] %v847_v22  ;;  %v875_v38 = vadd.f32 %v871_v53, %v840_v15  ;;  %v876_v42 = vadd.f32 %v872_v12, %v840_v15  ;;  %v877_v28 = vadd.f32 %v873_v5, %v840_v15 }
 0x2eb   :  { %852 = vst [vmem:[%s1531_s4 + $0x10] sm:$0xff] %v848_v30  ;;  %853 = vst [vmem:[%s1531_s4 + $0x18] sm:$0xff] %v849_v23  ;;  %v878_v31 = vadd.f32 %v874_v7, %v840_v15  ;;  %v892_v32 = vadd.f32 %v888_v6, %v840_v15  ;;  %v893_v33 = vadd.f32 %v889_v8, %v840_v15 }
 0x2ec   :  { %1032 = vst [vmem:[%s1531_s4 + $0x20] sm:$0xff] %v862_v37  ;;  %1033 = vst [vmem:[%s1531_s4 + $0x28] sm:$0xff] %v863_v24  ;;  %v894_v34 = vadd.f32 %v890_v13, %v840_v15  ;;  %v895_v35 = vadd.f32 %v891_v17, %v840_v15  ;;  %v879_v36 = vmax.f32 %v875_v38, 0.0  ;;  %v880_v39 = vmax.f32 %v876_v42, 0.0 }
 0x2ed   :  { %1034 = vst [vmem:[%s1531_s4 + $0x30] sm:$0xff] %v864_v41  ;;  %1035 = vst [vmem:[%s1531_s4 + $0x38] sm:$0xff] %v865_v27  ;;  %v881_v40 = vmax.f32 %v877_v28, 0.0  ;;  %v882_v43 = vmax.f32 %v878_v31, 0.0  ;;  %v896_v44 = vmax.f32 %v892_v32, 0.0  ;;  %v897_v45 = vmax.f32 %v893_v33, 0.0 }
 0x2ee   :  { %v898_v46 = vmax.f32 %v894_v34, 0.0  ;;  %v899_v47 = vmax.f32 %v895_v35, 0.0  ;;  %1036 = vst [vmem:[%s1531_s4 + $0x40] sm:$0xff] %v879_v36  ;;  %1037 = vst [vmem:[%s1531_s4 + $0x48] sm:$0xff] %v880_v39 }
 0x2ef   :  { %1038 = vst [vmem:[%s1531_s4 + $0x50] sm:$0xff] %v881_v40  ;;  %1039 = vst [vmem:[%s1531_s4 + $0x58] sm:$0xff] %v882_v43 }
 0x2f0   :  { %1040 = vst [vmem:[%s1531_s4 + $0x60] sm:$0xff] %v896_v44  ;;  %1041 = vst [vmem:[%s1531_s4 + $0x68] sm:$0xff] %v897_v45 }
 0x2f1   :  { %1042 = vst [vmem:[%s1531_s4 + $0x70] sm:$0xff] %v898_v46  ;;  %1043 = vst [vmem:[%s1531_s4 + $0x78] sm:$0xff] %v899_v47 }

// kernel: generator_forward.9
= control target key start
LH: loop header
LB: loop body
LE: loop exit
PB: predicated region body
PF: predicated region fallthrough
CT: control target
= control target key end

     0   :  { %s1867_s9 = smov 0   ;;  %s1869_s10 = smov 0   ;;  %s2207_s0 = inlined_call_operand.vmem [shape: bf16[4,32,2048], index: 0, kind: input, shape index: {}]   ;;  %s2208_s1 = inlined_call_operand.vmem [shape: bf16[4,4,32], index: 1, kind: input, shape index: {}]   ;;  %s2209_s2 = inlined_call_operand.vmem [shape: f32[4,4,2048], index: 2, kind: output, shape index: {}]  }
   0x1   :  { %s1871_s11 = smov 0  }
   0x2 LB: > { %s1578_s12 = sadd.s32 4294967295, %s1849_s11   ;;  %s1884_s13 = sadd.s32 1, %s1849_s11   ;;  %s1849_s11 = sphi %s1871_s11, %s2213_s11   ;;  %s1845_s10 = sphi %s1869_s10, %s2212_s10   ;;  %s1841_s9 = sphi %s1867_s9, %s2211_s9  }
   0x3   : > { %s16_s14 = ssub.s32 %s1849_s11, %s1884_s13  ;;  %s19_s15 = sadd.s32 1, %s1845_s10 }
   0x4   : > { %p17_p0 = scmp.eq.s32.totalorder %s16_s14, 0  ;;  %p26_p1 = scmp.ne.s32.totalorder %s1845_s10, %s1841_s9 }
   0x5   : > { %p27_p2 = scmp.eq.s32.totalorder %s1849_s11, 0  ;;  %p77_p3 = scmp.eq.s32.totalorder %s1578_s12, 1 }
   0x6   : > { %s1895_s16 = scalar_select %p17_p0, %s1845_s10, %s19_s15  }
   0x7   : > { %p28_p4 = por %p27_p2, %p26_p1  ;;  %p1897_p5 = por %p77_p3, %p26_p1 }
   0x8   : > { %p1581_p6 = scmp.ge.s32.totalorder %s1849_s11, 2 }
   0xa   : > { %102 = sbr.rel (%p1581_p6) target bundleno = 53 (0x35), region = 20 }
  0x11   : > { %105 = sbr.rel (!%p28_p4) target bundleno = 53 (0x35), region = 24  ;;  %s107_s18 = sand.u32 (%p28_p4), 1, %s1845_s10  }
  0x12   : > { %s1736_s19 = sshll.u32 (%p28_p4), %s1849_s11, 5  ;;  %s1582_s20 = sshll.u32 (%p28_p4), %s107_s18, 9 }
  0x13   : > { %s1907_s23 = scalar_lea.vmem (%p28_p4), %s2207_s0, %s1736_s19  ;;  %s1912_s24 = scalar_lea.vmem (%p28_p4), [#allocation2], %s1582_s20 }
  0x14   : > { %v125_v0 = vld [vmem:[%s1907_s23] sm:$0xff] (%p28_p4)  ;;  %v127_v1 = vld [vmem:[%s1907_s23 + $0x8] sm:$0xff] (%p28_p4)  ;;  %v129_v2 = vld [vmem:[%s1907_s23 + $0x10] sm:$0xff] (%p28_p4) }
  0x15   : > { %126 = vst [vmem:[%s1912_s24] sm:$0xff] (%p28_p4), %v125_v0  ;;  %128 = vst [vmem:[%s1912_s24 + $0x8] sm:$0xff] (%p28_p4), %v127_v1  ;;  %v131_v3 = vld [vmem:[%s1907_s23 + $0x18] sm:$0xff] (%p28_p4)  ;;  %v133_v4 = vld [vmem:[%s1907_s23 + $0x40] sm:$0xff] (%p28_p4) }
  0x16   : > { %130 = vst [vmem:[%s1912_s24 + $0x10] sm:$0xff] (%p28_p4), %v129_v2  ;;  %v135_v5 = vld [vmem:[%s1907_s23 + $0x48] sm:$0xff] (%p28_p4)  ;;  %132 = vst [vmem:[%s1912_s24 + $0x18] sm:$0xff] (%p28_p4), %v131_v3  ;;  %v137_v6 = vld [vmem:[%s1907_s23 + $0x50] sm:$0xff] (%p28_p4) }
  0x17   : > { %134 = vst [vmem:[%s1912_s24 + $0x20] sm:$0xff] (%p28_p4), %v133_v4  ;;  %136 = vst [vmem:[%s1912_s24 + $0x28] sm:$0xff] (%p28_p4), %v135_v5  ;;  %v139_v7 = vld [vmem:[%s1907_s23 + $0x58] sm:$0xff] (%p28_p4)  ;;  %v141_v8 = vld [vmem:[%s1907_s23 + $0x80] sm:$0xff] (%p28_p4) }
  0x18   : > { %138 = vst [vmem:[%s1912_s24 + $0x30] sm:$0xff] %v137_v6  ;;  %140 = vst [vmem:[%s1912_s24 + $0x38] sm:$0xff] %v139_v7  ;;  %v143_v9 = vld [vmem:[%s1907_s23 + $0x88] sm:$0xff]  ;;  %v145_v10 = vld [vmem:[%s1907_s23 + $0x90] sm:$0xff] }
  0x19   : > { %142 = vst [vmem:[%s1912_s24 + $0x40] sm:$0xff] %v141_v8  ;;  %v147_v11 = vld [vmem:[%s1907_s23 + $0x98] sm:$0xff]  ;;  %144 = vst [vmem:[%s1912_s24 + $0x48] sm:$0xff] %v143_v9  ;;  %v149_v12 = vld [vmem:[%s1907_s23 + $0xc0] sm:$0xff] }
  0x1a   : > { %146 = vst [vmem:[%s1912_s24 + $0x50] sm:$0xff] %v145_v10  ;;  %148 = vst [vmem:[%s1912_s24 + $0x58] sm:$0xff] %v147_v11  ;;  %v151_v13 = vld [vmem:[%s1907_s23 + $0xc8] sm:$0xff]  ;;  %v153_v14 = vld [vmem:[%s1907_s23 + $0xd0] sm:$0xff] }
  0x1b   : > { %150 = vst [vmem:[%s1912_s24 + $0x60] sm:$0xff] %v149_v12  ;;  %152 = vst [vmem:[%s1912_s24 + $0x68] sm:$0xff] %v151_v13  ;;  %v155_v15 = vld [vmem:[%s1907_s23 + $0xd8] sm:$0xff]  ;;  %v157_v16 = vld [vmem:[%s1907_s23 + $0x100] sm:$0xff] }
  0x1c   : > { %154 = vst [vmem:[%s1912_s24 + $0x70] sm:$0xff] %v153_v14  ;;  %v159_v17 = vld [vmem:[%s1907_s23 + $0x108] sm:$0xff]  ;;  %156 = vst [vmem:[%s1912_s24 + $0x78] sm:$0xff] %v155_v15  ;;  %v161_v18 = vld [vmem:[%s1907_s23 + $0x110] sm:$0xff] }
  0x1d   : > { %158 = vst [vmem:[%s1912_s24 + $0x80] sm:$0xff] %v157_v16  ;;  %160 = vst [vmem:[%s1912_s24 + $0x88] sm:$0xff] %v159_v17  ;;  %v163_v19 = vld [vmem:[%s1907_s23 + $0x118] sm:$0xff]  ;;  %v165_v20 = vld [vmem:[%s1907_s23 + $0x140] sm:$0xff] }
  0x1e   : > { %162 = vst [vmem:[%s1912_s24 + $0x90] sm:$0xff] %v161_v18  ;;  %164 = vst [vmem:[%s1912_s24 + $0x98] sm:$0xff] %v163_v19  ;;  %v167_v21 = vld [vmem:[%s1907_s23 + $0x148] sm:$0xff]  ;;  %v169_v22 = vld [vmem:[%s1907_s23 + $0x150] sm:$0xff] }
  0x1f   : > { %166 = vst [vmem:[%s1912_s24 + $0xa0] sm:$0xff] %v165_v20  ;;  %v171_v23 = vld [vmem:[%s1907_s23 + $0x158] sm:$0xff]  ;;  %168 = vst [vmem:[%s1912_s24 + $0xa8] sm:$0xff] %v167_v21  ;;  %v173_v24 = vld [vmem:[%s1907_s23 + $0x180] sm:$0xff] }
  0x20   : > { %170 = vst [vmem:[%s1912_s24 + $0xb0] sm:$0xff] %v169_v22  ;;  %172 = vst [vmem:[%s1912_s24 + $0xb8] sm:$0xff] %v171_v23  ;;  %v175_v25 = vld [vmem:[%s1907_s23 + $0x188] sm:$0xff]  ;;  %v177_v26 = vld [vmem:[%s1907_s23 + $0x190] sm:$0xff] }
  0x21   : > { %174 = vst [vmem:[%s1912_s24 + $0xc0] sm:$0xff] %v173_v24  ;;  %176 = vst [vmem:[%s1912_s24 + $0xc8] sm:$0xff] %v175_v25  ;;  %v179_v27 = vld [vmem:[%s1907_s23 + $0x198] sm:$0xff]  ;;  %v181_v28 = vld [vmem:[%s1907_s23 + $0x1c0] sm:$0xff] }
  0x22   : > { %178 = vst [vmem:[%s1912_s24 + $0xd0] sm:$0xff] %v177_v26  ;;  %v183_v29 = vld [vmem:[%s1907_s23 + $0x1c8] sm:$0xff]  ;;  %180 = vst [vmem:[%s1912_s24 + $0xd8] sm:$0xff] %v179_v27  ;;  %v185_v30 = vld [vmem:[%s1907_s23 + $0x1d0] sm:$0xff] }
  0x23   : > { %182 = vst [vmem:[%s1912_s24 + $0xe0] sm:$0xff] %v181_v28  ;;  %184 = vst [vmem:[%s1912_s24 + $0xe8] sm:$0xff] %v183_v29  ;;  %v187_v31 = vld [vmem:[%s1907_s23 + $0x1d8] sm:$0xff]  ;;  %v189_v32 = vld [vmem:[%s1907_s23 + $0x200] sm:$0xff] }
  0x24   : > { %186 = vst [vmem:[%s1912_s24 + $0xf0] sm:$0xff] %v185_v30  ;;  %188 = vst [vmem:[%s1912_s24 + $0xf8] sm:$0xff] %v187_v31  ;;  %v191_v33 = vld [vmem:[%s1907_s23 + $0x208] sm:$0xff]  ;;  %v193_v34 = vld [vmem:[%s1907_s23 + $0x210] sm:$0xff] }
  0x25   : > { %190 = vst [vmem:[%s1912_s24 + $0x100] sm:$0xff] %v189_v32  ;;  %v195_v35 = vld [vmem:[%s1907_s23 + $0x218] sm:$0xff]  ;;  %192 = vst [vmem:[%s1912_s24 + $0x108] sm:$0xff] %v191_v33  ;;  %v197_v36 = vld [vmem:[%s1907_s23 + $0x240] sm:$0xff] }
  0x26   : > { %194 = vst [vmem:[%s1912_s24 + $0x110] sm:$0xff] %v193_v34  ;;  %196 = vst [vmem:[%s1912_s24 + $0x118] sm:$0xff] %v195_v35  ;;  %v199_v37 = vld [vmem:[%s1907_s23 + $0x248] sm:$0xff]  ;;  %v201_v38 = vld [vmem:[%s1907_s23 + $0x250] sm:$0xff] }
  0x27   : > { %198 = vst [vmem:[%s1912_s24 + $0x120] sm:$0xff] %v197_v36  ;;  %200 = vst [vmem:[%s1912_s24 + $0x128] sm:$0xff] %v199_v37  ;;  %v203_v39 = vld [vmem:[%s1907_s23 + $0x258] sm:$0xff]  ;;  %v205_v40 = vld [vmem:[%s1907_s23 + $0x280] sm:$0xff] }
  0x28   : > { %202 = vst [vmem:[%s1912_s24 + $0x130] sm:$0xff] %v201_v38  ;;  %v207_v41 = vld [vmem:[%s1907_s23 + $0x288] sm:$0xff]  ;;  %204 = vst [vmem:[%s1912_s24 + $0x138] sm:$0xff] %v203_v39  ;;  %v209_v42 = vld [vmem:[%s1907_s23 + $0x290] sm:$0xff] }
  0x29   : > { %206 = vst [vmem:[%s1912_s24 + $0x140] sm:$0xff] %v205_v40  ;;  %208 = vst [vmem:[%s1912_s24 + $0x148] sm:$0xff] %v207_v41  ;;  %v211_v43 = vld [vmem:[%s1907_s23 + $0x298] sm:$0xff]  ;;  %v213_v44 = vld [vmem:[%s1907_s23 + $0x2c0] sm:$0xff] }
  0x2a   : > { %210 = vst [vmem:[%s1912_s24 + $0x150] sm:$0xff] %v209_v42  ;;  %212 = vst [vmem:[%s1912_s24 + $0x158] sm:$0xff] %v211_v43  ;;  %v215_v45 = vld [vmem:[%s1907_s23 + $0x2c8] sm:$0xff]  ;;  %v217_v46 = vld [vmem:[%s1907_s23 + $0x2d0] sm:$0xff] }
  0x2b   : > { %214 = vst [vmem:[%s1912_s24 + $0x160] sm:$0xff] %v213_v44  ;;  %v219_v47 = vld [vmem:[%s1907_s23 + $0x2d8] sm:$0xff]  ;;  %216 = vst [vmem:[%s1912_s24 + $0x168] sm:$0xff] %v215_v45  ;;  %v221_v48 = vld [vmem:[%s1907_s23 + $0x300] sm:$0xff] }
  0x2c   : > { %218 = vst [vmem:[%s1912_s24 + $0x170] sm:$0xff] %v217_v46  ;;  %220 = vst [vmem:[%s1912_s24 + $0x178] sm:$0xff] %v219_v47  ;;  %v223_v49 = vld [vmem:[%s1907_s23 + $0x308] sm:$0xff]  ;;  %v225_v50 = vld [vmem:[%s1907_s23 + $0x310] sm:$0xff] }
  0x2d   : > { %222 = vst [vmem:[%s1912_s24 + $0x180] sm:$0xff] %v221_v48  ;;  %224 = vst [vmem:[%s1912_s24 + $0x188] sm:$0xff] %v223_v49  ;;  %v227_v51 = vld [vmem:[%s1907_s23 + $0x318] sm:$0xff]  ;;  %v229_v52 = vld [vmem:[%s1907_s23 + $0x340] sm:$0xff] }
  0x2e   : > { %226 = vst [vmem:[%s1912_s24 + $0x190] sm:$0xff] %v225_v50  ;;  %v231_v53 = vld [vmem:[%s1907_s23 + $0x348] sm:$0xff]  ;;  %228 = vst [vmem:[%s1912_s24 + $0x198] sm:$0xff] %v227_v51  ;;  %v233_v54 = vld [vmem:[%s1907_s23 + $0x350] sm:$0xff] }
  0x2f   : > { %230 = vst [vmem:[%s1912_s24 + $0x1a0] sm:$0xff] %v229_v52  ;;  %232 = vst [vmem:[%s1912_s24 + $0x1a8] sm:$0xff] %v231_v53  ;;  %v235_v55 = vld [vmem:[%s1907_s23 + $0x358] sm:$0xff]  ;;  %v237_v56 = vld [vmem:[%s1907_s23 + $0x380] sm:$0xff] }
  0x30   : > { %234 = vst [vmem:[%s1912_s24 + $0x1b0] sm:$0xff] %v233_v54  ;;  %236 = vst [vmem:[%s1912_s24 + $0x1b8] sm:$0xff] %v235_v55  ;;  %v239_v57 = vld [vmem:[%s1907_s23 + $0x388] sm:$0xff]  ;;  %v241_v58 = vld [vmem:[%s1907_s23 + $0x390] sm:$0xff] }
  0x31   : > { %238 = vst [vmem:[%s1912_s24 + $0x1c0] sm:$0xff] %v237_v56  ;;  %v243_v59 = vld [vmem:[%s1907_s23 + $0x398] sm:$0xff]  ;;  %240 = vst [vmem:[%s1912_s24 + $0x1c8] sm:$0xff] %v239_v57  ;;  %v245_v60 = vld [vmem:[%s1907_s23 + $0x3c0] sm:$0xff] }
  0x32   : > { %242 = vst [vmem:[%s1912_s24 + $0x1d0] sm:$0xff] %v241_v58  ;;  %244 = vst [vmem:[%s1912_s24 + $0x1d8] sm:$0xff] %v243_v59  ;;  %v247_v61 = vld [vmem:[%s1907_s23 + $0x3c8] sm:$0xff]  ;;  %v249_v62 = vld [vmem:[%s1907_s23 + $0x3d0] sm:$0xff] }
  0x33   : > { %246 = vst [vmem:[%s1912_s24 + $0x1e0] sm:$0xff] %v245_v60  ;;  %248 = vst [vmem:[%s1912_s24 + $0x1e8] sm:$0xff] %v247_v61  ;;  %v251_v63 = vld [vmem:[%s1907_s23 + $0x3d8] sm:$0xff] }
  0x34   : > { %250 = vst [vmem:[%s1912_s24 + $0x1f0] sm:$0xff] %v249_v62  ;;  %252 = vst [vmem:[%s1912_s24 + $0x1f8] sm:$0xff] %v251_v63 }
  0x35 PF: > { %p1585_p7 = scmp.ge.s32.totalorder %s1849_s11, 1  ;;  %p257_p8 = scmp.lt.s32.totalorder %s1849_s11, 3 }
  0x37   : > { %p258_p9 = pnand %p1585_p7, %p257_p8 }
  0x38   : > { %s264_s25 = sand.u32 (!%p258_p9), 1, %s1841_s9   ;;  %v1851_v0 = vmov (!%p258_p9), 0   ;;  %v287_v27 = vld [vmem:[%s2208_s1] sm:$0x3] (!%p258_p9)  ;;  %vm384_vm0 = vcmask (!%p258_p9), 261120  }
  0x39   : > { %261 = sbr.rel (%p258_p9) target bundleno = 364 (0x16c), region = 47  ;;  %s1586_s26 = sshll.u32 (!%p258_p9), %s264_s25, 9  ;;  %420 = vmatprep.mubr.bf16.mxu0 (!%p258_p9), %v1851_v0  ;;  %461 = vmatprep.mubr.bf16.mxu1 (!%p258_p9), %v1851_v0  ;;  %v1608_v60 = vld [vmem:[%s2208_s1 + $0x2] sm:$0x3] (!%p258_p9) }
  0x3a   : > { %s2046_s27 = scalar_lea.vmem (!%p258_p9), [#allocation2], %s1586_s26  ;;  %s1587_s8 = sshll.u32 (!%p258_p9), %s264_s25, 7 }
  0x3b   : > { %v288_v1 = vld [vmem:[%s2046_s27] sm:$0xff] (!%p258_p9)  ;;  %v289_v3 = vld [vmem:[%s2046_s27 + $0x8] sm:$0xff] (!%p258_p9)  ;;  %v290_v14 = vld [vmem:[%s2046_s27 + $0x10] sm:$0xff] (!%p258_p9)  ;;  %s2156_s14 = scalar_lea.vmem (!%p258_p9), [#allocation3], %s1587_s8 }
  0x3c   : > { %v292_v2 = vld [vmem:[%s2046_s27 + $0x20] sm:$0xff] (!%p258_p9)  ;;  %v293_v5 = vld [vmem:[%s2046_s27 + $0x28] sm:$0xff] (!%p258_p9)  ;;  %v294_v16 = vld [vmem:[%s2046_s27 + $0x30] sm:$0xff] (!%p258_p9) }
  0x3d   : > { %v1589_v4 = vcombine.high (!%p258_p9), %v288_v1, %v292_v2  ;;  %v1588_v6 = vcombine.low (!%p258_p9), %v288_v1, %v292_v2  ;;  %v296_v7 = vld [vmem:[%s2046_s27 + $0x40] sm:$0xff] (!%p258_p9)  ;;  %v1591_v9 = vcombine.high (!%p258_p9), %v289_v3, %v293_v5  ;;  %v1590_v10 = vcombine.low (!%p258_p9), %v289_v3, %v293_v5  ;;  %v297_v12 = vld [vmem:[%s2046_s27 + $0x48] sm:$0xff] (!%p258_p9)  ;;  %v291_v17 = vld [vmem:[%s2046_s27 + $0x18] sm:$0xff] (!%p258_p9) }
  0x3e   : > { %v300_v8 = vld [vmem:[%s2046_s27 + $0x60] sm:$0xff] (!%p258_p9)  ;;  %v301_v13 = vld [vmem:[%s2046_s27 + $0x68] sm:$0xff] (!%p258_p9)  ;;  %v295_v18 = vld [vmem:[%s2046_s27 + $0x38] sm:$0xff] (!%p258_p9)  ;;  %v1593_v21 = vcombine.high (!%p258_p9), %v290_v14, %v294_v16  ;;  %v1592_v28 = vcombine.low (!%p258_p9), %v290_v14, %v294_v16 }
  0x3f   : > { %v1597_v11 = vcombine.high (!%p258_p9), %v296_v7, %v300_v8  ;;  %388 = vmatprep.subr.bf16.mxu0 (!%p258_p9), %v1589_v4  ;;  %v1599_v15 = vcombine.high (!%p258_p9), %v297_v12, %v301_v13  ;;  %429 = vmatprep.subr.bf16.mxu1 (!%p258_p9), %v1591_v9  ;;  %v1596_v19 = vcombine.low (!%p258_p9), %v296_v7, %v300_v8  ;;  %v298_v23 = vld [vmem:[%s2046_s27 + $0x50] sm:$0xff] (!%p258_p9)  ;;  %v299_v25 = vld [vmem:[%s2046_s27 + $0x58] sm:$0xff] (!%p258_p9)  ;;  %v1609_v32 = vld [vmem:[%s2046_s27 + $0x80] sm:$0xff] (!%p258_p9) }
  0x40   : > { %389 = vmatpush1.bf16.msra.mxu0 %v1588_v6  ;;  %430 = vmatpush1.bf16.msra.mxu1 %v1590_v10  ;;  %v1598_v20 = vcombine.low %v297_v12, %v301_v13  ;;  %v1595_v22 = vcombine.high %v291_v17, %v295_v18  ;;  %v302_v24 = vld [vmem:[%s2046_s27 + $0x70] sm:$0xff]  ;;  %v303_v26 = vld [vmem:[%s2046_s27 + $0x78] sm:$0xff]  ;;  %v1594_v29 = vcombine.low %v291_v17, %v295_v18  ;;  %v1613_v33 = vld [vmem:[%s2046_s27 + $0xa0] sm:$0xff]  ;;  %s1737_s9 = sshll.u32 (%p1897_p5), %s1578_s12, 5 }
  0x41   : > { %390 = vmatprep.subr.bf16.mxu0 %v1597_v11  ;;  %431 = vmatprep.subr.bf16.mxu1 %v1599_v15  ;;  %v1601_v30 = vcombine.high %v298_v23, %v302_v24  ;;  %v1603_v31 = vcombine.high %v299_v25, %v303_v26  ;;  %v1610_v34 = vld [vmem:[%s2046_s27 + $0x88] sm:$0xff]  ;;  %v1600_v36 = vcombine.low %v298_v23, %v302_v24  ;;  %v1617_v40 = vld [vmem:[%s2046_s27 + $0xc0] sm:$0xff]  ;;  %v1611_v48 = vld [vmem:[%s2046_s27 + $0x90] sm:$0xff]  ;;  %s1474_s17 = scalar_lea.vmem (%p1897_p5), %s2209_s2, %s1737_s9 }
  0x42   : > { %v1614_v35 = vld [vmem:[%s2046_s27 + $0xa8] sm:$0xff]  ;;  %v1602_v37 = vcombine.low %v299_v25, %v303_v26  ;;  %v1626_v38 = vcombine.high %v1609_v32, %v1613_v33  ;;  %v1621_v41 = vld [vmem:[%s2046_s27 + $0xe0] sm:$0xff]  ;;  %v1625_v44 = vcombine.low %v1609_v32, %v1613_v33  ;;  %v1615_v49 = vld [vmem:[%s2046_s27 + $0xb0] sm:$0xff] }
  0x43   : > { %v1628_v39 = vcombine.high %v1610_v34, %v1614_v35  ;;  %v1618_v42 = vld [vmem:[%s2046_s27 + $0xc8] sm:$0xff]  ;;  %v1627_v45 = vcombine.low %v1610_v34, %v1614_v35  ;;  %v1634_v46 = vcombine.high %v1617_v40, %v1621_v41  ;;  %v1612_v50 = vld [vmem:[%s2046_s27 + $0x98] sm:$0xff]  ;;  %v1633_v52 = vcombine.low %v1617_v40, %v1621_v41  ;;  %v1619_v56 = vld [vmem:[%s2046_s27 + $0xd0] sm:$0xff] }
  0x44   : > { %391 = vmatpush1.bf16.msra.mxu0 %v1596_v19  ;;  %432 = vmatpush1.bf16.msra.mxu1 %v1598_v20  ;;  %v1622_v43 = vld [vmem:[%s2046_s27 + $0xe8] sm:$0xff]  ;;  %v1616_v51 = vld [vmem:[%s2046_s27 + $0xb8] sm:$0xff]  ;;  %v1630_v54 = vcombine.high %v1611_v48, %v1615_v49  ;;  %v1623_v57 = vld [vmem:[%s2046_s27 + $0xf0] sm:$0xff]  ;;  %v1629_v61 = vcombine.low %v1611_v48, %v1615_v49 }
  0x45   : > { %470 = vmatprep.subr.bf16.mxu0 %v1593_v21  ;;  %511 = vmatprep.subr.bf16.mxu1 %v1595_v22  ;;  %v1636_v47 = vcombine.high %v1618_v42, %v1622_v43  ;;  %v1635_v53 = vcombine.low %v1618_v42, %v1622_v43  ;;  %v1632_v55 = vcombine.high %v1612_v50, %v1616_v51  ;;  %v1620_v58 = vld [vmem:[%s2046_s27 + $0xd8] sm:$0xff]  ;;  %v1650_v2 = vld [vmem:[%s2046_s27 + $0x100] sm:$0xff]  ;;  %v1651_v4 = vld [vmem:[%s2046_s27 + $0x108] sm:$0xff] }
  0x46   : > { %v1624_v59 = vld [vmem:[%s2046_s27 + $0xf8] sm:$0xff]  ;;  %v1631_v62 = vcombine.low %v1612_v50, %v1616_v51  ;;  %v1638_v63 = vcombine.high %v1619_v56, %v1623_v57  ;;  %v1654_v3 = vld [vmem:[%s2046_s27 + $0x120] sm:$0xff]  ;;  %v1655_v5 = vld [vmem:[%s2046_s27 + $0x128] sm:$0xff]  ;;  %v1637_v6 = vcombine.low %v1619_v56, %v1623_v57 }
  0x47   : > { %1604 = vmatmul.mubr.msk.bf16.vlgmr.msra.gmra.mrb[0].mxu0 %vm384_vm0, %v287_v27  ;;  %1605 = vmatmul.mubr.msk.bf16.vlgmr.msra.gmra.mrb[0].mxu1 %vm384_vm0, %v287_v27  ;;  %v1640_v1 = vcombine.high %v1620_v58, %v1624_v59  ;;  %v1639_v7 = vcombine.low %v1620_v58, %v1624_v59  ;;  %v1667_v8 = vcombine.high %v1650_v2, %v1654_v3  ;;  %v1658_v10 = vld [vmem:[%s2046_s27 + $0x140] sm:$0xff]  ;;  %v1659_v12 = vld [vmem:[%s2046_s27 + $0x148] sm:$0xff]  ;;  %v1652_v18 = vld [vmem:[%s2046_s27 + $0x110] sm:$0xff] }
  0x48   : > { %471 = vmatpush1.bf16.msra.mxu0 %v1592_v28  ;;  %512 = vmatpush1.bf16.msra.mxu1 %v1594_v29  ;;  %v1669_v9 = vcombine.high %v1651_v4, %v1655_v5  ;;  %v1662_v11 = vld [vmem:[%s2046_s27 + $0x160] sm:$0xff]  ;;  %v1663_v13 = vld [vmem:[%s2046_s27 + $0x168] sm:$0xff]  ;;  %v1666_v14 = vcombine.low %v1650_v2, %v1654_v3  ;;  %v1668_v15 = vcombine.low %v1651_v4, %v1655_v5  ;;  %v1656_v19 = vld [vmem:[%s2046_s27 + $0x130] sm:$0xff] }
  0x49   : > { %472 = vmatprep.subr.bf16.mxu0 %v1601_v30  ;;  %513 = vmatprep.subr.bf16.mxu1 %v1603_v31  ;;  %v1675_v16 = vcombine.high %v1658_v10, %v1662_v11  ;;  %v1677_v17 = vcombine.high %v1659_v12, %v1663_v13  ;;  %v1653_v20 = vld [vmem:[%s2046_s27 + $0x118] sm:$0xff]  ;;  %v1674_v22 = vcombine.low %v1658_v10, %v1662_v11  ;;  %v1660_v26 = vld [vmem:[%s2046_s27 + $0x150] sm:$0xff]  ;;  %v1691_v35 = vld [vmem:[%s2046_s27 + $0x180] sm:$0xff] }
  0x4a   : > { %502 = vmatprep.mubr.bf16.mxu0 %v1851_v0  ;;  %543 = vmatprep.mubr.bf16.mxu1 %v1851_v0  ;;  %v1657_v21 = vld [vmem:[%s2046_s27 + $0x138] sm:$0xff]  ;;  %v1676_v23 = vcombine.low %v1659_v12, %v1663_v13  ;;  %v1671_v24 = vcombine.high %v1652_v18, %v1656_v19  ;;  %v1649_v30 = vld [vmem:[%s2208_s1 + $0x4] sm:$0x3]  ;;  %v1670_v31 = vcombine.low %v1652_v18, %v1656_v19  ;;  %v1699_v43 = vld [vmem:[%s2046_s27 + $0x1c0] sm:$0xff] }
  0x4b   : > { %v1673_v25 = vcombine.high %v1653_v20, %v1657_v21  ;;  %v1661_v28 = vld [vmem:[%s2046_s27 + $0x158] sm:$0xff]  ;;  %v1672_v32 = vcombine.low %v1653_v20, %v1657_v21  ;;  %v1693_v51 = vld [vmem:[%s2046_s27 + $0x190] sm:$0xff] }
  0x4c   : > { %473 = vmatpush1.bf16.msra.mxu0 %v1600_v36  ;;  %514 = vmatpush1.bf16.msra.mxu1 %v1602_v37  ;;  %v1665_v29 = vld [vmem:[%s2046_s27 + $0x178] sm:$0xff]  ;;  %v1695_v36 = vld [vmem:[%s2046_s27 + $0x1a0] sm:$0xff]  ;;  %v1692_v37 = vld [vmem:[%s2046_s27 + $0x188] sm:$0xff] }
  0x4d   : > { %682 = vmatprep.subr.bf16.mxu0 %v1626_v38  ;;  %723 = vmatprep.subr.bf16.mxu1 %v1628_v39  ;;  %v1681_v34 = vcombine.high %v1661_v28, %v1665_v29  ;;  %v1696_v38 = vld [vmem:[%s2046_s27 + $0x1a8] sm:$0xff]  ;;  %v1680_v40 = vcombine.low %v1661_v28, %v1665_v29  ;;  %v1708_v41 = vcombine.high %v1691_v35, %v1695_v36  ;;  %v1701_v59 = vld [vmem:[%s2046_s27 + $0x1d0] sm:$0xff] }
  0x4e   : > { %v1710_v42 = vcombine.high %v1692_v37, %v1696_v38  ;;  %v1709_v48 = vcombine.low %v1692_v37, %v1696_v38 }
  0x4f   : > { %1606 = vmatmul.mubr.msk.bf16.vlgmr.msra.gmra.mrb[4].mxu0 %vm384_vm0, %v287_v27  ;;  %1607 = vmatmul.mubr.msk.bf16.vlgmr.msra.gmra.mrb[4].mxu1 %vm384_vm0, %v287_v27  ;;  %v1664_v27 = vld [vmem:[%s2046_s27 + $0x170] sm:$0xff] }
  0x50   : > { %683 = vmatpush1.bf16.msra.mxu0 %v1625_v44  ;;  %724 = vmatpush1.bf16.msra.mxu1 %v1627_v45  ;;  %v1679_v33 = vcombine.high %v1660_v26, %v1664_v27  ;;  %v1678_v39 = vcombine.low %v1660_v26, %v1664_v27  ;;  %v1703_v44 = vld [vmem:[%s2046_s27 + $0x1e0] sm:$0xff]  ;;  %v1700_v45 = vld [vmem:[%s2046_s27 + $0x1c8] sm:$0xff] }
  0x51   : > { %684 = vmatprep.subr.bf16.mxu0 %v1634_v46  ;;  %725 = vmatprep.subr.bf16.mxu1 %v1636_v47  ;;  %v1704_v46 = vld [vmem:[%s2046_s27 + $0x1e8] sm:$0xff]  ;;  %v1707_v47 = vcombine.low %v1691_v35, %v1695_v36  ;;  %v1716_v49 = vcombine.high %v1699_v43, %v1703_v44 }
  0x52   : > { %714 = vmatprep.mubr.bf16.mxu0 %v1851_v0  ;;  %755 = vmatprep.mubr.bf16.mxu1 %v1851_v0  ;;  %v1718_v50 = vcombine.high %v1700_v45, %v1704_v46  ;;  %v1717_v56 = vcombine.low %v1700_v45, %v1704_v46 }
  0x54   : > { %685 = vmatpush1.bf16.msra.mxu0 %v1633_v52  ;;  %726 = vmatpush1.bf16.msra.mxu1 %v1635_v53  ;;  %v1697_v52 = vld [vmem:[%s2046_s27 + $0x1b0] sm:$0xff]  ;;  %v1694_v53 = vld [vmem:[%s2046_s27 + $0x198] sm:$0xff] }
  0x55   : > { %764 = vmatprep.subr.bf16.mxu0 %v1630_v54  ;;  %805 = vmatprep.subr.bf16.mxu1 %v1632_v55  ;;  %v1698_v54 = vld [vmem:[%s2046_s27 + $0x1b8] sm:$0xff]  ;;  %v1715_v55 = vcombine.low %v1699_v43, %v1703_v44  ;;  %v1712_v57 = vcombine.high %v1693_v51, %v1697_v52 }
  0x56   : > { %v1714_v58 = vcombine.high %v1694_v53, %v1698_v54  ;;  %v1713_v2 = vcombine.low %v1694_v53, %v1698_v54 }
  0x57   : > { %1641 = vmatmul.mubr.msk.bf16.vlgmr.msra.gmra.mrb[8].mxu0 %vm384_vm0, %v1608_v60  ;;  %1642 = vmatmul.mubr.msk.bf16.vlgmr.msra.gmra.mrb[8].mxu1 %vm384_vm0, %v1608_v60 }
  0x58   : > { %765 = vmatpush1.bf16.msra.mxu0 %v1629_v61  ;;  %806 = vmatpush1.bf16.msra.mxu1 %v1631_v62  ;;  %v1702_v61 = vld [vmem:[%s2046_s27 + $0x1d8] sm:$0xff] }
  0x59   : > { %766 = vmatprep.subr.bf16.mxu0 %v1638_v63  ;;  %807 = vmatprep.subr.bf16.mxu1 %v1640_v1  ;;  %v1706_v62 = vld [vmem:[%s2046_s27 + $0x1f8] sm:$0xff]  ;;  %v1690_v63 = vld [vmem:[%s2208_s1 + $0x6] sm:$0x3]  ;;  %v1711_v1 = vcombine.low %v1693_v51, %v1697_v52 }
  0x5a   : > { %796 = vmatprep.mubr.bf16.mxu0 %v1851_v0  ;;  %837 = vmatprep.mubr.bf16.mxu1 %v1851_v0  ;;  %v1722_v4 = vcombine.high %v1702_v61, %v1706_v62 }
  0x5c   : > { %767 = vmatpush1.bf16.msra.mxu0 %v1637_v6  ;;  %808 = vmatpush1.bf16.msra.mxu1 %v1639_v7  ;;  %v1721_v6 = vcombine.low %v1702_v61, %v1706_v62 }
  0x5d   : > { %977 = vmatprep.subr.bf16.mxu0 %v1667_v8  ;;  %1018 = vmatprep.subr.bf16.mxu1 %v1669_v9 }
  0x5f   : > { %1643 = vmatmul.mubr.msk.bf16.vlgmr.msra.gmra.mrb[12].mxu0 %vm384_vm0, %v1608_v60  ;;  %1644 = vmatmul.mubr.msk.bf16.vlgmr.msra.gmra.mrb[12].mxu1 %vm384_vm0, %v1608_v60  ;;  %v1705_v60 = vld [vmem:[%s2046_s27 + $0x1f0] sm:$0xff] }
  0x60   : > { %978 = vmatpush1.bf16.msra.mxu0 %v1666_v14  ;;  %1019 = vmatpush1.bf16.msra.mxu1 %v1668_v15  ;;  %v1720_v3 = vcombine.high %v1701_v59, %v1705_v60  ;;  %v1719_v5 = vcombine.low %v1701_v59, %v1705_v60 }
  0x61   : > { %979 = vmatprep.subr.bf16.mxu0 %v1675_v16  ;;  %1020 = vmatprep.subr.bf16.mxu1 %v1677_v17 }
  0x62   : > { %1009 = vmatprep.mubr.bf16.mxu0 %v1851_v0  ;;  %1050 = vmatprep.mubr.bf16.mxu1 %v1851_v0 }
  0x64   : > { %980 = vmatpush1.bf16.msra.mxu0 %v1674_v22  ;;  %1021 = vmatpush1.bf16.msra.mxu1 %v1676_v23 }
  0x65   : > { %1059 = vmatprep.subr.bf16.mxu0 %v1671_v24  ;;  %1100 = vmatprep.subr.bf16.mxu1 %v1673_v25 }
  0x67   : > { %1682 = vmatmul.mubr.msk.bf16.vlgmr.msra.gmra.mrb[16].mxu0 %vm384_vm0, %v1649_v30  ;;  %1683 = vmatmul.mubr.msk.bf16.vlgmr.msra.gmra.mrb[16].mxu1 %vm384_vm0, %v1649_v30 }
  0x68   : > { %1060 = vmatpush1.bf16.msra.mxu0 %v1670_v31  ;;  %1101 = vmatpush1.bf16.msra.mxu1 %v1672_v32 }
  0x69   : > { %1061 = vmatprep.subr.bf16.mxu0 %v1679_v33  ;;  %1102 = vmatprep.subr.bf16.mxu1 %v1681_v34 }
  0x6a   : > { %1091 = vmatprep.mubr.bf16.mxu0 %v1851_v0  ;;  %1132 = vmatprep.mubr.bf16.mxu1 %v1851_v0 }
  0x6c   : > { %1062 = vmatpush1.bf16.msra.mxu0 %v1678_v39  ;;  %1103 = vmatpush1.bf16.msra.mxu1 %v1680_v40 }
  0x6d   : > { %1272 = vmatprep.subr.bf16.mxu0 %v1708_v41  ;;  %1313 = vmatprep.subr.bf16.mxu1 %v1710_v42 }
  0x6f   : > { %1684 = vmatmul.mubr.msk.bf16.vlgmr.msra.gmra.mrb[20].mxu0 %vm384_vm0, %v1649_v30  ;;  %1685 = vmatmul.mubr.msk.bf16.vlgmr.msra.gmra.mrb[20].mxu1 %vm384_vm0, %v1649_v30 }
  0x70   : > { %1273 = vmatpush1.bf16.msra.mxu0 %v1707_v47  ;;  %1314 = vmatpush1.bf16.msra.mxu1 %v1709_v48 }
  0x71   : > { %1274 = vmatprep.subr.bf16.mxu0 %v1716_v49  ;;  %1315 = vmatprep.subr.bf16.mxu1 %v1718_v50 }
  0x72   : > { %1304 = vmatprep.mubr.bf16.mxu0 %v1851_v0  ;;  %1345 = vmatprep.mubr.bf16.mxu1 %v1851_v0 }
  0x74   : > { %1275 = vmatpush1.bf16.msra.mxu0 %v1715_v55  ;;  %1316 = vmatpush1.bf16.msra.mxu1 %v1717_v56 }
  0x75   : > { %1354 = vmatprep.subr.bf16.mxu0 %v1712_v57  ;;  %1395 = vmatprep.subr.bf16.mxu1 %v1714_v58 }
  0x77   : > { %1723 = vmatmul.mubr.msk.bf16.vlgmr.msra.gmra.mrb[24].mxu0 %vm384_vm0, %v1690_v63  ;;  %1724 = vmatmul.mubr.msk.bf16.vlgmr.msra.gmra.mrb[24].mxu1 %vm384_vm0, %v1690_v63 }
  0x78   : > { %1355 = vmatpush1.bf16.msra.mxu0 %v1711_v1  ;;  %1396 = vmatpush1.bf16.msra.mxu1 %v1713_v2 }
  0x79   : > { %1356 = vmatprep.subr.bf16.mxu0 %v1720_v3  ;;  %1397 = vmatprep.subr.bf16.mxu1 %v1722_v4 }
  0x7a   : > { %1386 = vmatprep.mubr.bf16.mxu0 %v1851_v0  ;;  %1427 = vmatprep.mubr.bf16.mxu1 %v1851_v0 }
  0x7c   : > { %1357 = vmatpush1.bf16.msra.mxu0 %v1719_v5  ;;  %1398 = vmatpush1.bf16.msra.mxu1 %v1721_v6 }
  0x7f   : > { %1725 = vmatmul.mubr.msk.bf16.vlgmr.msra.gmra.mrb[28].mxu0 %vm384_vm0, %v1690_v63  ;;  %1726 = vmatmul.mubr.msk.bf16.vlgmr.msra.gmra.mrb[28].mxu1 %vm384_vm0, %v1690_v63 }
 0x11a   : > { %v422_v7 = vpop.f32.mrb[0].mxu0  ;;  %v463_v8 = vpop.f32.mrb[0].mxu1 }
 0x11b   : > { %1763 = vtanh.f32 %v422_v7  ;;  %v424_v9 = vpop.f32.mrb[1].mxu0  ;;  %v465_v10 = vpop.f32.mrb[1].mxu1 }
 0x11c   : > { %1765 = vtanh.f32 %v463_v8  ;;  %v426_v11 = vpop.f32.mrb[2].mxu0  ;;  %v467_v12 = vpop.f32.mrb[2].mxu1 }
 0x11d   : > { %1767 = vtanh.f32 %v424_v9  ;;  %v427_v13 = vpop.f32.mrb[3].mxu0  ;;  %v468_v14 = vpop.f32.mrb[3].mxu1 }
 0x11e   : > { %1769 = vtanh.f32 %v465_v10 }
 0x122   : > { %v504_v0 = vpop.f32.mrb[4].mxu0  ;;  %v545_v15 = vpop.f32.mrb[4].mxu1 }
 0x123   : > { %1771 = vtanh.f32 %v504_v0  ;;  %v506_v16 = vpop.f32.mrb[5].mxu0  ;;  %v547_v17 = vpop.f32.mrb[5].mxu1 }
 0x124   : > { %1773 = vtanh.f32 %v545_v15  ;;  %v508_v18 = vpop.f32.mrb[6].mxu0  ;;  %v549_v20 = vpop.f32.mrb[6].mxu1 }
 0x125   : > { %v1764_v19 = vpop.eup %1763  ;;  %1775 = vtanh.f32 %v506_v16  ;;  %v509_v21 = vpop.f32.mrb[7].mxu0 }
 0x126   : > { %v1766_v22 = vpop.eup %1765  ;;  %1777 = vtanh.f32 %v547_v17  ;;  %v550_v23 = vpop.f32.mrb[7].mxu1 }
 0x127   : > { %v1768_v24 = vpop.eup %1767 }
 0x128   : > { %v1770_v25 = vpop.eup %1769  ;;  %v568_v26 = vcombine.low %v1764_v19, %v1768_v24 }
 0x129   : > { %v569_v27 = vcombine.low %v1766_v22, %v1770_v25 }
 0x12a   : > { %576 = vst [vmem:[%s2156_s14] sm:$0xff] %v568_v26  ;;  %v716_v28 = vpop.f32.mrb[8].mxu0  ;;  %v757_v29 = vpop.f32.mrb[8].mxu1 }
 0x12b   : > { %577 = vst [vmem:[%s2156_s14 + $0x8] sm:$0xff] %v569_v27  ;;  %1779 = vtanh.f32 %v716_v28  ;;  %v718_v30 = vpop.f32.mrb[9].mxu0  ;;  %v759_v31 = vpop.f32.mrb[9].mxu1 }
 0x12c   : > { %1781 = vtanh.f32 %v757_v29  ;;  %v720_v32 = vpop.f32.mrb[10].mxu0  ;;  %v761_v34 = vpop.f32.mrb[10].mxu1 }
 0x12d   : > { %v1772_v33 = vpop.eup %1771  ;;  %1783 = vtanh.f32 %v718_v30  ;;  %v721_v35 = vpop.f32.mrb[11].mxu0 }
 0x12e   : > { %v1774_v36 = vpop.eup %1773  ;;  %1785 = vtanh.f32 %v759_v31  ;;  %v762_v37 = vpop.f32.mrb[11].mxu1 }
 0x12f   : > { %v1776_v38 = vpop.eup %1775 }
 0x130   : > { %v1778_v39 = vpop.eup %1777  ;;  %v570_v40 = vcombine.low %v1772_v33, %v1776_v38 }
 0x131   : > { %v571_v41 = vcombine.low %v1774_v36, %v1778_v39 }
 0x132   : > { %578 = vst [vmem:[%s2156_s14 + $0x10] sm:$0xff] %v570_v40  ;;  %v798_v42 = vpop.f32.mrb[12].mxu0  ;;  %v839_v43 = vpop.f32.mrb[12].mxu1 }
 0x133   : > { %579 = vst [vmem:[%s2156_s14 + $0x18] sm:$0xff] %v571_v41  ;;  %1787 = vtanh.f32 %v798_v42  ;;  %v800_v44 = vpop.f32.mrb[13].mxu0  ;;  %v841_v45 = vpop.f32.mrb[13].mxu1 }
 0x134   : > { %1789 = vtanh.f32 %v839_v43  ;;  %v802_v46 = vpop.f32.mrb[14].mxu0  ;;  %v843_v48 = vpop.f32.mrb[14].mxu1 }
 0x135   : > { %v1780_v47 = vpop.eup %1779  ;;  %1791 = vtanh.f32 %v800_v44  ;;  %v803_v49 = vpop.f32.mrb[15].mxu0 }
 0x136   : > { %v1782_v50 = vpop.eup %1781  ;;  %1793 = vtanh.f32 %v841_v45  ;;  %v844_v51 = vpop.f32.mrb[15].mxu1 }
 0x137   : > { %v1784_v52 = vpop.eup %1783 }
 0x138   : > { %v1786_v53 = vpop.eup %1785  ;;  %v862_v54 = vcombine.low %v1780_v47, %v1784_v52 }
 0x139   : > { %v863_v55 = vcombine.low %v1782_v50, %v1786_v53 }
 0x13a   : > { %1645 = vst [vmem:[%s2156_s14 + $0x20] sm:$0xff] %v862_v54  ;;  %v1011_v56 = vpop.f32.mrb[16].mxu0  ;;  %v1052_v57 = vpop.f32.mrb[16].mxu1  ;;  %v1487_v54 = vld [vmem:[%s2156_s14] sm:$0xff] (%p1897_p5) }
 0x13b   : > { %1646 = vst [vmem:[%s2156_s14 + $0x28] sm:$0xff] %v863_v55  ;;  %1795 = vtanh.f32 %v1011_v56  ;;  %v1013_v58 = vpop.f32.mrb[17].mxu0  ;;  %v1054_v59 = vpop.f32.mrb[17].mxu1  ;;  %v1489_v55 = vld [vmem:[%s2156_s14 + $0x8] sm:$0xff] (%p1897_p5)  ;;  %v1491_v56 = vld [vmem:[%s2156_s14 + $0x10] sm:$0xff] (%p1897_p5)  ;;  %1488 = vst [vmem:[%s1474_s17] sm:$0xff] (%p1897_p5), %v1487_v54 }
 0x13c   : > { %1797 = vtanh.f32 %v1052_v57  ;;  %v1015_v60 = vpop.f32.mrb[18].mxu0  ;;  %v1056_v62 = vpop.f32.mrb[18].mxu1  ;;  %v1493_v57 = vld [vmem:[%s2156_s14 + $0x18] sm:$0xff] (%p1897_p5)  ;;  %1490 = vst [vmem:[%s1474_s17 + $0x8] sm:$0xff] (%p1897_p5), %v1489_v55  ;;  %1492 = vst [vmem:[%s1474_s17 + $0x10] sm:$0xff] (%p1897_p5), %v1491_v56 }
 0x13d   : > { %v1788_v61 = vpop.eup %1787  ;;  %1799 = vtanh.f32 %v1013_v58  ;;  %v1016_v63 = vpop.f32.mrb[19].mxu0  ;;  %1494 = vst [vmem:[%s1474_s17 + $0x18] sm:$0xff] (%p1897_p5), %v1493_v57 }
 0x13e   : > { %v1790_v1 = vpop.eup %1789  ;;  %1801 = vtanh.f32 %v1054_v59  ;;  %v1057_v2 = vpop.f32.mrb[19].mxu1 }
 0x13f   : > { %v1792_v3 = vpop.eup %1791 }
 0x140   : > { %v1794_v4 = vpop.eup %1793  ;;  %v864_v5 = vcombine.low %v1788_v61, %v1792_v3 }
 0x141   : > { %v865_v6 = vcombine.low %v1790_v1, %v1794_v4  ;;  %v1495_v58 = vld [vmem:[%s2156_s14 + $0x20] sm:$0xff] (%p1897_p5) }
 0x142   : > { %1647 = vst [vmem:[%s2156_s14 + $0x30] sm:$0xff] %v864_v5  ;;  %v1093_v7 = vpop.f32.mrb[20].mxu0  ;;  %v1134_v8 = vpop.f32.mrb[20].mxu1  ;;  %v1497_v59 = vld [vmem:[%s2156_s14 + $0x28] sm:$0xff] (%p1897_p5)  ;;  %1496 = vst [vmem:[%s1474_s17 + $0x40] sm:$0xff] (%p1897_p5), %v1495_v58 }
 0x143   : > { %1648 = vst [vmem:[%s2156_s14 + $0x38] sm:$0xff] %v865_v6  ;;  %1803 = vtanh.f32 %v1093_v7  ;;  %v1095_v9 = vpop.f32.mrb[21].mxu0  ;;  %v1136_v10 = vpop.f32.mrb[21].mxu1  ;;  %1498 = vst [vmem:[%s1474_s17 + $0x48] sm:$0xff] (%p1897_p5), %v1497_v59 }
 0x144   : > { %1805 = vtanh.f32 %v1134_v8  ;;  %v1097_v11 = vpop.f32.mrb[22].mxu0  ;;  %v1138_v13 = vpop.f32.mrb[22].mxu1 }
 0x145   : > { %v1796_v12 = vpop.eup %1795  ;;  %1807 = vtanh.f32 %v1095_v9  ;;  %v1098_v14 = vpop.f32.mrb[23].mxu0 }
 0x146   : > { %v1798_v0 = vpop.eup %1797  ;;  %1809 = vtanh.f32 %v1136_v10  ;;  %v1139_v15 = vpop.f32.mrb[23].mxu1 }
 0x147   : > { %v1800_v16 = vpop.eup %1799 }
 0x148   : > { %v1802_v17 = vpop.eup %1801  ;;  %v1157_v18 = vcombine.low %v1796_v12, %v1800_v16 }
 0x149   : > { %v1158_v19 = vcombine.low %v1798_v0, %v1802_v17  ;;  %v1499_v60 = vld [vmem:[%s2156_s14 + $0x30] sm:$0xff] (%p1897_p5) }
 0x14a   : > { %1686 = vst [vmem:[%s2156_s14 + $0x40] sm:$0xff] %v1157_v18  ;;  %v1306_v20 = vpop.f32.mrb[24].mxu0  ;;  %v1347_v21 = vpop.f32.mrb[24].mxu1  ;;  %v1501_v61 = vld [vmem:[%s2156_s14 + $0x38] sm:$0xff] (%p1897_p5)  ;;  %1500 = vst [vmem:[%s1474_s17 + $0x50] sm:$0xff] (%p1897_p5), %v1499_v60 }
 0x14b   : > { %1687 = vst [vmem:[%s2156_s14 + $0x48] sm:$0xff] %v1158_v19  ;;  %1811 = vtanh.f32 %v1306_v20  ;;  %v1308_v22 = vpop.f32.mrb[25].mxu0  ;;  %v1349_v23 = vpop.f32.mrb[25].mxu1  ;;  %1502 = vst [vmem:[%s1474_s17 + $0x58] sm:$0xff] (%p1897_p5), %v1501_v61 }
 0x14c   : > { %1813 = vtanh.f32 %v1347_v21  ;;  %v1310_v24 = vpop.f32.mrb[26].mxu0  ;;  %v1351_v26 = vpop.f32.mrb[26].mxu1 }
 0x14d   : > { %v1804_v25 = vpop.eup %1803  ;;  %1815 = vtanh.f32 %v1308_v22  ;;  %v1311_v27 = vpop.f32.mrb[27].mxu0 }
 0x14e   : > { %v1806_v28 = vpop.eup %1805  ;;  %1817 = vtanh.f32 %v1349_v23  ;;  %v1352_v29 = vpop.f32.mrb[27].mxu1 }
 0x14f   : > { %v1808_v30 = vpop.eup %1807 }
 0x150   : > { %v1810_v31 = vpop.eup %1809  ;;  %v1159_v32 = vcombine.low %v1804_v25, %v1808_v30 }
 0x151   : > { %v1160_v33 = vcombine.low %v1806_v28, %v1810_v31  ;;  %v1503_v62 = vld [vmem:[%s2156_s14 + $0x40] sm:$0xff] (%p1897_p5) }
 0x152   : > { %1688 = vst [vmem:[%s2156_s14 + $0x50] sm:$0xff] %v1159_v32  ;;  %v1388_v34 = vpop.f32.mrb[28].mxu0  ;;  %v1429_v35 = vpop.f32.mrb[28].mxu1  ;;  %1504 = vst [vmem:[%s1474_s17 + $0x80] sm:$0xff] (%p1897_p5), %v1503_v62  ;;  %v1505_v63 = vld [vmem:[%s2156_s14 + $0x48] sm:$0xff] (%p1897_p5) }
 0x153   : > { %1689 = vst [vmem:[%s2156_s14 + $0x58] sm:$0xff] %v1160_v33  ;;  %1819 = vtanh.f32 %v1388_v34  ;;  %v1390_v36 = vpop.f32.mrb[29].mxu0  ;;  %v1431_v37 = vpop.f32.mrb[29].mxu1  ;;  %1506 = vst [vmem:[%s1474_s17 + $0x88] sm:$0xff] (%p1897_p5), %v1505_v63 }
 0x154   : > { %1821 = vtanh.f32 %v1429_v35  ;;  %v1392_v38 = vpop.f32.mrb[30].mxu0  ;;  %v1433_v40 = vpop.f32.mrb[30].mxu1 }
 0x155   : > { %v1812_v39 = vpop.eup %1811  ;;  %1823 = vtanh.f32 %v1390_v36  ;;  %v1393_v41 = vpop.f32.mrb[31].mxu0 }
 0x156   : > { %v1814_v42 = vpop.eup %1813  ;;  %1825 = vtanh.f32 %v1431_v37  ;;  %v1434_v43 = vpop.f32.mrb[31].mxu1 }
 0x157   : > { %v1816_v44 = vpop.eup %1815 }
 0x158   : > { %v1818_v45 = vpop.eup %1817  ;;  %v1452_v46 = vcombine.low %v1812_v39, %v1816_v44 }
 0x159   : > { %v1453_v47 = vcombine.low %v1814_v42, %v1818_v45  ;;  %v1507_v1 = vld [vmem:[%s2156_s14 + $0x50] sm:$0xff] (%p1897_p5) }
 0x15a   : > { %1727 = vst [vmem:[%s2156_s14 + $0x60] sm:$0xff] %v1452_v46  ;;  %v1509_v2 = vld [vmem:[%s2156_s14 + $0x58] sm:$0xff] (%p1897_p5)  ;;  %1508 = vst [vmem:[%s1474_s17 + $0x90] sm:$0xff] (%p1897_p5), %v1507_v1 }
 0x15b   : > { %1728 = vst [vmem:[%s2156_s14 + $0x68] sm:$0xff] %v1453_v47  ;;  %1510 = vst [vmem:[%s1474_s17 + $0x98] sm:$0xff] (%p1897_p5), %v1509_v2 }
 0x15d   : > { %v1820_v48 = vpop.eup %1819  ;;  %1471 = sbr.rel (!%p1897_p5) target bundleno = 364 (0x16c), region = 55 }
 0x15e   : > { %v1822_v49 = vpop.eup %1821 }
 0x15f   : > { %v1824_v50 = vpop.eup %1823 }
 0x160   : > { %v1826_v51 = vpop.eup %1825  ;;  %v1454_v52 = vcombine.low %v1820_v48, %v1824_v50 }
 0x161   : > { %v1455_v53 = vcombine.low %v1822_v49, %v1826_v51  ;;  %v1511_v3 = vld [vmem:[%s2156_s14 + $0x60] sm:$0xff] (%p1897_p5) }
 0x162   : > { %1729 = vst [vmem:[%s2156_s14 + $0x70] sm:$0xff] %v1454_v52  ;;  %v1513_v4 = vld [vmem:[%s2156_s14 + $0x68] sm:$0xff] (%p1897_p5)  ;;  %1512 = vst [vmem:[%s1474_s17 + $0xc0] sm:$0xff] (%p1897_p5), %v1511_v3 }
 0x163   : > { %1730 = vst [vmem:[%s2156_s14 + $0x78] sm:$0xff] %v1455_v53  ;;  %1514 = vst [vmem:[%s1474_s17 + $0xc8] sm:$0xff] (%p1897_p5), %v1513_v4 }
 0x169   : > { %v1515_v5 = vld [vmem:[%s2156_s14 + $0x70] sm:$0xff] }
 0x16a   : > { %1516 = vst [vmem:[%s1474_s17 + $0xd0] sm:$0xff] %v1515_v5  ;;  %v1517_v6 = vld [vmem:[%s2156_s14 + $0x78] sm:$0xff] }
 0x16b   : > { %1518 = vst [vmem:[%s1474_s17 + $0xd8] sm:$0xff] %v1517_v6 }
 0x16c PF: > { %p9_p10 = scmp.ge.s32.totalorder %s1884_s13, 4   ;;  %s2211_s9 = smov %s1845_s10 }
 0x16d   : > { %s2212_s10 = smov %s1895_s16  ;;  %s2213_s11 = smov %s1884_s13 }
 0x16e   :  { %11 = sbr.rel (!%p9_p10) target bundleno = 2 (0x2), region = 118 }

</bundles_post_ra>
